<compile_context>
chip_gen: v5e
topology: v5e:2x2
jax: 0.10.0
libtpu: 0.0.40
codegen_flags: <defaults>
</compile_context>

<pallas_src>
import functools

import jax
import jax.numpy as jnp
from jax import lax
from jax.experimental import pallas as pl
from jax.experimental.pallas import tpu as pltpu


_VMEM_LIMIT_BYTES = 56 * 1024 * 1024   # explicit scoped-VMEM limit (fits v7x 64 MiB phys)
_VMEM_TILE_BUDGET = 44 * 1024 * 1024   # tiling budget, leaves compiler headroom


def _relu6(x):
    return jnp.minimum(jnp.maximum(x, 0.0), 6.0)


def _round_up(n, m):
    return ((n + m - 1) // m) * m


def fold_bn(gamma, beta, mean, var, eps=1e-5):
    scale = gamma / jnp.sqrt(var + eps)
    bias = beta - mean * scale
    return scale, bias


def _fold_params(params, hidden, out_c):
    """Fold eval-mode BatchNorms into the three conv weights/biases."""
    s1, b1 = fold_bn(params["g1"], params["be1"], params["m1"], params["v1"])
    s2, b2 = fold_bn(params["g2"], params["be2"], params["m2"], params["v2"])
    s3, b3 = fold_bn(params["g3"], params["be3"], params["m3"], params["v3"])
    w1 = (params["W1"] * s1[:, None]).T                      # (in_c, hidden)
    dw = params["DW"] * s2[:, None, None]                    # (hidden, 3, 3)
    dw9 = jnp.transpose(dw, (1, 2, 0)).reshape(9, hidden)    # (9, hidden), row = ky*3+kx
    w3 = (params["W3"] * s3[:, None]).T                      # (hidden, out_c)
    return w1, b1, dw9, b2, w3, b3


def _choose_row_tile(Ho, Wo, Hp, Wp, ci, chid, co, stride, budget_bytes):
    """Largest divisor of Ho whose per-program VMEM footprint fits the budget."""
    fixed = (2 * Hp * Wp * ci * 2            # bf16 image block, double-buffered
             + ci * chid * 2                 # W1 (bf16, single-buffered)
             + chid * co * 2                 # W3 (bf16, single-buffered)
             + (9 + 2) * chid * 4 + co * 4)  # dw taps + biases (f32)

    def need(th):
        rows_in = (th - 1) * stride + 3
        h_bytes = rows_in * Wp * chid * 4            # expanded activation (f32)
        if stride == 2:
            h_bytes += rows_in * Wp * chid * 4       # even/odd column de-interleave
        acc_bytes = th * Wo * chid * 4               # depthwise accumulator (f32)
        h2_bytes = th * Wo * chid * 2                # bf16 operand for stage 3
        y_bytes = th * Wo * co * 4                   # projection result (f32)
        out_bytes = 2 * th * Wo * co * 2             # bf16 output block, double-buffered
        return fixed + h_bytes + acc_bytes + h2_bytes + y_bytes + out_bytes

    best = 1
    for d in range(1, Ho + 1):
        if Ho % d == 0 and need(d) <= budget_bytes:
            best = d
    return best


def inverted_residual_kernel(x_ref, w1_ref, b1_ref, dw_ref, b2_ref, w3_ref, b3_ref,
                             o_ref, *, stride, use_res):
    Hp, Wp, Ci = x_ref.shape            # per-image, spatially pre-padded by 1, bf16
    Ch = w1_ref.shape[1]                # lane-padded hidden channels
    TH, Wo, Co = o_ref.shape            # output row tile
    rows_in = (TH - 1) * stride + 3     # haloed input rows for this tile

    r = pl.program_id(1)
    row_step = TH * stride
    row_start = r * row_step
    if row_step % 8 == 0:
        row_start = pl.multiple_of(row_start, 8)

    # Haloed bf16 input row window for this output-row tile (stays live for residual).
    x_win = x_ref[pl.ds(row_start, rows_in), :, :]            # (rows_in, Wp, Ci)

    # ---- stage 1: 1x1 expansion (+folded BN) + ReLU6 -- MXU, bf16 in / f32 acc ----
    h = jnp.dot(x_win.reshape(rows_in * Wp, Ci), w1_ref[...],
                preferred_element_type=jnp.float32)
    h = _relu6(h + b1_ref[...]).reshape(rows_in, Wp, Ch)

    # Zero the spatial padding ring so the depthwise conv sees true zero padding
    # (the pre-padded x rows/cols would otherwise produce relu6(b1) after stage 1).
    # Mask is built directly in the (rows_in, Wp, Ch) layout: no [:, :, None]
    # broadcast/relayout.  (Interior row tiles only truly need the column part.)
    gr = lax.broadcasted_iota(jnp.int32, (rows_in, Wp, Ch), 0) + row_start
    gc = lax.broadcasted_iota(jnp.int32, (rows_in, Wp, Ch), 1)
    interior = (gr > 0) & (gr < Hp - 1) & (gc > 0) & (gc < Wp - 1)
    h = jnp.where(interior, h, 0.0)

    # ---- stage 2: 3x3 depthwise, stride, pad=1 (+folded BN) + ReLU6 -- VPU, f32 ----
    dwv = dw_ref[...]                                          # (9, Ch)
    taps = [dwv[k:k + 1, :].reshape(1, 1, Ch) for k in range(9)]   # hoisted constants
    row_span = (TH - 1) * stride + 1

    if stride == 2:
        # De-interleave columns once (2 strided sublane slices) so the 9 taps can
        # take contiguous column slices instead of 9 strided copies.
        h_planes = (h[:, 0::2, :], h[:, 1::2, :])

    def tap_window(ky, kx):
        if stride == 1:
            return h[ky:ky + TH, kx:kx + Wo, :]
        plane = h_planes[kx % 2]
        c0 = kx // 2
        return plane[ky:ky + row_span:stride, c0:c0 + Wo, :]

    acc = tap_window(0, 0) * taps[0]          # init with first tap: no zeros buffer
    for k in range(1, 9):
        ky, kx = divmod(k, 3)
        acc = acc + tap_window(ky, kx) * taps[k]
    h2 = _relu6(acc + b2_ref[...].reshape(1, 1, Ch))

    # ---- stage 3: 1x1 projection (+folded BN) -- MXU, bf16 in / f32 acc ----
    y = jnp.dot(h2.reshape(TH * Wo, Ch).astype(jnp.bfloat16), w3_ref[...],
                preferred_element_type=jnp.float32) + b3_ref[...]
    y = y.reshape(TH, Wo, Co)

    if use_res:
        # in_c == out_c and stride == 1, so lane padding lines up (padded lanes are 0).
        y = y + x_win[1:1 + TH, 1:1 + Wo, :].astype(jnp.float32)

    o_ref[...] = y.astype(o_ref.dtype)


def inverted_residual(x_nchw, params, in_c, out_c, stride, expansion):
    """PyTorch-compatible entry: x_nchw is NCHW float32.  Intended to be jitted."""
    hidden = in_c * expansion
    use_res = (in_c == out_c) and (stride == 1)
    w1, b1, dw9, b2, w3, b3 = _fold_params(params, hidden, out_c)

    # Lane-pad channels to multiples of 128 so everything is lane-dense.
    ci = _round_up(in_c, 128)
    chid = _round_up(hidden, 128)
    co = _round_up(out_c, 128)

    w1p = jnp.pad(w1, ((0, ci - in_c), (0, chid - hidden))).astype(jnp.bfloat16)
    w3p = jnp.pad(w3, ((0, chid - hidden), (0, co - out_c))).astype(jnp.bfloat16)
    dwp = jnp.pad(dw9, ((0, 0), (0, chid - hidden)))
    b1p = jnp.pad(b1, (0, chid - hidden)).reshape(1, chid)
    b2p = jnp.pad(b2, (0, chid - hidden)).reshape(1, chid)
    b3p = jnp.pad(b3, (0, co - out_c)).reshape(1, co)

    # NCHW -> NHWC, lane-pad channels, spatial halo pad (+1 each side), cast to bf16
    # once here (halves input HBM traffic / VMEM and removes in-kernel operand casts).
    x = jnp.transpose(x_nchw, (0, 2, 3, 1))
    N, H, W, _ = x.shape
    xp = jnp.pad(x, ((0, 0), (1, 1), (1, 1), (0, ci - in_c))).astype(jnp.bfloat16)
    Hp, Wp = H + 2, W + 2
    Ho = (H - 1) // stride + 1
    Wo = (W - 1) // stride + 1

    th = _choose_row_tile(Ho, Wo, Hp, Wp, ci, chid, co, stride, _VMEM_TILE_BUDGET)

    kernel = functools.partial(inverted_residual_kernel, stride=stride, use_res=use_res)

    flops = N * (2 * H * W * in_c * hidden
                 + 2 * 9 * Ho * Wo * hidden
                 + 2 * Ho * Wo * hidden * out_c)
    bytes_accessed = (xp.size * 2 + w1p.size * 2 + w3p.size * 2
                      + (dwp.size + b1p.size + b2p.size + b3p.size) * 4
                      + N * Ho * Wo * co * 2)

    const = dict(pipeline_mode=pl.Buffered(1))   # constant operands: single buffer

    out = pl.pallas_call(
        kernel,
        out_shape=jax.ShapeDtypeStruct((N, Ho, Wo, co), jnp.bfloat16),
        grid=(N, Ho // th),
        in_specs=[
            # Full (pre-padded, bf16) image per batch index; block index constant
            # across row tiles, the haloed row window is sliced in-kernel via pl.ds.
            pl.BlockSpec((None, Hp, Wp, ci), lambda n, r: (n, 0, 0, 0)),
            pl.BlockSpec((ci, chid), lambda n, r: (0, 0), **const),   # W1 (bf16)
            pl.BlockSpec((1, chid), lambda n, r: (0, 0), **const),    # b1
            pl.BlockSpec((9, chid), lambda n, r: (0, 0), **const),    # depthwise taps
            pl.BlockSpec((1, chid), lambda n, r: (0, 0), **const),    # b2
            pl.BlockSpec((chid, co), lambda n, r: (0, 0), **const),   # W3 (bf16)
            pl.BlockSpec((1, co), lambda n, r: (0, 0), **const),      # b3
        ],
        out_specs=pl.BlockSpec((None, th, Wo, co), lambda n, r: (n, r, 0, 0)),
        compiler_params=pltpu.CompilerParams(
            # Batch axis parallel (megacore / 2-TC sharding), row-tile axis arbitrary:
            # splitting r across cores would duplicate the full-image input DMA.
            dimension_semantics=("parallel", "arbitrary"),
            vmem_limit_bytes=_VMEM_LIMIT_BYTES),
        cost_estimate=pl.CostEstimate(flops=flops, transcendentals=0,
                                      bytes_accessed=bytes_accessed),
    )(xp, w1p, b1p, dwp, b2p, w3p, b3p)

    out = out[..., :out_c].astype(jnp.float32)   # strip lane padding, back to f32
    return jnp.transpose(out, (0, 3, 1, 2))      # NHWC -> NCHW


def _reference_nchw(x_nchw, params, in_c, out_c, stride, expansion):
    """Pure-JAX reference (mirrors the kernel's bf16 quantization points)."""
    hidden = in_c * expansion
    use_res = (in_c == out_c) and (stride == 1)
    w1, b1, dw9, b2, w3, b3 = _fold_params(params, hidden, out_c)
    rnd = lambda a: a.astype(jnp.bfloat16).astype(jnp.float32)

    x = jnp.transpose(x_nchw, (0, 2, 3, 1)).astype(jnp.float32)
    xq = rnd(x)                                     # kernel consumes bf16 input
    h = _relu6(jnp.einsum("nhwc,cd->nhwd", xq, rnd(w1),
                          precision=lax.Precision.HIGHEST) + b1.reshape(1, 1, 1, -1))
    dwf = dw9.reshape(3, 3, 1, hidden)
    h2 = lax.conv_general_dilated(h, dwf, window_strides=(stride, stride),
                                  padding=((1, 1), (1, 1)),
                                  dimension_numbers=("NHWC", "HWIO", "NHWC"),
                                  feature_group_count=hidden,
                                  precision=lax.Precision.HIGHEST)
    h2 = _relu6(h2 + b2.reshape(1, 1, 1, -1))
    y = jnp.einsum("nhwc,cd->nhwd", rnd(h2), rnd(w3),
                   precision=lax.Precision.HIGHEST) + b3.reshape(1, 1, 1, -1)
    if use_res:
        y = y + xq
    y = rnd(y)                                      # kernel emits bf16 output
    return jnp.transpose(y, (0, 3, 1, 2))


if __name__ == "__main__":
    # small, MNIST-ish shapes: batch=2, in_c=4, 16x16, expansion=2, stride=1
    in_c, out_c, stride, expansion = 4, 4, 1, 2
    hidden = in_c * expansion
    N, H, W = 2, 16, 16

    key = jax.random.PRNGKey(0)
    ks = jax.random.split(key, 13)

    params = {
        # conv weights (PyTorch shapes with 1x1 / single-input dims squeezed)
        "W1": 0.3 * jax.random.normal(ks[0], (hidden, in_c), jnp.float32),
        "DW": 0.3 * jax.random.normal(ks[1], (hidden, 3, 3), jnp.float32),
        "W3": 0.3 * jax.random.normal(ks[2], (out_c, hidden), jnp.float32),
        # BatchNorm params (eval-mode running stats), deterministic & nontrivial
        "g1": 1.0 + 0.1 * jax.random.normal(ks[3], (hidden,), jnp.float32),
        "be1": 0.05 * jax.random.normal(ks[4], (hidden,), jnp.float32),
        "m1": 0.1 * jax.random.normal(ks[5], (hidden,), jnp.float32),
        "v1": 1.0 + 0.1 * jax.nn.softplus(jax.random.normal(ks[6], (hidden,), jnp.float32)),
        "g2": 1.0 + 0.1 * jax.random.normal(ks[7], (hidden,), jnp.float32),
        "be2": 0.05 * jax.random.normal(ks[8], (hidden,), jnp.float32),
        "m2": 0.1 * jax.random.normal(ks[9], (hidden,), jnp.float32),
        "v2": 1.0 + 0.1 * jax.nn.softplus(jax.random.normal(ks[10], (hidden,), jnp.float32)),
        "g3": jnp.linspace(0.9, 1.1, out_c, dtype=jnp.float32),
        "be3": jnp.linspace(-0.05, 0.05, out_c, dtype=jnp.float32),
        "m3": jnp.linspace(-0.1, 0.1, out_c, dtype=jnp.float32),
        "v3": jnp.linspace(0.9, 1.2, out_c, dtype=jnp.float32),
    }

    x = jax.random.normal(ks[11], (N, in_c, H, W), jnp.float32)

    # jit the wrapper so BN folding / weight packing is compiled once.
    run = jax.jit(lambda xx, pp: inverted_residual(xx, pp, in_c, out_c, stride, expansion))
    out = jax.block_until_ready(run(x, params))

    ref = _reference_nchw(x, params, in_c, out_c, stride, expansion)

    assert out.shape == (N, out_c, H, W), out.shape
    max_err = float(jnp.max(jnp.abs(out - ref)))
    # bf16 quantization points are matched in the reference, so the residual error
    # is only f32 accumulation-order noise.
    assert jnp.allclose(out, ref, rtol=1e-2, atol=1e-2), f"max abs err {max_err}"
    print("KERNEL_OK")
</pallas_src>

<mosaic_0001>
module attributes {stable_mosaic.version = 11 : i64} {
  func.func @inverted_residual_kernel(%arg0: i32, %arg1: i32, %arg2: memref<1x18x18x128xbf16, #tpu.memory_space<vmem>>, %arg3: memref<128x128xbf16, #tpu.memory_space<vmem>>, %arg4: memref<1x128xf32, #tpu.memory_space<vmem>>, %arg5: memref<9x128xf32, #tpu.memory_space<vmem>>, %arg6: memref<1x128xf32, #tpu.memory_space<vmem>>, %arg7: memref<128x128xbf16, #tpu.memory_space<vmem>>, %arg8: memref<1x128xf32, #tpu.memory_space<vmem>>, %arg9: memref<1x16x16x128xbf16, #tpu.memory_space<vmem>>) attributes {dimension_semantics = [#tpu.dimension_semantics<parallel>, #tpu.dimension_semantics<arbitrary>], iteration_bounds = array<i64: 2, 1>, scalar_prefetch = 0 : i64, scratch_operands = 0 : i64, tpu.core_type = #tpu.core_type<tc>, window_params = [{transform_indices = @transform_0, window_bounds = array<i64: 1, 18, 18, 128>}, {pipeline_mode = #tpu.pipeline_mode<synchronous>, transform_indices = @transform_1, window_bounds = array<i64: 128, 128>}, {pipeline_mode = #tpu.pipeline_mode<synchronous>, transform_indices = @transform_2, window_bounds = array<i64: 1, 128>}, {pipeline_mode = #tpu.pipeline_mode<synchronous>, transform_indices = @transform_3, window_bounds = array<i64: 9, 128>}, {pipeline_mode = #tpu.pipeline_mode<synchronous>, transform_indices = @transform_4, window_bounds = array<i64: 1, 128>}, {pipeline_mode = #tpu.pipeline_mode<synchronous>, transform_indices = @transform_5, window_bounds = array<i64: 128, 128>}, {pipeline_mode = #tpu.pipeline_mode<synchronous>, transform_indices = @transform_6, window_bounds = array<i64: 1, 128>}, {transform_indices = @transform_7, window_bounds = array<i64: 1, 16, 16, 128>}]} {
    %c16_i32 = arith.constant 16 : i32
    %0 = arith.muli %arg1, %c16_i32 : i32
    %1 = tpu.assume_multiple %0, 8 : i32
    %c0 = arith.constant 0 : index
    %2 = arith.index_cast %1 : i32 to index
    %c0_0 = arith.constant 0 : index
    %c0_1 = arith.constant 0 : index
    %3 = vector.load %arg2[%c0, %2, %c0_0, %c0_1] : memref<1x18x18x128xbf16, #tpu.memory_space<vmem>>, vector<1x18x18x128xbf16>
    %4 = vector.shape_cast %3 : vector<1x18x18x128xbf16> to vector<18x18x128xbf16>
    %5 = vector.shape_cast %4 : vector<18x18x128xbf16> to vector<324x128xbf16>
    %c0_2 = arith.constant 0 : index
    %c0_3 = arith.constant 0 : index
    %6 = vector.load %arg3[%c0_2, %c0_3] : memref<128x128xbf16, #tpu.memory_space<vmem>>, vector<128x128xbf16>
    %cst = arith.constant dense<0.000000e+00> : vector<324x128xf32>
    %7 = tpu.matmul %5, %6, %cst {dimension_numbers = #tpu.dot_dimension_numbers<[1], [0], [0], [1], [0, 0, 1, 1], [], []>} : vector<324x128xbf16>, vector<128x128xbf16>, vector<324x128xf32> -> vector<324x128xf32>
    %c0_4 = arith.constant 0 : index
    %c0_5 = arith.constant 0 : index
    %8 = vector.load %arg4[%c0_4, %c0_5] : memref<1x128xf32, #tpu.memory_space<vmem>>, vector<1x128xf32>
    %9 = vector.broadcast %8 : vector<1x128xf32> to vector<324x128xf32>
    %10 = arith.addf %7, %9 : vector<324x128xf32>
    %cst_6 = arith.constant 0.000000e+00 : f32
    %11 = vector.broadcast %cst_6 : f32 to vector<324x128xf32>
    %12 = arith.maximumf %10, %11 : vector<324x128xf32>
    %cst_7 = arith.constant 6.000000e+00 : f32
    %13 = vector.broadcast %cst_7 : f32 to vector<324x128xf32>
    %14 = arith.minimumf %12, %13 : vector<324x128xf32>
    %15 = vector.shape_cast %14 : vector<324x128xf32> to vector<18x18x128xf32>
    %16 = tpu.iota {dimensions = array<i32: 0>} : vector<18x18x128xi32>
    %17 = vector.broadcast %1 : i32 to vector<18x18x128xi32>
    %18 = arith.addi %16, %17 : vector<18x18x128xi32>
    %19 = tpu.iota {dimensions = array<i32: 1>} : vector<18x18x128xi32>
    %c0_i32 = arith.constant 0 : i32
    %20 = vector.broadcast %c0_i32 : i32 to vector<18x18x128xi32>
    %21 = arith.cmpi sgt, %18, %20 : vector<18x18x128xi32>
    %c17_i32 = arith.constant 17 : i32
    %22 = vector.broadcast %c17_i32 : i32 to vector<18x18x128xi32>
    %23 = arith.cmpi slt, %18, %22 : vector<18x18x128xi32>
    %24 = arith.andi %21, %23 : vector<18x18x128xi1>
    %c0_i32_8 = arith.constant 0 : i32
    %25 = vector.broadcast %c0_i32_8 : i32 to vector<18x18x128xi32>
    %26 = arith.cmpi sgt, %19, %25 : vector<18x18x128xi32>
    %27 = arith.andi %24, %26 : vector<18x18x128xi1>
    %c17_i32_9 = arith.constant 17 : i32
    %28 = vector.broadcast %c17_i32_9 : i32 to vector<18x18x128xi32>
    %29 = arith.cmpi slt, %19, %28 : vector<18x18x128xi32>
    %30 = arith.andi %27, %29 : vector<18x18x128xi1>
    %cst_10 = arith.constant 0.000000e+00 : f32
    %31 = vector.broadcast %cst_10 : f32 to vector<18x18x128xf32>
    %32 = arith.select %30, %15, %31 : vector<18x18x128xi1>, vector<18x18x128xf32>
    %c0_11 = arith.constant 0 : index
    %c0_12 = arith.constant 0 : index
    %33 = vector.load %arg5[%c0_11, %c0_12] : memref<9x128xf32, #tpu.memory_space<vmem>>, vector<9x128xf32>
    %34 = vector.extract_strided_slice %33 {offsets = [0, 0], sizes = [1, 128], strides = [1, 1]} : vector<9x128xf32> to vector<1x128xf32>
    %35 = vector.shape_cast %34 : vector<1x128xf32> to vector<1x1x128xf32>
    %36 = vector.extract_strided_slice %33 {offsets = [1, 0], sizes = [1, 128], strides = [1, 1]} : vector<9x128xf32> to vector<1x128xf32>
    %37 = vector.shape_cast %36 : vector<1x128xf32> to vector<1x1x128xf32>
    %38 = vector.extract_strided_slice %33 {offsets = [2, 0], sizes = [1, 128], strides = [1, 1]} : vector<9x128xf32> to vector<1x128xf32>
    %39 = vector.shape_cast %38 : vector<1x128xf32> to vector<1x1x128xf32>
    %40 = vector.extract_strided_slice %33 {offsets = [3, 0], sizes = [1, 128], strides = [1, 1]} : vector<9x128xf32> to vector<1x128xf32>
    %41 = vector.shape_cast %40 : vector<1x128xf32> to vector<1x1x128xf32>
    %42 = vector.extract_strided_slice %33 {offsets = [4, 0], sizes = [1, 128], strides = [1, 1]} : vector<9x128xf32> to vector<1x128xf32>
    %43 = vector.shape_cast %42 : vector<1x128xf32> to vector<1x1x128xf32>
    %44 = vector.extract_strided_slice %33 {offsets = [5, 0], sizes = [1, 128], strides = [1, 1]} : vector<9x128xf32> to vector<1x128xf32>
    %45 = vector.shape_cast %44 : vector<1x128xf32> to vector<1x1x128xf32>
    %46 = vector.extract_strided_slice %33 {offsets = [6, 0], sizes = [1, 128], strides = [1, 1]} : vector<9x128xf32> to vector<1x128xf32>
    %47 = vector.shape_cast %46 : vector<1x128xf32> to vector<1x1x128xf32>
    %48 = vector.extract_strided_slice %33 {offsets = [7, 0], sizes = [1, 128], strides = [1, 1]} : vector<9x128xf32> to vector<1x128xf32>
    %49 = vector.shape_cast %48 : vector<1x128xf32> to vector<1x1x128xf32>
    %50 = vector.extract_strided_slice %33 {offsets = [8, 0], sizes = [1, 128], strides = [1, 1]} : vector<9x128xf32> to vector<1x128xf32>
    %51 = vector.shape_cast %50 : vector<1x128xf32> to vector<1x1x128xf32>
    %52 = vector.extract_strided_slice %32 {offsets = [0, 0, 0], sizes = [16, 16, 128], strides = [1, 1, 1]} : vector<18x18x128xf32> to vector<16x16x128xf32>
    %53 = vector.broadcast %35 : vector<1x1x128xf32> to vector<16x16x128xf32>
    %54 = arith.mulf %52, %53 : vector<16x16x128xf32>
    %55 = vector.extract_strided_slice %32 {offsets = [0, 1, 0], sizes = [16, 16, 128], strides = [1, 1, 1]} : vector<18x18x128xf32> to vector<16x16x128xf32>
    %56 = vector.broadcast %37 : vector<1x1x128xf32> to vector<16x16x128xf32>
    %57 = arith.mulf %55, %56 : vector<16x16x128xf32>
    %58 = arith.addf %54, %57 : vector<16x16x128xf32>
    %59 = vector.extract_strided_slice %32 {offsets = [0, 2, 0], sizes = [16, 16, 128], strides = [1, 1, 1]} : vector<18x18x128xf32> to vector<16x16x128xf32>
    %60 = vector.broadcast %39 : vector<1x1x128xf32> to vector<16x16x128xf32>
    %61 = arith.mulf %59, %60 : vector<16x16x128xf32>
    %62 = arith.addf %58, %61 : vector<16x16x128xf32>
    %63 = vector.extract_strided_slice %32 {offsets = [1, 0, 0], sizes = [16, 16, 128], strides = [1, 1, 1]} : vector<18x18x128xf32> to vector<16x16x128xf32>
    %64 = vector.broadcast %41 : vector<1x1x128xf32> to vector<16x16x128xf32>
    %65 = arith.mulf %63, %64 : vector<16x16x128xf32>
    %66 = arith.addf %62, %65 : vector<16x16x128xf32>
    %67 = vector.extract_strided_slice %32 {offsets = [1, 1, 0], sizes = [16, 16, 128], strides = [1, 1, 1]} : vector<18x18x128xf32> to vector<16x16x128xf32>
    %68 = vector.broadcast %43 : vector<1x1x128xf32> to vector<16x16x128xf32>
    %69 = arith.mulf %67, %68 : vector<16x16x128xf32>
    %70 = arith.addf %66, %69 : vector<16x16x128xf32>
    %71 = vector.extract_strided_slice %32 {offsets = [1, 2, 0], sizes = [16, 16, 128], strides = [1, 1, 1]} : vector<18x18x128xf32> to vector<16x16x128xf32>
    %72 = vector.broadcast %45 : vector<1x1x128xf32> to vector<16x16x128xf32>
    %73 = arith.mulf %71, %72 : vector<16x16x128xf32>
    %74 = arith.addf %70, %73 : vector<16x16x128xf32>
    %75 = vector.extract_strided_slice %32 {offsets = [2, 0, 0], sizes = [16, 16, 128], strides = [1, 1, 1]} : vector<18x18x128xf32> to vector<16x16x128xf32>
    %76 = vector.broadcast %47 : vector<1x1x128xf32> to vector<16x16x128xf32>
    %77 = arith.mulf %75, %76 : vector<16x16x128xf32>
    %78 = arith.addf %74, %77 : vector<16x16x128xf32>
    %79 = vector.extract_strided_slice %32 {offsets = [2, 1, 0], sizes = [16, 16, 128], strides = [1, 1, 1]} : vector<18x18x128xf32> to vector<16x16x128xf32>
    %80 = vector.broadcast %49 : vector<1x1x128xf32> to vector<16x16x128xf32>
    %81 = arith.mulf %79, %80 : vector<16x16x128xf32>
    %82 = arith.addf %78, %81 : vector<16x16x128xf32>
    %83 = vector.extract_strided_slice %32 {offsets = [2, 2, 0], sizes = [16, 16, 128], strides = [1, 1, 1]} : vector<18x18x128xf32> to vector<16x16x128xf32>
    %84 = vector.broadcast %51 : vector<1x1x128xf32> to vector<16x16x128xf32>
    %85 = arith.mulf %83, %84 : vector<16x16x128xf32>
    %86 = arith.addf %82, %85 : vector<16x16x128xf32>
    %c0_13 = arith.constant 0 : index
    %c0_14 = arith.constant 0 : index
    %87 = vector.load %arg6[%c0_13, %c0_14] : memref<1x128xf32, #tpu.memory_space<vmem>>, vector<1x128xf32>
    %88 = vector.shape_cast %87 : vector<1x128xf32> to vector<1x1x128xf32>
    %89 = vector.broadcast %88 : vector<1x1x128xf32> to vector<16x16x128xf32>
    %90 = arith.addf %86, %89 : vector<16x16x128xf32>
    %cst_15 = arith.constant 0.000000e+00 : f32
    %91 = vector.broadcast %cst_15 : f32 to vector<16x16x128xf32>
    %92 = arith.maximumf %90, %91 : vector<16x16x128xf32>
    %cst_16 = arith.constant 6.000000e+00 : f32
    %93 = vector.broadcast %cst_16 : f32 to vector<16x16x128xf32>
    %94 = arith.minimumf %92, %93 : vector<16x16x128xf32>
    %95 = vector.shape_cast %94 : vector<16x16x128xf32> to vector<256x128xf32>
    %96 = arith.truncf %95 : vector<256x128xf32> to vector<256x128xbf16>
    %c0_17 = arith.constant 0 : index
    %c0_18 = arith.constant 0 : index
    %97 = vector.load %arg7[%c0_17, %c0_18] : memref<128x128xbf16, #tpu.memory_space<vmem>>, vector<128x128xbf16>
    %cst_19 = arith.constant dense<0.000000e+00> : vector<256x128xf32>
    %98 = tpu.matmul %96, %97, %cst_19 {dimension_numbers = #tpu.dot_dimension_numbers<[1], [0], [0], [1], [0, 0, 1, 1], [], []>} : vector<256x128xbf16>, vector<128x128xbf16>, vector<256x128xf32> -> vector<256x128xf32>
    %c0_20 = arith.constant 0 : index
    %c0_21 = arith.constant 0 : index
    %99 = vector.load %arg8[%c0_20, %c0_21] : memref<1x128xf32, #tpu.memory_space<vmem>>, vector<1x128xf32>
    %100 = vector.broadcast %99 : vector<1x128xf32> to vector<256x128xf32>
    %101 = arith.addf %98, %100 : vector<256x128xf32>
    %102 = vector.shape_cast %101 : vector<256x128xf32> to vector<16x16x128xf32>
    %103 = vector.extract_strided_slice %4 {offsets = [1, 1, 0], sizes = [16, 16, 128], strides = [1, 1, 1]} : vector<18x18x128xbf16> to vector<16x16x128xbf16>
    %104 = arith.extf %103 : vector<16x16x128xbf16> to vector<16x16x128xf32>
    %105 = arith.addf %102, %104 : vector<16x16x128xf32>
    %106 = arith.truncf %105 : vector<16x16x128xf32> to vector<16x16x128xbf16>
    %c0_22 = arith.constant 0 : index
    %c0_23 = arith.constant 0 : index
    %c0_24 = arith.constant 0 : index
    %c0_25 = arith.constant 0 : index
    %107 = vector.load %arg9[%c0_22, %c0_23, %c0_24, %c0_25] : memref<1x16x16x128xbf16, #tpu.memory_space<vmem>>, vector<1x16x16x128xbf16>
    %108 = vector.shape_cast %107 : vector<1x16x16x128xbf16> to vector<16x16x128xbf16>
    %109 = vector.shape_cast %106 : vector<16x16x128xbf16> to vector<1x16x16x128xbf16>
    tpu.vector_store %arg9[%c0_22, %c0_23, %c0_24, %c0_25], %109 {strides = array<i32>} : memref<1x16x16x128xbf16, #tpu.memory_space<vmem>>, vector<1x16x16x128xbf16>,
    return
  }
  func.func @transform_0(%arg0: i32, %arg1: i32) -> (i32, i32, i32, i32) {
    %c0_i32 = arith.constant 0 : i32
    %c0_i32_0 = arith.constant 0 : i32
    %c0_i32_1 = arith.constant 0 : i32
    %c0_i32_2 = arith.constant 0 : i32
    return %arg0, %c0_i32, %c0_i32_0, %c0_i32_1 : i32, i32, i32, i32
  }
  func.func @transform_1(%arg0: i32, %arg1: i32) -> (i32, i32) {
    %c0_i32 = arith.constant 0 : i32
    %c0_i32_0 = arith.constant 0 : i32
    %c0_i32_1 = arith.constant 0 : i32
    return %c0_i32, %c0_i32_0 : i32, i32
  }
  func.func @transform_2(%arg0: i32, %arg1: i32) -> (i32, i32) {
    %c0_i32 = arith.constant 0 : i32
    %c0_i32_0 = arith.constant 0 : i32
    %c0_i32_1 = arith.constant 0 : i32
    return %c0_i32, %c0_i32_0 : i32, i32
  }
  func.func @transform_3(%arg0: i32, %arg1: i32) -> (i32, i32) {
    %c0_i32 = arith.constant 0 : i32
    %c0_i32_0 = arith.constant 0 : i32
    %c0_i32_1 = arith.constant 0 : i32
    return %c0_i32, %c0_i32_0 : i32, i32
  }
  func.func @transform_4(%arg0: i32, %arg1: i32) -> (i32, i32) {
    %c0_i32 = arith.constant 0 : i32
    %c0_i32_0 = arith.constant 0 : i32
    %c0_i32_1 = arith.constant 0 : i32
    return %c0_i32, %c0_i32_0 : i32, i32
  }
  func.func @transform_5(%arg0: i32, %arg1: i32) -> (i32, i32) {
    %c0_i32 = arith.constant 0 : i32
    %c0_i32_0 = arith.constant 0 : i32
    %c0_i32_1 = arith.constant 0 : i32
    return %c0_i32, %c0_i32_0 : i32, i32
  }
  func.func @transform_6(%arg0: i32, %arg1: i32) -> (i32, i32) {
    %c0_i32 = arith.constant 0 : i32
    %c0_i32_0 = arith.constant 0 : i32
    %c0_i32_1 = arith.constant 0 : i32
    return %c0_i32, %c0_i32_0 : i32, i32
  }
  func.func @transform_7(%arg0: i32, %arg1: i32) -> (i32, i32, i32, i32) {
    %c0_i32 = arith.constant 0 : i32
    %c0_i32_0 = arith.constant 0 : i32
    %c0_i32_1 = arith.constant 0 : i32
    return %arg0, %arg1, %c0_i32, %c0_i32_0 : i32, i32, i32, i32
  }
}

</mosaic_0001>

<bundles_post_ra>
// kernel: _lambda_.1
= control target key start
LH: loop header
LB: loop body
LE: loop exit
PB: predicated region body
PF: predicated region fallthrough
CT: control target
= control target key end

     0   :  { %s4865_s24 = smov 0   ;;  %s4867_s25 = smov 0   ;;  %s7029_s0 = inlined_call_operand.vmem [shape: bf16[2,18,18,128], index: 0, kind: input, shape index: {}]   ;;  %s7030_s1 = inlined_call_operand.vmem [shape: bf16[128,128], index: 1, kind: input, shape index: {}]   ;;  %s7031_s2 = inlined_call_operand.vmem [shape: f32[1,128], index: 2, kind: input, shape index: {}]   ;;  %s7032_s3 = inlined_call_operand.vmem [shape: f32[9,128], index: 3, kind: input, shape index: {}]   ;;  %s7033_s4 = inlined_call_operand.vmem [shape: f32[1,128], index: 4, kind: input, shape index: {}]   ;;  %s7034_s5 = inlined_call_operand.vmem [shape: bf16[128,128], index: 5, kind: input, shape index: {}]   ;;  %s7035_s6 = inlined_call_operand.vmem [shape: f32[1,128], index: 6, kind: input, shape index: {}]   ;;  %s7036_s7 = inlined_call_operand.vmem [shape: bf16[2,16,16,128], index: 7, kind: output, shape index: {}]  }
   0x1   :  { %s4869_s26 = smov 0  }
   0x2 LB: > { %s29_s27 = sadd.s32 1, %s4819_s25  ;;  %p4508_p0 = scmp.ge.s32.totalorder %s4823_s26, 1  ;;  %s4823_s26 = sphi %s4869_s26, %s17_s26   ;;  %s4819_s25 = sphi %s4867_s25, %s7056_s25   ;;  %s4815_s24 = sphi %s4865_s24, %s7055_s24  }
   0x3   : > { %p31_p1 = scmp.ge.s32.totalorder %s29_s27, 2  ;;  %p251_p2 = scmp.lt.s32.totalorder %s4823_s26, 3 }
   0x5   : > { %s7058_s27 = smov (%p31_p1, %s29_s27), 0  ;;  %p252_p3 = pnand %p4508_p0, %p251_p2 }
   0x6   : > { %p288_p4 = scmp.lt.s32.totalorder (!%p252_p3), %s4815_s24, 1 }
   0x7   : > { %255 = sbr.rel (%p252_p3) target bundleno = 880 (0x370), region = 48 }
   0xc   : > { %v4586_v0 = vld [vmem:[%s7030_s1 + $0x38] sm:$0xff]  ;;  %v4585_v1 = vld [vmem:[%s7030_s1 + $0x30] sm:$0xff]  ;;  %s7060_s24 = smov (!%p288_p4, %s4815_s24), 1  ;;  %v4584_v2 = vld [vmem:[%s7030_s1 + $0x28] sm:$0xff]  ;;  %vm470_vm0 = vcmask 1040384   ;;  %vm474_vm1 = vcmask 1041409  }
   0xd   : > { %1347 = vmatpush.bf16.msra.mxu0 %v4586_v0  ;;  %4690 = vmatpush.bf16.msra.mxu2 %v4586_v0  ;;  %s4714_s9 = smul.u32 216, %s7060_s24  ;;  %vm478_vm2 = vcmask 1042434   ;;  %vm482_vm3 = vcmask 1043459   ;;  %v4583_v7 = vld [vmem:[%s7030_s1 + $0x20] sm:$0xff]  ;;  %v4582_v21 = vld [vmem:[%s7030_s1 + $0x18] sm:$0xff]  ;;  %v4581_v26 = vld [vmem:[%s7030_s1 + $0x10] sm:$0xff] }
   0xe   : > { %4691 = vmatpush.bf16.msra.mxu3 %v4586_v0  ;;  %v4580_v31 = vld [vmem:[%s7030_s1 + $0x8] sm:$0xff]  ;;  %v4579_v40 = vld [vmem:[%s7030_s1] sm:$0xff]  ;;  %vm2357_vm6 = vcmask 1046528   ;;  %vm2599_vm7 = vcmask 1045504   ;;  %s4578_s21 = sshll.u32 %s7060_s24, 7 }
   0xf   : > { %s4898_s14 = scalar_lea.vmem %s7029_s0, %s4714_s9  ;;  %s6166_s23 = scalar_lea.vmem %s7036_s7, %s4578_s21 }
  0x10   : > { %v308_v3 = vld [vmem:[%s4898_s14] sm:$0xf]  ;;  %v309_v4 = vld [vmem:[%s4898_s14 + $0x4] sm:$0xf]  ;;  %v311_v23 = vld [vmem:[%s4898_s14 + $0xc] sm:$0xf] }
  0x11   : > { %1348 = vmatpush.bf16.msra.mxu0 %v4585_v1  ;;  %4692 = vmatpush.bf16.msra.mxu2 %v4585_v1  ;;  %v416_v5 = vrot.slane %v308_v3, 3  ;;  %v417_v6 = vrot.slane %v309_v4, 3  ;;  %v310_v24 = vld [vmem:[%s4898_s14 + $0x8] sm:$0x1]  ;;  %v419_v25 = vrot.slane %v311_v23, 3 }
  0x12   : > { %4693 = vmatpush.bf16.msra.mxu3 %v4585_v1  ;;  %v312_v27 = vld [vmem:[%s4898_s14 + $0x10] sm:$0xf]  ;;  %v418_v28 = vrot.slane %v310_v24, 3  ;;  %v314_v46 = vld [vmem:[%s4898_s14 + $0x18] sm:$0xf] }
  0x13   : > { %v473_v8 = vsel %vm470_vm0, %v308_v3, %v416_v5  ;;  %v475_v9 = vsel %vm474_vm1, %v308_v3, %v416_v5  ;;  %v479_v10 = vsel %vm478_vm2, %v308_v3, %v416_v5  ;;  %v483_v11 = vsel %vm482_vm3, %v308_v3, %v416_v5  ;;  %v313_v47 = vld [vmem:[%s4898_s14 + $0x14] sm:$0x1]  ;;  %v315_v49 = vld [vmem:[%s4898_s14 + $0x1c] sm:$0xf]  ;;  %v316_v3 = vld [vmem:[%s4898_s14 + $0x20] sm:$0x1] }
  0x14   : > { %v477_v12 = vrot.slane %v475_v9, 1  ;;  %v481_v13 = vrot.slane %v479_v10, 2  ;;  %v485_v14 = vrot.slane %v483_v11, 3  ;;  %v488_v15 = vsel %vm470_vm0, %v309_v4, %v417_v6  ;;  %980 = vst [vmem:[#allocation1] ss:$9 sm:$0xff] %v473_v8 }
  0x15   : > { %1349 = vmatpush.bf16.msra.mxu0 %v4584_v2  ;;  %4694 = vmatpush.bf16.msra.mxu2 %v4584_v2  ;;  %v489_v16 = vsel %vm474_vm1, %v309_v4, %v417_v6  ;;  %v492_v17 = vsel %vm478_vm2, %v309_v4, %v417_v6  ;;  %v495_v18 = vsel %vm482_vm3, %v309_v4, %v417_v6  ;;  %v420_v29 = vrot.slane %v312_v27, 3  ;;  %v318_v9 = vld [vmem:[%s4898_s14 + $0x28] sm:$0xf] }
  0x16   : > { %4695 = vmatpush.bf16.msra.mxu3 %v4584_v2  ;;  %991 = vst [vmem:[#allocation1 + $0x4] ss:$9 sm:$0xff] %v488_v15  ;;  %v491_v19 = vrot.slane %v489_v16, 1  ;;  %v494_v20 = vrot.slane %v492_v17, 2  ;;  %v497_v22 = vrot.slane %v495_v18, 3  ;;  %v504_v30 = vsel %vm474_vm1, %v311_v23, %v419_v25 }
  0x17   : > { %983 = vst [vmem:[#allocation1 + $0x1] ss:$9 sm:$0xff] %v477_v12  ;;  %v507_v32 = vsel %vm478_vm2, %v311_v23, %v419_v25  ;;  %v500_v33 = vsel %vm470_vm0, %v310_v24, %v418_v28  ;;  %v510_v34 = vsel %vm482_vm3, %v311_v23, %v419_v25  ;;  %v503_v35 = vsel %vm470_vm0, %v311_v23, %v419_v25  ;;  %v317_v2 = vld [vmem:[%s4898_s14 + $0x24] sm:$0xf]  ;;  %v319_v23 = vld [vmem:[%s4898_s14 + $0x2c] sm:$0x1] }
  0x18   : > { %986 = vst [vmem:[#allocation1 + $0x2] ss:$9 sm:$0xff] %v481_v13  ;;  %v506_v36 = vrot.slane %v504_v30, 1  ;;  %v509_v38 = vrot.slane %v507_v32, 2  ;;  %v516_v39 = vsel %vm474_vm1, %v312_v27, %v420_v29  ;;  %v512_v41 = vrot.slane %v510_v34, 3 }
  0x19   : > { %1350 = vmatpush.bf16.msra.mxu0 %v4583_v7  ;;  %989 = vst [vmem:[#allocation1 + $0x3] ss:$9 sm:$0xff] %v485_v14  ;;  %4696 = vmatpush.bf16.msra.mxu2 %v4583_v7  ;;  %v519_v42 = vsel %vm478_vm2, %v312_v27, %v420_v29  ;;  %v515_v43 = vsel %vm470_vm0, %v312_v27, %v420_v29  ;;  %v518_v44 = vrot.slane %v516_v39, 1  ;;  %v422_v48 = vrot.slane %v314_v46, 3 }
  0x1a   : > { %4697 = vmatpush.bf16.msra.mxu3 %v4583_v7  ;;  %994 = vst [vmem:[#allocation1 + $0x5] ss:$9 sm:$0xff] %v491_v19  ;;  %v521_v45 = vrot.slane %v519_v42, 2  ;;  %v522_v50 = vsel %vm482_vm3, %v312_v27, %v420_v29  ;;  %v421_v51 = vrot.slane %v313_v47, 3  ;;  %v423_v52 = vrot.slane %v315_v49, 3 }
  0x1b   : > { %997 = vst [vmem:[#allocation1 + $0x6] ss:$9 sm:$0xff] %v494_v20  ;;  %v524_v53 = vrot.slane %v522_v50, 3  ;;  %v531_v54 = vsel %vm474_vm1, %v314_v46, %v422_v48  ;;  %v534_v55 = vsel %vm478_vm2, %v314_v46, %v422_v48  ;;  %v537_v57 = vsel %vm482_vm3, %v314_v46, %v422_v48 }
  0x1c   : > { %1000 = vst [vmem:[#allocation1 + $0x7] ss:$9 sm:$0xff] %v497_v22  ;;  %v527_v56 = vsel %vm470_vm0, %v313_v47, %v421_v51  ;;  %v530_v59 = vsel %vm470_vm0, %v314_v46, %v422_v48  ;;  %v533_v60 = vrot.slane %v531_v54, 1  ;;  %v536_v61 = vrot.slane %v534_v55, 2  ;;  %v320_v22 = vld [vmem:[%s4898_s14 + $0x30] sm:$0xf] }
  0x1d   : > { %1351 = vmatpush.bf16.msra.mxu0 %v4582_v21  ;;  %4698 = vmatpush.bf16.msra.mxu2 %v4582_v21  ;;  %v543_v62 = vsel %vm474_vm1, %v315_v49, %v423_v52  ;;  %v539_v63 = vrot.slane %v537_v57, 3  ;;  %v542_v0 = vsel %vm470_vm0, %v315_v49, %v423_v52  ;;  %v425_v4 = vrot.slane %v317_v2, 3 }
  0x1e   : > { %4699 = vmatpush.bf16.msra.mxu3 %v4582_v21  ;;  %v545_v1 = vrot.slane %v543_v62, 1  ;;  %v546_v5 = vsel %vm478_vm2, %v315_v49, %v423_v52  ;;  %v549_v6 = vsel %vm482_vm3, %v315_v49, %v423_v52  ;;  %v424_v7 = vrot.slane %v316_v3, 3 }
  0x1f   : > { %v548_v8 = vrot.slane %v546_v5, 2  ;;  %v551_v10 = vrot.slane %v549_v6, 3  ;;  %v558_v11 = vsel %vm474_vm1, %v317_v2, %v425_v4  ;;  %v561_v12 = vsel %vm478_vm2, %v317_v2, %v425_v4 }
  0x20   : > { %v554_v14 = vsel %vm470_vm0, %v316_v3, %v424_v7  ;;  %v564_v15 = vsel %vm482_vm3, %v317_v2, %v425_v4  ;;  %v426_v16 = vrot.slane %v318_v9, 3  ;;  %v557_v17 = vsel %vm470_vm0, %v317_v2, %v425_v4 }
  0x21   : > { %1352 = vmatpush.bf16.msra.mxu0 %v4581_v26  ;;  %4700 = vmatpush.bf16.msra.mxu2 %v4581_v26  ;;  %v560_v18 = vrot.slane %v558_v11, 1  ;;  %v563_v19 = vrot.slane %v561_v12, 2  ;;  %v566_v20 = vrot.slane %v564_v15, 3  ;;  %v428_v25 = vrot.slane %v320_v22, 3 }
  0x22   : > { %4701 = vmatpush.bf16.msra.mxu3 %v4581_v26  ;;  %v569_v21 = vsel %vm470_vm0, %v318_v9, %v426_v16  ;;  %v570_v24 = vsel %vm474_vm1, %v318_v9, %v426_v16  ;;  %v573_v26 = vsel %vm478_vm2, %v318_v9, %v426_v16  ;;  %v576_v27 = vsel %vm482_vm3, %v318_v9, %v426_v16 }
  0x23   : > { %v1001_v37 = vld [vmem:[#allocation1] sm:$0xff]  ;;  %v427_v28 = vrot.slane %v319_v23, 3  ;;  %v572_v29 = vrot.slane %v570_v24, 1  ;;  %v575_v30 = vrot.slane %v573_v26, 2  ;;  %v585_v32 = vsel %vm474_vm1, %v320_v22, %v428_v25  ;;  %v329_v24 = vld [vmem:[%s4898_s14 + $0x54] sm:$0xf] }
  0x24   : > { %1002 = vst [vmem:[#allocation1] ss:$9 sm:$0xff] %v500_v33  ;;  %v588_v34 = vsel %vm478_vm2, %v320_v22, %v428_v25 }
  0x25   : > { %1353 = vmatpush.bf16.msra.mxu0 %v4580_v31  ;;  %1003 = vst [vmem:[#allocation1 + $0x1] ss:$9 sm:$0xff] %v503_v35  ;;  %4702 = vmatpush.bf16.msra.mxu2 %v4580_v31  ;;  %v581_v35 = vsel %vm470_vm0, %v319_v23, %v427_v28  ;;  %v590_v39 = vrot.slane %v588_v34, 2 }
  0x26   : > { %4703 = vmatpush.bf16.msra.mxu3 %v4580_v31  ;;  %1005 = vst [vmem:[#allocation1 + $0x2] ss:$9 sm:$0xff] %v506_v36  ;;  %v578_v31 = vrot.slane %v576_v27, 3  ;;  %v591_v36 = vsel %vm482_vm3, %v320_v22, %v428_v25 }
  0x27   : > { %1007 = vst [vmem:[#allocation1 + $0x3] ss:$9 sm:$0xff] %v509_v38  ;;  %v587_v38 = vrot.slane %v585_v32, 1  ;;  %v437_v32 = vrot.slane %v329_v24, 3 }
  0x28   : > { %1009 = vst [vmem:[#allocation1 + $0x4] ss:$9 sm:$0xff] %v512_v41  ;;  %v593_v41 = vrot.slane %v591_v36, 3 }
  0x29   : > { %1354 = vmatpush.bf16.msra.mxu0 %v4579_v40  ;;  %1010 = vst [vmem:[#allocation1 + $0x5] ss:$9 sm:$0xff] %v515_v43  ;;  %4704 = vmatpush.bf16.msra.mxu2 %v4579_v40  ;;  %v323_v43 = vld [vmem:[%s4898_s14 + $0x3c] sm:$0xf]  ;;  %v665_v36 = vsel %vm470_vm0, %v329_v24, %v437_v32 }
  0x2a   : > { %4705 = vmatpush.bf16.msra.mxu3 %v4579_v40  ;;  %1012 = vst [vmem:[#allocation1 + $0x6] ss:$9 sm:$0xff] %v518_v44  ;;  %v321_v40 = vld [vmem:[%s4898_s14 + $0x34] sm:$0xf]  ;;  %v322_v44 = vld [vmem:[%s4898_s14 + $0x38] sm:$0x1] }
  0x2b   : > { %1014 = vst [vmem:[#allocation1 + $0x7] ss:$9 sm:$0xff] %v521_v45  ;;  %v429_v42 = vrot.slane %v321_v40, 3  ;;  %v431_v46 = vrot.slane %v323_v43, 3  ;;  %v430_v49 = vrot.slane %v322_v44, 3 }
  0x2c   : > { %1355 = vmatmul.bf16.vlgmr.msra.gmra.mxu0 %v1001_v37  ;;  %v584_v37 = vsel %vm470_vm0, %v320_v22, %v428_v25 }
  0x2d   : > { %v597_v45 = vsel %vm474_vm1, %v321_v40, %v429_v42  ;;  %v600_v47 = vsel %vm478_vm2, %v321_v40, %v429_v42  ;;  %v603_v48 = vsel %vm482_vm3, %v321_v40, %v429_v42  ;;  %v596_v50 = vsel %vm470_vm0, %v321_v40, %v429_v42 }
  0x2e   : > { %v599_v51 = vrot.slane %v597_v45, 1  ;;  %v602_v52 = vrot.slane %v600_v47, 2  ;;  %v605_v54 = vrot.slane %v603_v48, 3  ;;  %v612_v55 = vsel %vm474_vm1, %v323_v43, %v431_v46 }
  0x2f   : > { %v608_v57 = vsel %vm470_vm0, %v322_v44, %v430_v49  ;;  %v669_v40 = vsel %vm478_vm2, %v329_v24, %v437_v32 }
  0x30   : > { %v671_v44 = vrot.slane %v669_v40, 2 }
  0x32   : > { %v1015_v58 = vld [vmem:[#allocation1] sm:$0xff] }
  0x33   : > { %1017 = vst [vmem:[#allocation1] ss:$9 sm:$0xff] %v524_v53 }
  0x34   : > { %1018 = vst [vmem:[#allocation1 + $0x1] ss:$9 sm:$0xff] %v527_v56  ;;  %v615_v56 = vsel %vm478_vm2, %v323_v43, %v431_v46 }
  0x35   : > { %1019 = vst [vmem:[#allocation1 + $0x2] ss:$9 sm:$0xff] %v530_v59  ;;  %v614_v59 = vrot.slane %v612_v55, 1 }
  0x36   : > { %1021 = vst [vmem:[#allocation1 + $0x3] ss:$9 sm:$0xff] %v533_v60  ;;  %v617_v60 = vrot.slane %v615_v56, 2 }
  0x37   : > { %1023 = vst [vmem:[#allocation1 + $0x4] ss:$9 sm:$0xff] %v536_v61  ;;  %v324_v61 = vld [vmem:[%s4898_s14 + $0x40] sm:$0xf] }
  0x38   : > { %1025 = vst [vmem:[#allocation1 + $0x5] ss:$9 sm:$0xff] %v539_v63  ;;  %v432_v62 = vrot.slane %v324_v61, 3  ;;  %v326_v63 = vld [vmem:[%s4898_s14 + $0x48] sm:$0xf] }
  0x39   : > { %1026 = vst [vmem:[#allocation1 + $0x6] ss:$9 sm:$0xff] %v542_v0  ;;  %v618_v0 = vsel %vm482_vm3, %v323_v43, %v431_v46  ;;  %v434_v3 = vrot.slane %v326_v63, 3 }
  0x3a   : > { %1028 = vst [vmem:[#allocation1 + $0x7] ss:$9 sm:$0xff] %v545_v1  ;;  %v325_v1 = vld [vmem:[%s4898_s14 + $0x44] sm:$0x1]  ;;  %v624_v2 = vsel %vm474_vm1, %v324_v61, %v432_v62  ;;  %v620_v4 = vrot.slane %v618_v0, 3  ;;  %v627_v5 = vsel %vm478_vm2, %v324_v61, %v432_v62  ;;  %v630_v6 = vsel %vm482_vm3, %v324_v61, %v432_v62 }
  0x3b   : > { %v433_v7 = vrot.slane %v325_v1, 3  ;;  %v626_v9 = vrot.slane %v624_v2, 1  ;;  %v629_v11 = vrot.slane %v627_v5, 2  ;;  %v632_v12 = vrot.slane %v630_v6, 3 }
  0x3c   : > { %1360 = vmatmul.bf16.gmra.mxu0 %v1015_v58  ;;  %v611_v58 = vsel %vm470_vm0, %v323_v43, %v431_v46  ;;  %v638_v15 = vsel %vm470_vm0, %v326_v63, %v434_v3  ;;  %v331_v43 = vld [vmem:[%s4898_s14 + $0x5c] sm:$0x1] }
  0x41   : > { %v1029_v13 = vld [vmem:[#allocation1] sm:$0xff] }
  0x42   : > { %1031 = vst [vmem:[#allocation1] ss:$9 sm:$0xff] %v548_v8  ;;  %v623_v8 = vsel %vm470_vm0, %v324_v61, %v432_v62 }
  0x43   : > { %1033 = vst [vmem:[#allocation1 + $0x1] ss:$9 sm:$0xff] %v551_v10 }
  0x44   : > { %1034 = vst [vmem:[#allocation1 + $0x2] ss:$9 sm:$0xff] %v554_v14  ;;  %v635_v14 = vsel %vm470_vm0, %v325_v1, %v433_v7 }
  0x45   : > { %1035 = vst [vmem:[#allocation1 + $0x3] ss:$9 sm:$0xff] %v557_v17  ;;  %v327_v17 = vld [vmem:[%s4898_s14 + $0x4c] sm:$0xf] }
  0x46   : > { %1037 = vst [vmem:[#allocation1 + $0x4] ss:$9 sm:$0xff] %v560_v18  ;;  %v435_v18 = vrot.slane %v327_v17, 3 }
  0x47   : > { %1039 = vst [vmem:[#allocation1 + $0x5] ss:$9 sm:$0xff] %v563_v19  ;;  %v642_v19 = vsel %vm478_vm2, %v326_v63, %v434_v3 }
  0x48   : > { %1041 = vst [vmem:[#allocation1 + $0x6] ss:$9 sm:$0xff] %v566_v20  ;;  %v645_v20 = vsel %vm482_vm3, %v326_v63, %v434_v3  ;;  %v644_v22 = vrot.slane %v642_v19, 2  ;;  %v651_v23 = vsel %vm474_vm1, %v327_v17, %v435_v18  ;;  %v654_v26 = vsel %vm478_vm2, %v327_v17, %v435_v18 }
  0x49   : > { %1042 = vst [vmem:[#allocation1 + $0x7] ss:$9 sm:$0xff] %v569_v21  ;;  %v328_v21 = vld [vmem:[%s4898_s14 + $0x50] sm:$0x1]  ;;  %v647_v25 = vrot.slane %v645_v20, 3  ;;  %v657_v27 = vsel %vm482_vm3, %v327_v17, %v435_v18 }
  0x4a   : > { %v436_v28 = vrot.slane %v328_v21, 3  ;;  %v659_v34 = vrot.slane %v657_v27, 3 }
  0x4c   : > { %1365 = vmatmul.bf16.gmra.mxu0 %v1029_v13  ;;  %v639_v13 = vsel %vm474_vm1, %v326_v63, %v434_v3 }
  0x4d   : > { %v641_v16 = vrot.slane %v639_v13, 1 }
  0x50   : > { %v1043_v33 = vld [vmem:[#allocation1] sm:$0xff] }
  0x51   : > { %1045 = vst [vmem:[#allocation1] ss:$9 sm:$0xff] %v572_v29  ;;  %v650_v29 = vsel %vm470_vm0, %v327_v17, %v435_v18 }
  0x52   : > { %1047 = vst [vmem:[#allocation1 + $0x1] ss:$9 sm:$0xff] %v575_v30  ;;  %v653_v30 = vrot.slane %v651_v23, 1 }
  0x53   : > { %1049 = vst [vmem:[#allocation1 + $0x2] ss:$9 sm:$0xff] %v578_v31 }
  0x54   : > { %1050 = vst [vmem:[#allocation1 + $0x3] ss:$9 sm:$0xff] %v581_v35  ;;  %v662_v35 = vsel %vm470_vm0, %v328_v21, %v436_v28 }
  0x55   : > { %1051 = vst [vmem:[#allocation1 + $0x4] ss:$9 sm:$0xff] %v584_v37  ;;  %v330_v37 = vld [vmem:[%s4898_s14 + $0x58] sm:$0xf] }
  0x56   : > { %1053 = vst [vmem:[#allocation1 + $0x5] ss:$9 sm:$0xff] %v587_v38  ;;  %v438_v38 = vrot.slane %v330_v37, 3 }
  0x57   : > { %1055 = vst [vmem:[#allocation1 + $0x6] ss:$9 sm:$0xff] %v590_v39  ;;  %v666_v39 = vsel %vm474_vm1, %v329_v24, %v437_v32 }
  0x58   : > { %1057 = vst [vmem:[#allocation1 + $0x7] ss:$9 sm:$0xff] %v593_v41  ;;  %v672_v41 = vsel %vm482_vm3, %v329_v24, %v437_v32  ;;  %v668_v42 = vrot.slane %v666_v39, 1  ;;  %v678_v45 = vsel %vm474_vm1, %v330_v37, %v438_v38  ;;  %v681_v47 = vsel %vm478_vm2, %v330_v37, %v438_v38  ;;  %v337_v32 = vld [vmem:[%s4898_s14 + $0x74] sm:$0x1] }
  0x59   : > { %v674_v46 = vrot.slane %v672_v41, 3  ;;  %v684_v48 = vsel %vm482_vm3, %v330_v37, %v438_v38 }
  0x5a   : > { %v686_v55 = vrot.slane %v684_v48, 3 }
  0x5c   : > { %1370 = vmatmul.bf16.gmra.mxu0 %v1043_v33  ;;  %v656_v33 = vrot.slane %v654_v26, 2 }
  0x5f   : > { %v1058_v53 = vld [vmem:[#allocation1] sm:$0xff] }
  0x60   : > { %1059 = vst [vmem:[#allocation1] ss:$9 sm:$0xff] %v596_v50  ;;  %v439_v50 = vrot.slane %v331_v43, 3 }
  0x61   : > { %1061 = vst [vmem:[#allocation1 + $0x1] ss:$9 sm:$0xff] %v599_v51  ;;  %v677_v51 = vsel %vm470_vm0, %v330_v37, %v438_v38 }
  0x62   : > { %1063 = vst [vmem:[#allocation1 + $0x2] ss:$9 sm:$0xff] %v602_v52  ;;  %v680_v52 = vrot.slane %v678_v45, 1  ;;  %v689_v56 = vsel %vm470_vm0, %v331_v43, %v439_v50 }
  0x63   : > { %1065 = vst [vmem:[#allocation1 + $0x3] ss:$9 sm:$0xff] %v605_v54  ;;  %v332_v54 = vld [vmem:[%s4898_s14 + $0x60] sm:$0xf] }
  0x64   : > { %1066 = vst [vmem:[#allocation1 + $0x4] ss:$9 sm:$0xff] %v608_v57  ;;  %v440_v57 = vrot.slane %v332_v54, 3 }
  0x65   : > { %1067 = vst [vmem:[#allocation1 + $0x5] ss:$9 sm:$0xff] %v611_v58  ;;  %v333_v58 = vld [vmem:[%s4898_s14 + $0x64] sm:$0xf] }
  0x66   : > { %1069 = vst [vmem:[#allocation1 + $0x6] ss:$9 sm:$0xff] %v614_v59  ;;  %v441_v59 = vrot.slane %v333_v58, 3  ;;  %v696_v61 = vsel %vm478_vm2, %v332_v54, %v440_v57  ;;  %v699_v62 = vsel %vm482_vm3, %v332_v54, %v440_v57  ;;  %v692_v63 = vsel %vm470_vm0, %v332_v54, %v440_v57 }
  0x67   : > { %1071 = vst [vmem:[#allocation1 + $0x7] ss:$9 sm:$0xff] %v617_v60  ;;  %v693_v60 = vsel %vm474_vm1, %v332_v54, %v440_v57  ;;  %v698_v1 = vrot.slane %v696_v61, 2  ;;  %v701_v3 = vrot.slane %v699_v62, 3 }
  0x68   : > { %v695_v0 = vrot.slane %v693_v60, 1  ;;  %v705_v2 = vsel %vm474_vm1, %v333_v58, %v441_v59  ;;  %v711_v6 = vsel %vm482_vm3, %v333_v58, %v441_v59  ;;  %v704_v7 = vsel %vm470_vm0, %v333_v58, %v441_v59 }
  0x6c   : > { %1375 = vmatmul.bf16.gmra.mxu0 %v1058_v53  ;;  %v683_v53 = vrot.slane %v681_v47, 2 }
  0x6e   : > { %v1072_v10 = vld [vmem:[#allocation1] sm:$0xff] }
  0x6f   : > { %1074 = vst [vmem:[#allocation1] ss:$9 sm:$0xff] %v620_v4  ;;  %v708_v4 = vsel %vm478_vm2, %v333_v58, %v441_v59  ;;  %v342_v58 = vld [vmem:[%s4898_s14 + $0x88] sm:$0xf] }
  0x70   : > { %1075 = vst [vmem:[#allocation1 + $0x1] ss:$9 sm:$0xff] %v623_v8  ;;  %v707_v8 = vrot.slane %v705_v2, 1 }
  0x71   : > { %1077 = vst [vmem:[#allocation1 + $0x2] ss:$9 sm:$0xff] %v626_v9  ;;  %v710_v9 = vrot.slane %v708_v4, 2 }
  0x72   : > { %1079 = vst [vmem:[#allocation1 + $0x3] ss:$9 sm:$0xff] %v629_v11  ;;  %v335_v11 = vld [vmem:[%s4898_s14 + $0x6c] sm:$0xf] }
  0x73   : > { %1081 = vst [vmem:[#allocation1 + $0x4] ss:$9 sm:$0xff] %v632_v12  ;;  %v334_v12 = vld [vmem:[%s4898_s14 + $0x68] sm:$0x1]  ;;  %v443_v13 = vrot.slane %v335_v11, 3 }
  0x74   : > { %1082 = vst [vmem:[#allocation1 + $0x5] ss:$9 sm:$0xff] %v635_v14  ;;  %v336_v14 = vld [vmem:[%s4898_s14 + $0x70] sm:$0xf] }
  0x75   : > { %1083 = vst [vmem:[#allocation1 + $0x6] ss:$9 sm:$0xff] %v638_v15  ;;  %v442_v15 = vrot.slane %v334_v12, 3  ;;  %v720_v17 = vsel %vm474_vm1, %v335_v11, %v443_v13  ;;  %v723_v18 = vsel %vm478_vm2, %v335_v11, %v443_v13  ;;  %v726_v20 = vsel %vm482_vm3, %v335_v11, %v443_v13 }
  0x76   : > { %1085 = vst [vmem:[#allocation1 + $0x7] ss:$9 sm:$0xff] %v641_v16  ;;  %v444_v16 = vrot.slane %v336_v14, 3  ;;  %v719_v21 = vsel %vm470_vm0, %v335_v11, %v443_v13  ;;  %v725_v24 = vrot.slane %v723_v18, 2  ;;  %v728_v26 = vrot.slane %v726_v20, 3 }
  0x77   : > { %v716_v19 = vsel %vm470_vm0, %v334_v12, %v442_v15 }
  0x78   : > { %v735_v27 = vsel %vm478_vm2, %v336_v14, %v444_v16  ;;  %v731_v28 = vsel %vm470_vm0, %v336_v14, %v444_v16 }
  0x7c   : > { %1380 = vmatmul.bf16.gmra.mxu0 %v1072_v10  ;;  %v713_v10 = vrot.slane %v711_v6, 3 }
  0x7d   : > { %v1086_v31 = vld [vmem:[#allocation1] sm:$0xff] }
  0x7e   : > { %1088 = vst [vmem:[#allocation1] ss:$9 sm:$0xff] %v644_v22  ;;  %v722_v22 = vrot.slane %v720_v17, 1 }
  0x7f   : > { %1090 = vst [vmem:[#allocation1 + $0x1] ss:$9 sm:$0xff] %v647_v25  ;;  %v732_v25 = vsel %vm474_vm1, %v336_v14, %v444_v16 }
  0x80   : > { %1091 = vst [vmem:[#allocation1 + $0x2] ss:$9 sm:$0xff] %v650_v29  ;;  %v734_v29 = vrot.slane %v732_v25, 1 }
  0x81   : > { %1093 = vst [vmem:[#allocation1 + $0x3] ss:$9 sm:$0xff] %v653_v30  ;;  %v737_v30 = vrot.slane %v735_v27, 2 }
  0x82   : > { %1095 = vst [vmem:[#allocation1 + $0x4] ss:$9 sm:$0xff] %v656_v33 }
  0x83   : > { %1097 = vst [vmem:[#allocation1 + $0x5] ss:$9 sm:$0xff] %v659_v34  ;;  %v339_v34 = vld [vmem:[%s4898_s14 + $0x7c] sm:$0xf] }
  0x84   : > { %1098 = vst [vmem:[#allocation1 + $0x6] ss:$9 sm:$0xff] %v662_v35  ;;  %v738_v35 = vsel %vm482_vm3, %v336_v14, %v444_v16  ;;  %v447_v37 = vrot.slane %v339_v34, 3 }
  0x85   : > { %1099 = vst [vmem:[#allocation1 + $0x7] ss:$9 sm:$0xff] %v665_v36  ;;  %v445_v36 = vrot.slane %v337_v32, 3  ;;  %v740_v38 = vrot.slane %v738_v35, 3 }
  0x86   : > { %v759_v47 = vsel %vm474_vm1, %v339_v34, %v447_v37  ;;  %v762_v54 = vsel %vm478_vm2, %v339_v34, %v447_v37 }
  0x87   : > { %v743_v41 = vsel %vm470_vm0, %v337_v32, %v445_v36  ;;  %v761_v50 = vrot.slane %v759_v47, 1  ;;  %v764_v57 = vrot.slane %v762_v54, 2 }
  0x8c   : > { %1385 = vmatmul.bf16.gmra.mxu0 %v1086_v31  ;;  %v1100_v49 = vld [vmem:[#allocation1] sm:$0xff]  ;;  %v338_v31 = vld [vmem:[%s4898_s14 + $0x78] sm:$0xf] }
  0x8d   : > { %1102 = vst [vmem:[#allocation1] ss:$9 sm:$0xff] %v668_v42  ;;  %v446_v33 = vrot.slane %v338_v31, 3 }
  0x8e   : > { %1104 = vst [vmem:[#allocation1 + $0x1] ss:$9 sm:$0xff] %v671_v44 }
  0x8f   : > { %1106 = vst [vmem:[#allocation1 + $0x2] ss:$9 sm:$0xff] %v674_v46  ;;  %v747_v39 = vsel %vm474_vm1, %v338_v31, %v446_v33  ;;  %v750_v40 = vsel %vm478_vm2, %v338_v31, %v446_v33  ;;  %v753_v42 = vsel %vm482_vm3, %v338_v31, %v446_v33  ;;  %v746_v44 = vsel %vm470_vm0, %v338_v31, %v446_v33 }
  0x90   : > { %1107 = vst [vmem:[#allocation1 + $0x3] ss:$9 sm:$0xff] %v677_v51  ;;  %v749_v45 = vrot.slane %v747_v39, 1  ;;  %v752_v46 = vrot.slane %v750_v40, 2  ;;  %v755_v48 = vrot.slane %v753_v42, 3 }
  0x91   : > { %1109 = vst [vmem:[#allocation1 + $0x4] ss:$9 sm:$0xff] %v680_v52  ;;  %v341_v51 = vld [vmem:[%s4898_s14 + $0x84] sm:$0xf]  ;;  %v340_v52 = vld [vmem:[%s4898_s14 + $0x80] sm:$0x1] }
  0x92   : > { %1111 = vst [vmem:[#allocation1 + $0x5] ss:$9 sm:$0xff] %v683_v53  ;;  %v449_v53 = vrot.slane %v341_v51, 3 }
  0x93   : > { %1113 = vst [vmem:[#allocation1 + $0x6] ss:$9 sm:$0xff] %v686_v55  ;;  %v765_v55 = vsel %vm482_vm3, %v339_v34, %v447_v37 }
  0x94   : > { %1114 = vst [vmem:[#allocation1 + $0x7] ss:$9 sm:$0xff] %v689_v56  ;;  %v448_v56 = vrot.slane %v340_v52, 3  ;;  %v767_v59 = vrot.slane %v765_v55, 3  ;;  %v774_v60 = vsel %vm474_vm1, %v341_v51, %v449_v53  ;;  %v777_v61 = vsel %vm478_vm2, %v341_v51, %v449_v53 }
  0x95   : > { %v773_v2 = vsel %vm470_vm0, %v341_v51, %v449_v53  ;;  %v779_v4 = vrot.slane %v777_v61, 2 }
  0x9b   : > { %v1115_v5 = vld [vmem:[#allocation1] sm:$0xff] }
  0x9c   : > { %1390 = vmatmul.bf16.gmra.mxu0 %v1100_v49  ;;  %1116 = vst [vmem:[#allocation1] ss:$9 sm:$0xff] %v692_v63  ;;  %v758_v49 = vsel %vm470_vm0, %v339_v34, %v447_v37  ;;  %v770_v63 = vsel %vm470_vm0, %v340_v52, %v448_v56 }
  0x9d   : > { %1118 = vst [vmem:[#allocation1 + $0x1] ss:$9 sm:$0xff] %v695_v0  ;;  %v780_v0 = vsel %vm482_vm3, %v341_v51, %v449_v53 }
  0x9e   : > { %1120 = vst [vmem:[#allocation1 + $0x2] ss:$9 sm:$0xff] %v698_v1  ;;  %v450_v1 = vrot.slane %v342_v58, 3 }
  0x9f   : > { %1122 = vst [vmem:[#allocation1 + $0x3] ss:$9 sm:$0xff] %v701_v3  ;;  %v776_v3 = vrot.slane %v774_v60, 1 }
  0xa0   : > { %1123 = vst [vmem:[#allocation1 + $0x4] ss:$9 sm:$0xff] %v704_v7  ;;  %v785_v6 = vsel %vm470_vm0, %v342_v58, %v450_v1  ;;  %v344_v7 = vld [vmem:[%s4898_s14 + $0x90] sm:$0xf]  ;;  %v789_v11 = vsel %vm478_vm2, %v342_v58, %v450_v1  ;;  %v792_v12 = vsel %vm482_vm3, %v342_v58, %v450_v1 }
  0xa1   : > { %1125 = vst [vmem:[#allocation1 + $0x5] ss:$9 sm:$0xff] %v707_v8  ;;  %v343_v8 = vld [vmem:[%s4898_s14 + $0x8c] sm:$0x1]  ;;  %v791_v15 = vrot.slane %v789_v11, 2  ;;  %v794_v16 = vrot.slane %v792_v12, 3 }
  0xa2   : > { %1127 = vst [vmem:[#allocation1 + $0x6] ss:$9 sm:$0xff] %v710_v9  ;;  %v786_v9 = vsel %vm474_vm1, %v342_v58, %v450_v1  ;;  %v451_v13 = vrot.slane %v343_v8, 3 }
  0xa3   : > { %1129 = vst [vmem:[#allocation1 + $0x7] ss:$9 sm:$0xff] %v713_v10  ;;  %v452_v10 = vrot.slane %v344_v7, 3  ;;  %v788_v14 = vrot.slane %v786_v9, 1  ;;  %v353_v9 = vld [vmem:[%s4898_s14 + $0xb4] sm:$0xf] }
  0xa4   : > { %v797_v20 = vsel %vm470_vm0, %v343_v8, %v451_v13 }
  0xa5   : > { %v801_v17 = vsel %vm474_vm1, %v344_v7, %v452_v10 }
  0xaa   : > { %v1130_v23 = vld [vmem:[#allocation1] sm:$0xff] }
  0xab   : > { %1400 = vmatmul.bf16.vlgmr.msra.gmra.mxu2 %v1130_v23  ;;  %1131 = vst [vmem:[#allocation1] ss:$9 sm:$0xff] %v716_v19  ;;  %v804_v19 = vsel %vm478_vm2, %v344_v7, %v452_v10  ;;  %v803_v23 = vrot.slane %v801_v17, 1  ;;  %v461_v17 = vrot.slane %v353_v9, 3 }
  0xac   : > { %1395 = vmatmul.bf16.gmra.mxu0 %v1115_v5  ;;  %1132 = vst [vmem:[#allocation1 + $0x1] ss:$9 sm:$0xff] %v719_v21  ;;  %v782_v5 = vrot.slane %v780_v0, 3  ;;  %v807_v21 = vsel %vm482_vm3, %v344_v7, %v452_v10  ;;  %v806_v25 = vrot.slane %v804_v19, 2 }
  0xad   : > { %1134 = vst [vmem:[#allocation1 + $0x2] ss:$9 sm:$0xff] %v722_v22  ;;  %v800_v22 = vsel %vm470_vm0, %v344_v7, %v452_v10 }
  0xae   : > { %1136 = vst [vmem:[#allocation1 + $0x3] ss:$9 sm:$0xff] %v725_v24  ;;  %v345_v24 = vld [vmem:[%s4898_s14 + $0x94] sm:$0xf] }
  0xaf   : > { %1138 = vst [vmem:[#allocation1 + $0x4] ss:$9 sm:$0xff] %v728_v26  ;;  %v809_v26 = vrot.slane %v807_v21, 3  ;;  %v453_v27 = vrot.slane %v345_v24, 3  ;;  %v881_v21 = vsel %vm470_vm0, %v353_v9, %v461_v17 }
  0xb0   : > { %1139 = vst [vmem:[#allocation1 + $0x5] ss:$9 sm:$0xff] %v731_v28  ;;  %v347_v28 = vld [vmem:[%s4898_s14 + $0x9c] sm:$0xf] }
  0xb1   : > { %1141 = vst [vmem:[#allocation1 + $0x6] ss:$9 sm:$0xff] %v734_v29  ;;  %v346_v29 = vld [vmem:[%s4898_s14 + $0x98] sm:$0x1]  ;;  %v455_v31 = vrot.slane %v347_v28, 3  ;;  %v816_v32 = vsel %vm478_vm2, %v345_v24, %v453_v27  ;;  %v819_v33 = vsel %vm482_vm3, %v345_v24, %v453_v27  ;;  %v812_v35 = vsel %vm470_vm0, %v345_v24, %v453_v27 }
  0xb2   : > { %1143 = vst [vmem:[#allocation1 + $0x7] ss:$9 sm:$0xff] %v737_v30  ;;  %v813_v30 = vsel %vm474_vm1, %v345_v24, %v453_v27  ;;  %v454_v34 = vrot.slane %v346_v29, 3  ;;  %v818_v37 = vrot.slane %v816_v32, 2  ;;  %v882_v24 = vsel %vm474_vm1, %v353_v9, %v461_v17  ;;  %v5101_v27 = vpop.f32.mrf.mxu0 }
  0xb3   : > { %v815_v36 = vrot.slane %v813_v30, 1  ;;  %v828_v39 = vsel %vm474_vm1, %v347_v28, %v455_v31 }
  0xb4   : > { %v824_v42 = vsel %vm470_vm0, %v346_v29, %v454_v34  ;;  %v355_v29 = vld [vmem:[%s4898_s14 + $0xbc] sm:$0x1] }
  0xb9   : > { %v1144_v43 = vld [vmem:[#allocation1] sm:$0xff] }
  0xba   : > { %1146 = vst [vmem:[#allocation1] ss:$9 sm:$0xff] %v740_v38  ;;  %v821_v38 = vrot.slane %v819_v33, 3 }
  0xbb   : > { %1405 = vmatmul.bf16.gmra.mxu2 %v1144_v43  ;;  %1147 = vst [vmem:[#allocation1 + $0x1] ss:$9 sm:$0xff] %v743_v41  ;;  %v831_v41 = vsel %vm478_vm2, %v347_v28, %v455_v31  ;;  %v827_v43 = vsel %vm470_vm0, %v347_v28, %v455_v31 }
  0xbc   : > { %1148 = vst [vmem:[#allocation1 + $0x2] ss:$9 sm:$0xff] %v746_v44  ;;  %v830_v44 = vrot.slane %v828_v39, 1 }
  0xbd   : > { %1150 = vst [vmem:[#allocation1 + $0x3] ss:$9 sm:$0xff] %v749_v45  ;;  %v348_v45 = vld [vmem:[%s4898_s14 + $0xa0] sm:$0xf] }
  0xbe   : > { %1152 = vst [vmem:[#allocation1 + $0x4] ss:$9 sm:$0xff] %v752_v46  ;;  %v833_v46 = vrot.slane %v831_v41, 2  ;;  %v456_v47 = vrot.slane %v348_v45, 3 }
  0xbf   : > { %1154 = vst [vmem:[#allocation1 + $0x5] ss:$9 sm:$0xff] %v755_v48  ;;  %v350_v48 = vld [vmem:[%s4898_s14 + $0xa8] sm:$0xf] }
  0xc0   : > { %1155 = vst [vmem:[#allocation1 + $0x6] ss:$9 sm:$0xff] %v758_v49  ;;  %v834_v49 = vsel %vm482_vm3, %v347_v28, %v455_v31  ;;  %v840_v51 = vsel %vm474_vm1, %v348_v45, %v456_v47  ;;  %v458_v52 = vrot.slane %v350_v48, 3  ;;  %v843_v54 = vsel %vm478_vm2, %v348_v45, %v456_v47 }
  0xc1   : > { %1157 = vst [vmem:[#allocation1 + $0x7] ss:$9 sm:$0xff] %v761_v50  ;;  %v349_v50 = vld [vmem:[%s4898_s14 + $0xa4] sm:$0x1]  ;;  %v836_v53 = vrot.slane %v834_v49, 3  ;;  %v846_v55 = vsel %vm482_vm3, %v348_v45, %v456_v47  ;;  %v842_v58 = vrot.slane %v840_v51, 1 }
  0xc2   : > { %v457_v56 = vrot.slane %v349_v50, 3  ;;  %v848_v61 = vrot.slane %v846_v55, 3  ;;  %v854_v0 = vsel %vm470_vm0, %v350_v48, %v458_v52  ;;  %v884_v28 = vrot.slane %v882_v24, 1 }
  0xc8   : > { %v1158_v62 = vld [vmem:[#allocation1] sm:$0xff] }
  0xc9   : > { %1160 = vst [vmem:[#allocation1] ss:$9 sm:$0xff] %v764_v57  ;;  %v839_v57 = vsel %vm470_vm0, %v348_v45, %v456_v47  ;;  %v357_v45 = vld [vmem:[%s4898_s14 + $0xc4] sm:$0xf] }
  0xca   : > { %1162 = vst [vmem:[#allocation1 + $0x1] ss:$9 sm:$0xff] %v767_v59  ;;  %v845_v59 = vrot.slane %v843_v54, 2 }
  0xcb   : > { %1410 = vmatmul.bf16.gmra.mxu2 %v1158_v62  ;;  %1163 = vst [vmem:[#allocation1 + $0x2] ss:$9 sm:$0xff] %v770_v63  ;;  %v855_v62 = vsel %vm474_vm1, %v350_v48, %v458_v52  ;;  %v851_v63 = vsel %vm470_vm0, %v349_v50, %v457_v56 }
  0xcc   : > { %1164 = vst [vmem:[#allocation1 + $0x3] ss:$9 sm:$0xff] %v773_v2  ;;  %v857_v1 = vrot.slane %v855_v62, 1  ;;  %v351_v2 = vld [vmem:[%s4898_s14 + $0xac] sm:$0xf] }
  0xcd   : > { %1166 = vst [vmem:[#allocation1 + $0x4] ss:$9 sm:$0xff] %v776_v3  ;;  %v459_v3 = vrot.slane %v351_v2, 3  ;;  %v359_v62 = vld [vmem:[%s4898_s14 + $0xcc] sm:$0xf] }
  0xce   : > { %1168 = vst [vmem:[#allocation1 + $0x5] ss:$9 sm:$0xff] %v779_v4  ;;  %v858_v4 = vsel %vm478_vm2, %v350_v48, %v458_v52 }
  0xcf   : > { %1170 = vst [vmem:[#allocation1 + $0x6] ss:$9 sm:$0xff] %v782_v5  ;;  %v861_v5 = vsel %vm482_vm3, %v350_v48, %v458_v52  ;;  %v860_v7 = vrot.slane %v858_v4, 2  ;;  %v867_v8 = vsel %vm474_vm1, %v351_v2, %v459_v3  ;;  %v870_v11 = vsel %vm478_vm2, %v351_v2, %v459_v3 }
  0xd0   : > { %1171 = vst [vmem:[#allocation1 + $0x7] ss:$9 sm:$0xff] %v785_v6  ;;  %v352_v6 = vld [vmem:[%s4898_s14 + $0xb0] sm:$0x1]  ;;  %v863_v10 = vrot.slane %v861_v5, 3  ;;  %v873_v12 = vsel %vm482_vm3, %v351_v2, %v459_v3 }
  0xd1   : > { %v460_v13 = vrot.slane %v352_v6, 3  ;;  %v875_v19 = vrot.slane %v873_v12, 3 }
  0xd7   : > { %v1172_v18 = vld [vmem:[#allocation1] sm:$0xff] }
  0xd8   : > { %1174 = vst [vmem:[#allocation1] ss:$9 sm:$0xff] %v788_v14  ;;  %v866_v14 = vsel %vm470_vm0, %v351_v2, %v459_v3  ;;  %v360_v2 = vld [vmem:[%s4898_s14 + $0xd0] sm:$0xf] }
  0xd9   : > { %1176 = vst [vmem:[#allocation1 + $0x1] ss:$9 sm:$0xff] %v791_v15  ;;  %v869_v15 = vrot.slane %v867_v8, 1  ;;  %v468_v4 = vrot.slane %v360_v2, 3 }
  0xda   : > { %1178 = vst [vmem:[#allocation1 + $0x2] ss:$9 sm:$0xff] %v794_v16 }
  0xdb   : > { %1415 = vmatmul.bf16.gmra.mxu2 %v1172_v18  ;;  %1179 = vst [vmem:[#allocation1 + $0x3] ss:$9 sm:$0xff] %v797_v20  ;;  %v872_v18 = vrot.slane %v870_v11, 2  ;;  %v878_v20 = vsel %vm470_vm0, %v352_v6, %v460_v13  ;;  %v948_v13 = vsel %vm474_vm1, %v360_v2, %v468_v4 }
  0xdc   : > { %1180 = vst [vmem:[#allocation1 + $0x4] ss:$9 sm:$0xff] %v800_v22  ;;  %v354_v22 = vld [vmem:[%s4898_s14 + $0xb8] sm:$0xf] }
  0xdd   : > { %1182 = vst [vmem:[#allocation1 + $0x5] ss:$9 sm:$0xff] %v803_v23  ;;  %v462_v23 = vrot.slane %v354_v22, 3 }
  0xde   : > { %1184 = vst [vmem:[#allocation1 + $0x6] ss:$9 sm:$0xff] %v806_v25  ;;  %v885_v25 = vsel %vm478_vm2, %v353_v9, %v461_v17 }
  0xdf   : > { %1186 = vst [vmem:[#allocation1 + $0x7] ss:$9 sm:$0xff] %v809_v26  ;;  %v888_v26 = vsel %vm482_vm3, %v353_v9, %v461_v17  ;;  %v887_v30 = vrot.slane %v885_v25, 2  ;;  %v894_v31 = vsel %vm474_vm1, %v354_v22, %v462_v23  ;;  %v897_v33 = vsel %vm478_vm2, %v354_v22, %v462_v23  ;;  %v361_v25 = vld [vmem:[%s4898_s14 + $0xd4] sm:$0x1] }
  0xe0   : > { %v890_v32 = vrot.slane %v888_v26, 3  ;;  %v900_v34 = vsel %vm482_vm3, %v354_v22, %v462_v23  ;;  %v899_v39 = vrot.slane %v897_v33, 2  ;;  %v951_v17 = vsel %vm478_vm2, %v360_v2, %v468_v4 }
  0xe1   : > { %v902_v41 = vrot.slane %v900_v34, 3  ;;  %v954_v26 = vsel %vm482_vm3, %v360_v2, %v468_v4 }
  0xe6   : > { %v1187_v40 = vld [vmem:[#allocation1] sm:$0xff] }
  0xe7   : > { %1188 = vst [vmem:[#allocation1] ss:$9 sm:$0xff] %v812_v35 }
  0xe8   : > { %1190 = vst [vmem:[#allocation1 + $0x1] ss:$9 sm:$0xff] %v815_v36  ;;  %v463_v36 = vrot.slane %v355_v29, 3 }
  0xe9   : > { %1192 = vst [vmem:[#allocation1 + $0x2] ss:$9 sm:$0xff] %v818_v37  ;;  %v893_v37 = vsel %vm470_vm0, %v354_v22, %v462_v23 }
  0xea   : > { %1194 = vst [vmem:[#allocation1 + $0x3] ss:$9 sm:$0xff] %v821_v38  ;;  %v896_v38 = vrot.slane %v894_v31, 1 }
  0xeb   : > { %1195 = vst [vmem:[#allocation1 + $0x4] ss:$9 sm:$0xff] %v824_v42  ;;  %1420 = vmatmul.bf16.gmra.mxu2 %v1187_v40  ;;  %v356_v40 = vld [vmem:[%s4898_s14 + $0xc0] sm:$0xf]  ;;  %v905_v42 = vsel %vm470_vm0, %v355_v29, %v463_v36  ;;  %v469_v29 = vrot.slane %v361_v25, 3 }
  0xec   : > { %1196 = vst [vmem:[#allocation1 + $0x5] ss:$9 sm:$0xff] %v827_v43  ;;  %v464_v43 = vrot.slane %v356_v40, 3 }
  0xed   : > { %1198 = vst [vmem:[#allocation1 + $0x6] ss:$9 sm:$0xff] %v830_v44  ;;  %v1358_v44 = vpop.f32.mrf.mxu0 }
  0xee   : > { %1200 = vst [vmem:[#allocation1 + $0x7] ss:$9 sm:$0xff] %v833_v46  ;;  %v465_v46 = vrot.slane %v357_v45, 3  ;;  %v909_v47 = vsel %vm474_vm1, %v356_v40, %v464_v43  ;;  %v912_v48 = vsel %vm478_vm2, %v356_v40, %v464_v43  ;;  %v915_v49 = vsel %vm482_vm3, %v356_v40, %v464_v43 }
  0xef   : > { %v908_v50 = vsel %vm470_vm0, %v356_v40, %v464_v43  ;;  %v911_v51 = vrot.slane %v909_v47, 1  ;;  %v914_v52 = vrot.slane %v912_v48, 2  ;;  %v917_v54 = vrot.slane %v915_v49, 3  ;;  %v5147_v48 = vld [vmem:[%s7032_s3] sm:$0xff] }
  0xf0   : > { %v924_v55 = vsel %vm478_vm2, %v357_v45, %v465_v46 }
  0xf5   : > { %v1201_v60 = vld [vmem:[#allocation1] sm:$0xff] }
  0xf6   : > { %1203 = vst [vmem:[#allocation1] ss:$9 sm:$0xff] %v836_v53  ;;  %v921_v53 = vsel %vm474_vm1, %v357_v45, %v465_v46 }
  0xf7   : > { %1204 = vst [vmem:[#allocation1 + $0x1] ss:$9 sm:$0xff] %v839_v57  ;;  %v927_v57 = vsel %vm482_vm3, %v357_v45, %v465_v46 }
  0xf8   : > { %1206 = vst [vmem:[#allocation1 + $0x2] ss:$9 sm:$0xff] %v842_v58  ;;  %v920_v58 = vsel %vm470_vm0, %v357_v45, %v465_v46 }
  0xf9   : > { %1208 = vst [vmem:[#allocation1 + $0x3] ss:$9 sm:$0xff] %v845_v59  ;;  %v923_v59 = vrot.slane %v921_v53, 1 }
  0xfa   : > { %1210 = vst [vmem:[#allocation1 + $0x4] ss:$9 sm:$0xff] %v848_v61  ;;  %v926_v61 = vrot.slane %v924_v55, 2  ;;  %v4594_v55 = vld [vmem:[%s7034_s5 + $0x38] sm:$0xff] }
  0xfb   : > { %1211 = vst [vmem:[#allocation1 + $0x5] ss:$9 sm:$0xff] %v851_v63  ;;  %1425 = vmatmul.bf16.gmra.mxu2 %v1201_v60  ;;  %v1361_v60 = vpop.f32.mrf.mxu0  ;;  %v929_v63 = vrot.slane %v927_v57, 3  ;;  %4022 = vmatpush.bf16.msra.mxu1 %v4594_v55 }
  0xfc   : > { %1212 = vst [vmem:[#allocation1 + $0x6] ss:$9 sm:$0xff] %v854_v0  ;;  %v358_v0 = vld [vmem:[%s4898_s14 + $0xc8] sm:$0x1]  ;;  %4706 = vmatpush.bf16.msrb.mxu3 %v4594_v55 }
  0xfd   : > { %1214 = vst [vmem:[#allocation1 + $0x7] ss:$9 sm:$0xff] %v857_v1  ;;  %v467_v1 = vrot.slane %v359_v62, 3  ;;  %v466_v3 = vrot.slane %v358_v0, 3 }
  0xff   : > { %v936_v5 = vsel %vm474_vm1, %v359_v62, %v467_v1  ;;  %v939_v6 = vsel %vm478_vm2, %v359_v62, %v467_v1  ;;  %v932_v8 = vsel %vm470_vm0, %v358_v0, %v466_v3  ;;  %v942_v9 = vsel %vm482_vm3, %v359_v62, %v467_v1 }
 0x100   : > { %v938_v11 = vrot.slane %v936_v5, 1  ;;  %v941_v12 = vrot.slane %v939_v6, 2  ;;  %v5161_v0 = vperm.slane %v5147_v48, 0 }
 0x104   : > { %v1215_v16 = vld [vmem:[#allocation1] sm:$0xff] }
 0x105   : > { %1217 = vst [vmem:[#allocation1] ss:$9 sm:$0xff] %v860_v7  ;;  %v1363_v7 = vpop.f32.mrf.mxu0 }
 0x106   : > { %1219 = vst [vmem:[#allocation1 + $0x1] ss:$9 sm:$0xff] %v863_v10  ;;  %v935_v10 = vsel %vm470_vm0, %v359_v62, %v467_v1 }
 0x107   : > { %1220 = vst [vmem:[#allocation1 + $0x2] ss:$9 sm:$0xff] %v866_v14 }
 0x108   : > { %1222 = vst [vmem:[#allocation1 + $0x3] ss:$9 sm:$0xff] %v869_v15  ;;  %v5131_v15 = vld [vmem:[%s7031_s2] ss:$0 sm:$0xff] }
 0x109   : > { %1224 = vst [vmem:[#allocation1 + $0x4] ss:$9 sm:$0xff] %v872_v18  ;;  %v1359_v18 = vadd.f32 %v5131_v15, %v1358_v44  ;;  %v1362_v22 = vadd.f32 %v5131_v15, %v1361_v60  ;;  %v1357_v31 = vadd.f32 %v5131_v15, %v5101_v27 }
 0x10a   : > { %1226 = vst [vmem:[#allocation1 + $0x5] ss:$9 sm:$0xff] %v875_v19  ;;  %v947_v19 = vsel %vm470_vm0, %v360_v2, %v468_v4  ;;  %v4593_v4 = vld [vmem:[%s7034_s5 + $0x30] sm:$0xff] }
 0x10b   : > { %1227 = vst [vmem:[#allocation1 + $0x6] ss:$9 sm:$0xff] %v878_v20  ;;  %1430 = vmatmul.bf16.gmra.mxu2 %v1215_v16  ;;  %v944_v16 = vrot.slane %v942_v9, 3  ;;  %v950_v20 = vrot.slane %v948_v13, 1  ;;  %v1461_v24 = vmax.f32 %v1359_v18, 0.0  ;;  %4023 = vmatpush.bf16.msra.mxu1 %v4593_v4 }
 0x10c   : > { %1228 = vst [vmem:[#allocation1 + $0x7] ss:$9 sm:$0xff] %v881_v21  ;;  %v953_v21 = vrot.slane %v951_v17, 2  ;;  %4707 = vmatpush.bf16.msrb.mxu3 %v4593_v4  ;;  %v4589_v4 = vld [vmem:[%s7034_s5 + $0x10] sm:$0xff] }
 0x10d   : > { %v1366_v23 = vpop.f32.mrf.mxu0 }
 0x10e   : > { %v1367_v46 = vadd.f32 %v5131_v15, %v1366_v23  ;;  %v5193_v23 = vperm.slane %v5147_v48, 4 }
 0x113   : > { %v1229_v35 = vld [vmem:[#allocation1] sm:$0xff] }
 0x114   : > { %1231 = vst [vmem:[#allocation1] ss:$9 sm:$0xff] %v884_v28  ;;  %v1462_v28 = vmax.f32 %v1362_v22, 0.0  ;;  %v5190_v22 = vperm.slane %v5147_v48, 3 }
 0x115   : > { %1233 = vst [vmem:[#allocation1 + $0x1] ss:$9 sm:$0xff] %v887_v30  ;;  %v1502_v30 = vmin.f32 %v1461_v24, 6.0  ;;  %v1368_v34 = vpop.f32.mrf.mxu0  ;;  %v5196_v24 = vperm.slane %v5147_v48, 5 }
 0x116   : > { %1235 = vst [vmem:[#allocation1 + $0x2] ss:$9 sm:$0xff] %v890_v32  ;;  %v956_v32 = vrot.slane %v954_v26, 3  ;;  %v1503_v33 = vmin.f32 %v1462_v28, 6.0 }
 0x117   : > { %1236 = vst [vmem:[#allocation1 + $0x3] ss:$9 sm:$0xff] %v893_v37  ;;  %v1586_v36 = vrot.slane %v1502_v30, 2  ;;  %v1587_v40 = vrot.slane %v1502_v30, 4  ;;  %v1588_v45 = vrot.slane %v1502_v30, 6 }
 0x118   : > { %1238 = vst [vmem:[#allocation1 + $0x4] ss:$9 sm:$0xff] %v896_v38  ;;  %v1364_v38 = vadd.f32 %v5131_v15, %v1363_v7  ;;  %v1591_v43 = vrot.slane %v1503_v33, 6 }
 0x119   : > { %1240 = vst [vmem:[#allocation1 + $0x5] ss:$9 sm:$0xff] %v899_v39  ;;  %v1460_v39 = vmax.f32 %v1357_v31, 0.0 }
 0x11a   : > { %1242 = vst [vmem:[#allocation1 + $0x6] ss:$9 sm:$0xff] %v902_v41  ;;  %v1589_v41 = vrot.slane %v1503_v33, 2  ;;  %v1463_v27 = vmax.f32 %v1364_v38, 0.0 }
 0x11b   : > { %1243 = vst [vmem:[#allocation1 + $0x7] ss:$9 sm:$0xff] %v905_v42  ;;  %1435 = vmatmul.bf16.gmra.mxu2 %v1229_v35  ;;  %v959_v35 = vsel %vm470_vm0, %v361_v25, %v469_v29  ;;  %v1590_v42 = vrot.slane %v1503_v33, 4  ;;  %v1501_v44 = vmin.f32 %v1460_v39, 6.0 }
 0x11c   : > { %v1504_v49 = vmin.f32 %v1463_v27, 6.0  ;;  %v5222_v27 = vperm.slane %v5147_v48, 7 }
 0x11d   : > { %v1371_v47 = vpop.f32.mrf.mxu0  ;;  %v1584_v53 = vrot.slane %v1501_v44, 4  ;;  %v1585_v57 = vrot.slane %v1501_v44, 6 }
 0x11e   : > { %v1592_v60 = vrot.slane %v1504_v49, 2  ;;  %v1593_v62 = vrot.slane %v1504_v49, 4  ;;  %v1594_v1 = vrot.slane %v1504_v49, 6 }
 0x122   : > { %v1244_v56 = vld [vmem:[#allocation1] sm:$0xff] }
 0x123   : > { %1245 = vst [vmem:[#allocation1] ss:$9 sm:$0xff] %v908_v50  ;;  %v1583_v50 = vrot.slane %v1501_v44, 2 }
 0x124   : > { %1247 = vst [vmem:[#allocation1 + $0x1] ss:$9 sm:$0xff] %v911_v51 }
 0x125   : > { %1249 = vst [vmem:[#allocation1 + $0x2] ss:$9 sm:$0xff] %v914_v52  ;;  %v1369_v52 = vadd.f32 %v5131_v15, %v1368_v34  ;;  %v1373_v3 = vpop.f32.mrf.mxu0 }
 0x126   : > { %1251 = vst [vmem:[#allocation1 + $0x3] ss:$9 sm:$0xff] %v917_v54  ;;  %v1464_v54 = vmax.f32 %v1367_v46, 0.0  ;;  %v1374_v7 = vadd.f32 %v5131_v15, %v1373_v3 }
 0x127   : > { %1252 = vst [vmem:[#allocation1 + $0x4] ss:$9 sm:$0xff] %v920_v58  ;;  %v1372_v58 = vadd.f32 %v5131_v15, %v1371_v47 }
 0x128   : > { %1254 = vst [vmem:[#allocation1 + $0x5] ss:$9 sm:$0xff] %v923_v59  ;;  %v1722_v59 = vlaneseq  ;;  %v5163_v2 = vmin.f32 %v1464_v54, 6.0 }
 0x129   : > { %1256 = vst [vmem:[#allocation1 + $0x6] ss:$9 sm:$0xff] %v926_v61  ;;  %v5158_v61 = vperm.slane %v5147_v48, 2  ;;  %v1466_v6 = vmax.f32 %v1372_v58, 0.0 }
 0x12a   : > { %1258 = vst [vmem:[#allocation1 + $0x7] ss:$9 sm:$0xff] %v929_v63  ;;  %v1465_v63 = vmax.f32 %v1369_v52, 0.0  ;;  %v1595_v13 = vrot.slane %v5163_v2, 2  ;;  %v1596_v18 = vrot.slane %v5163_v2, 4 }
 0x12b   : > { %1440 = vmatmul.bf16.gmra.mxu2 %v1244_v56  ;;  %v5154_v56 = vperm.slane %v5147_v48, 1  ;;  %v2503_v9 = vmul.f32 0.0, %v5158_v61 }
 0x12d   : > { %v2261_v5 = vmul.f32 0.0, %v5154_v56  ;;  %v1376_v31 = vpop.f32.mrf.mxu0 }
 0x12f   : > { %v2358_v17 = vrot.slane %v2261_v5, 1 }
 0x131   : > { %v1259_v14 = vld [vmem:[#allocation1] sm:$0xff] }
 0x132   : > { %1260 = vst [vmem:[#allocation1] ss:$9 sm:$0xff] %v932_v8  ;;  %v5170_v8 = vshrl.u32 %v1722_v59, 7 }
 0x133   : > { %1261 = vst [vmem:[#allocation1 + $0x1] ss:$9 sm:$0xff] %v935_v10  ;;  %v5173_v10 = vmin.f32 %v1465_v63, 6.0 }
 0x134   : > { %1263 = vst [vmem:[#allocation1 + $0x2] ss:$9 sm:$0xff] %v938_v11  ;;  %v1467_v11 = vmax.f32 %v1374_v7, 0.0  ;;  %vm1780_vm4 = vcmp.gt.s32.totalorder %v5170_v8, 0 }
 0x135   : > { %1265 = vst [vmem:[#allocation1 + $0x3] ss:$9 sm:$0xff] %v941_v12  ;;  %v2228_v12 = vmul.f32 0.0, %v5161_v0  ;;  %v1598_v25 = vrot.slane %v5173_v10, 2  ;;  %v1599_v26 = vrot.slane %v5173_v10, 4  ;;  %v1600_v28 = vrot.slane %v5173_v10, 6  ;;  %v1378_v3 = vpop.f32.mrf.mxu0 }
 0x136   : > { %1267 = vst [vmem:[#allocation1 + $0x4] ss:$9 sm:$0xff] %v944_v16  ;;  %v5181_v16 = vadd.s32 16, %v5170_v8  ;;  %v5201_v29 = vmin.f32 %v1467_v11, 6.0 }
 0x137   : > { %1268 = vst [vmem:[#allocation1 + $0x5] ss:$9 sm:$0xff] %v947_v19  ;;  %v1597_v19 = vrot.slane %v5163_v2, 6 }
 0x138   : > { %1270 = vst [vmem:[#allocation1 + $0x6] ss:$9 sm:$0xff] %v950_v20  ;;  %v5186_v20 = vmin.f32 %v1466_v6, 6.0  ;;  %vm1839_vm5 = vcmp.lt.s32.totalorder %v5181_v16, 17  ;;  %v1605_v46 = vrot.slane %v5201_v29, 4  ;;  %v1606_v47 = vrot.slane %v5201_v29, 6 }
 0x139   : > { %1272 = vst [vmem:[#allocation1 + $0x7] ss:$9 sm:$0xff] %v953_v21  ;;  %v2600_v21 = vrot.slane %v2503_v9, 2 }
 0x13a   : > { %v1601_v34 = vrot.slane %v5186_v20, 2  ;;  %v1603_v38 = vrot.slane %v5186_v20, 6 }
 0x13b   : > { %1445 = vmatmul.bf16.gmra.mxu2 %v1259_v14  ;;  %v4592_v14 = vld [vmem:[%s7034_s5 + $0x28] sm:$0xff] }
 0x13c   : > { %4024 = vmatpush.bf16.msra.mxu1 %v4592_v14  ;;  %4708 = vmatpush.bf16.msrb.mxu3 %v4592_v14 }
 0x140   : > { %v1273_v37 = vld [vmem:[#allocation1] sm:$0xff] }
 0x141   : > { %1275 = vst [vmem:[#allocation1] ss:$9 sm:$0xff] %v956_v32  ;;  %1450 = vmatmul.bf16.vlgmr.msra.gmra.mxu3 %v1273_v37  ;;  %v4591_v32 = vld [vmem:[%s7034_s5 + $0x20] sm:$0xff] }
 0x142   : > { %1276 = vst [vmem:[#allocation1 + $0x1] ss:$9 sm:$0xff] %v959_v35  ;;  %v1602_v35 = vrot.slane %v5186_v20, 4  ;;  %4025 = vmatpush.bf16.msra.mxu1 %v4591_v32  ;;  %4709 = vmatpush.bf16.msrb.mxu3 %v4591_v32 }
 0x143   : > { %1902 = vst [vmem:[#allocation1 + $0x20] ss:$4 sm:$0xff] %v1502_v30 }
 0x144   : > { %1904 = vst [vmem:[#allocation1 + $0x21] ss:$4 sm:$0xff] %v1586_v36  ;;  %v1377_v36 = vadd.f32 %v5131_v15, %v1376_v31 }
 0x145   : > { %1906 = vst [vmem:[#allocation1 + $0x22] ss:$4 sm:$0xff] %v1587_v40 }
 0x146   : > { %1913 = vst [vmem:[#allocation1 + $0x20] ss:$4 sm:$0xff] %v1589_v41  ;;  %v5218_v41 = vperm.slane %v5147_v48, 6 }
 0x147   : > { %1914 = vst [vmem:[#allocation1 + $0x21] ss:$4 sm:$0xff] %v1590_v42  ;;  %v1604_v42 = vrot.slane %v5201_v29, 2 }
 0x148   : > { %1915 = vst [vmem:[#allocation1 + $0x22] ss:$4 sm:$0xff] %v1591_v43  ;;  %v1468_v43 = vmax.f32 %v1377_v36, 0.0 }
 0x149   : > { %v1277_v51 = vld [vmem:[#allocation1] sm:$0xff]  ;;  %1908 = vst [vmem:[#allocation1 + $0x23] ss:$4 sm:$0xff] %v1588_v45 }
 0x14a   : > { %1894 = vst [vmem:[#allocation1] ss:$4 sm:$0xff] %v1501_v44  ;;  %v5231_v52 = vmin.f32 %v1468_v43, 6.0 }
 0x14b   : > { %1896 = vst [vmem:[#allocation1 + $0x1] ss:$4 sm:$0xff] %v1583_v50 }
 0x14c   : > { %1898 = vst [vmem:[#allocation1 + $0x2] ss:$4 sm:$0xff] %v1584_v53  ;;  %v1609_v63 = vrot.slane %v5231_v52, 6 }
 0x14d   : > { %1900 = vst [vmem:[#allocation1 + $0x3] ss:$4 sm:$0xff] %v1585_v57 }
 0x14e   : > { %1911 = vst [vmem:[#allocation1] ss:$4 sm:$0xff] %v1503_v33  ;;  %v2470_v33 = vadd.f32 %v2358_v17, %v2228_v12 }
 0x14f   : > { %1916 = vst [vmem:[#allocation1 + $0x23] ss:$4 sm:$0xff] %v1504_v49  ;;  %v4590_v49 = vld [vmem:[%s7034_s5 + $0x18] sm:$0xff] }
 0x150   : > { %1918 = vst [vmem:[#allocation1] ss:$4 sm:$0xff] %v1592_v60  ;;  %v2712_v50 = vadd.f32 %v2600_v21, %v2470_v33  ;;  %4026 = vmatpush.bf16.msra.mxu1 %v4590_v49  ;;  %v1607_v60 = vrot.slane %v5231_v52, 2  ;;  %4710 = vmatpush.bf16.msrb.mxu3 %v4590_v49 }
 0x151   : > { %1919 = vst [vmem:[#allocation1 + $0x1] ss:$4 sm:$0xff] %v1593_v62  ;;  %1455 = vmatmul.bf16.gmra.mxu3 %v1277_v51  ;;  %v1608_v62 = vrot.slane %v5231_v52, 4 }
 0x152   : > { %1920 = vst [vmem:[#allocation1 + $0x2] ss:$4 sm:$0xff] %v1594_v1 }
 0x153   : > { %1921 = vst [vmem:[#allocation1 + $0x3] ss:$4 sm:$0xff] %v5163_v2 }
 0x154   : > { %4027 = vmatpush.bf16.msra.mxu1 %v4589_v4  ;;  %4711 = vmatpush.bf16.msrb.mxu3 %v4589_v4 }
 0x156   : > { %v1917_v30 = vld.sshfl [vmem:[#allocation1 + $0x20] sm:$0xff pattern:$0x73625140] }
 0x157   : > { %1922 = vst [vmem:[#allocation1 + $0x20] ss:$4 sm:$0xff] %v1595_v13  ;;  %v2174_v37 = vsel %vm1780_vm4, %v1917_v30, 0.0 }
 0x158   : > { %v2810_v39 = vmul.f32 %v5193_v23, %v2174_v37  ;;  %v5215_v40 = vmul.f32 %v5196_v24, %v2174_v37  ;;  %v2264_v44 = vmul.f32 %v5154_v56, %v2174_v37  ;;  %v2745_v51 = vmul.f32 %v5190_v22, %v2174_v37 }
 0x159   : > { %v2230_v54 = vmul.f32 %v5161_v0, %v2174_v37  ;;  %v2506_v7 = vmul.f32 %v5158_v61, %v2174_v37 }
 0x15a   : > { %v1923_v45 = vld.sshfl [vmem:[#allocation1] sm:$0xff pattern:$0x73625140]  ;;  %v2906_v57 = vrot.slane %v2810_v39, 1  ;;  %v3147_v58 = vrot.slane %v5215_v40, 2  ;;  %v2363_v1 = vrot.slane %v2264_v44, 1  ;;  %v2777_v5 = vadd.f32 %v2745_v51, %v2712_v50 }
 0x15b   : > { %1925 = vst [vmem:[#allocation1] ss:$4 sm:$0xff] %v1596_v18  ;;  %v2811_v48 = vmul.f32 %v5193_v23, %v1923_v45  ;;  %v3052_v53 = vmul.f32 %v5196_v24, %v1923_v45  ;;  %v2746_v55 = vmul.f32 %v5190_v22, %v1923_v45  ;;  %v2265_v59 = vmul.f32 %v5154_v56, %v1923_v45 }
 0x15c   : > { %1926 = vst [vmem:[#allocation1 + $0x1] ss:$4 sm:$0xff] %v1597_v19  ;;  %v2231_v6 = vmul.f32 %v5161_v0, %v1923_v45  ;;  %v2507_v9 = vmul.f32 %v5158_v61, %v1923_v45  ;;  %v5270_v45 = vld [vmem:[%s7032_s3 + $0x8] ss:$0 sm:$0xff]  ;;  %v2605_v49 = vrot.slane %v2506_v7, 2 }
 0x15d   : > { %1927 = vst [vmem:[#allocation1 + $0x2] ss:$4 sm:$0xff] %v5173_v10  ;;  %v1379_v10 = vadd.f32 %v5131_v15, %v1378_v3  ;;  %v2907_v12 = vrot.slane %v2811_v48, 1  ;;  %v3148_v13 = vrot.slane %v3052_v53, 2  ;;  %v2364_v19 = vrot.slane %v2265_v59, 1  ;;  %v4587_v59 = vld [vmem:[%s7034_s5] sm:$0xff] }
 0x15e   : > { %v1924_v2 = vld.sshfl [vmem:[#allocation1 + $0x20] sm:$0xff pattern:$0x73625140]  ;;  %1928 = vst [vmem:[#allocation1 + $0x3] ss:$4 sm:$0xff] %v1598_v25  ;;  %v2778_v25 = vadd.f32 %v2746_v55, %v2712_v50  ;;  %v2606_v50 = vrot.slane %v2507_v9, 2 }
 0x15f   : > { %1929 = vst [vmem:[#allocation1 + $0x20] ss:$4 sm:$0xff] %v1599_v26  ;;  %v2176_v11 = vsel %vm1839_vm5, %v1924_v2, 0.0  ;;  %v1469_v21 = vmax.f32 %v1379_v10, 0.0  ;;  %v2908_v26 = vsel %vm2357_vm6, %v2906_v57, %v2907_v12  ;;  %v2365_v36 = vsel %vm2357_vm6, %v2363_v1, %v2364_v19 }
 0x160   : > { %1930 = vst [vmem:[#allocation1 + $0x21] ss:$4 sm:$0xff] %v1600_v28  ;;  %v2812_v14 = vmul.f32 %v5193_v23, %v2176_v11  ;;  %v3053_v17 = vmul.f32 %v5196_v24, %v2176_v11  ;;  %v2266_v18 = vmul.f32 %v5154_v56, %v2176_v11  ;;  %v2508_v30 = vmul.f32 %v5158_v61, %v2176_v11  ;;  %v4588_v28 = vld [vmem:[%s7034_s5 + $0x8] sm:$0xff] }
 0x161   : > { %1931 = vst [vmem:[#allocation1 + $0x22] ss:$4 sm:$0xff] %v5186_v20  ;;  %v3018_v32 = vadd.f32 %v2908_v26, %v2777_v5  ;;  %v5262_v37 = vmin.f32 %v1469_v21, 6.0  ;;  %v3149_v39 = vsel %vm2599_vm7, %v3147_v58, %v3148_v13  ;;  %v2472_v43 = vadd.f32 %v2365_v36, %v2230_v54  ;;  %4028 = vmatpush.bf16.msra.mxu1 %v4588_v28  ;;  %v1381_v58 = vpop.f32.mrf.mxu0 }
 0x162   : > { %1932 = vst [vmem:[#allocation1 + $0x23] ss:$4 sm:$0xff] %v1601_v34  ;;  %v2909_v31 = vrot.slane %v2812_v14, 1  ;;  %v3150_v33 = vrot.slane %v3053_v17, 2  ;;  %v2366_v40 = vrot.slane %v2266_v18, 1  ;;  %4712 = vmatpush.bf16.msrb.mxu3 %v4588_v28  ;;  %v2608_v3 = vrot.slane %v2508_v30, 2 }
 0x163   : > { %v1610_v48 = vrot.slane %v5262_v37, 2  ;;  %v1611_v53 = vrot.slane %v5262_v37, 4  ;;  %v3259_v57 = vadd.f32 %v3149_v39, %v3018_v32  ;;  %v1612_v54 = vrot.slane %v5262_v37, 6 }
 0x164   : > { %v2910_v44 = vsel %vm2357_vm6, %v2907_v12, %v2909_v31  ;;  %v3151_v34 = vsel %vm2599_vm7, %v3148_v13, %v3150_v33  ;;  %v2367_v2 = vsel %vm2357_vm6, %v2364_v19, %v2366_v40  ;;  %v1382_v4 = vadd.f32 %v5131_v15, %v1381_v58  ;;  %v1401_v31 = vpop.f32.mrf.mxu2 }
 0x165   : > { %v1933_v51 = vld.sshfl [vmem:[#allocation1] sm:$0xff pattern:$0x73625140]  ;;  %v3019_v55 = vadd.f32 %v2910_v44, %v2778_v25  ;;  %v2607_v7 = vsel %vm2599_vm7, %v2605_v49, %v2606_v50  ;;  %4029 = vmatpush.bf16.msra.mxu1 %v4587_v59  ;;  %v2473_v11 = vadd.f32 %v2367_v2, %v2231_v6  ;;  %v2609_v12 = vsel %vm2599_vm7, %v2606_v50, %v2608_v3 }
 0x166   : > { %1935 = vst [vmem:[#allocation1] ss:$4 sm:$0xff] %v1602_v35  ;;  %v5282_v1 = vsel %vm1780_vm4, %v1933_v51, 0.0  ;;  %v1470_v14 = vmax.f32 %v1382_v4, 0.0  ;;  %v2714_v18 = vadd.f32 %v2607_v7, %v2472_v43  ;;  %4713 = vmatpush.bf16.msrb.mxu3 %v4587_v59  ;;  %v1402_v36 = vadd.f32 %v5131_v15, %v1401_v31  ;;  %v5338_v59 = vld [vmem:[%s7033_s4] ss:$0 sm:$0xff] }
 0x167   : > { %v3292_v5 = vmul.f32 %v5218_v41, %v5282_v1  ;;  %v3357_v35 = vmul.f32 %v5222_v27, %v5282_v1  ;;  %v3260_v9 = vadd.f32 %v3151_v34, %v3019_v55  ;;  %v3598_v10 = vmul.f32 %v5270_v45, %v5282_v1 }
 0x168   : > { %v2747_v19 = vmul.f32 %v5190_v22, %v5282_v1  ;;  %v5307_v30 = vmin.f32 %v1470_v14, 6.0  ;;  %v2715_v32 = vadd.f32 %v2609_v12, %v2473_v11  ;;  %v1478_v4 = vmax.f32 %v1402_v36, 0.0 }
 0x169   : > { %v5294_v13 = vld.sshfl [vmem:[#allocation1 + $0x20] sm:$0xff pattern:$0x73625140]  ;;  %v3324_v17 = vadd.f32 %v3292_v5, %v3259_v57  ;;  %v3453_v25 = vrot.slane %v3357_v35, 1  ;;  %v3694_v28 = vrot.slane %v3598_v10, 2  ;;  %v1383_v55 = vpop.f32.mrf.mxu0 }
 0x16a   : > { %1937 = vst [vmem:[#allocation1 + $0x20] ss:$4 sm:$0xff] %v1603_v38  ;;  %v3293_v21 = vmul.f32 %v5218_v41, %v5294_v13  ;;  %v3358_v6 = vmul.f32 %v5222_v27, %v5294_v13  ;;  %v3599_v26 = vmul.f32 %v5270_v45, %v5294_v13  ;;  %v2748_v20 = vmul.f32 %v5190_v22, %v5294_v13 }
 0x16b   : > { %1938 = vst [vmem:[#allocation1 + $0x21] ss:$4 sm:$0xff] %v5201_v29  ;;  %v2779_v39 = vadd.f32 %v2747_v19, %v2714_v18  ;;  %v1613_v43 = vrot.slane %v5307_v30, 2  ;;  %v2814_v49 = vmul.f32 %v5193_v23, %v5294_v13  ;;  %v1615_v57 = vrot.slane %v5307_v30, 6 }
 0x16c   : > { %1939 = vst [vmem:[#allocation1 + $0x22] ss:$4 sm:$0xff] %v1604_v42  ;;  %v3454_v38 = vrot.slane %v3358_v6, 1  ;;  %v3695_v33 = vrot.slane %v3599_v26, 2  ;;  %v3325_v44 = vadd.f32 %v3293_v21, %v3260_v9  ;;  %v2780_v34 = vadd.f32 %v2748_v20, %v2715_v32  ;;  %v1403_v21 = vpop.f32.mrf.mxu2 }
 0x16d   : > { %v1936_v40 = vld.sshfl [vmem:[#allocation1] sm:$0xff pattern:$0x73625140]  ;;  %1940 = vst [vmem:[#allocation1 + $0x23] ss:$4 sm:$0xff] %v1605_v46  ;;  %v1614_v42 = vrot.slane %v5307_v30, 4  ;;  %v2813_v46 = vmul.f32 %v5193_v23, %v5282_v1  ;;  %v1384_v3 = vadd.f32 %v5131_v15, %v1383_v55  ;;  %v3054_v6 = vmul.f32 %v5196_v24, %v5282_v1 }
 0x16e   : > { %1942 = vst [vmem:[#allocation1] ss:$4 sm:$0xff] %v1606_v47  ;;  %v5324_v50 = vsel %vm1839_vm5, %v1936_v40, 0.0  ;;  %v3455_v51 = vsel %vm2357_vm6, %v3453_v25, %v3454_v38  ;;  %v3696_v2 = vsel %vm2599_vm7, %v3694_v28, %v3695_v33  ;;  %v2912_v10 = vrot.slane %v2814_v49, 1 }
 0x16f   : > { %1943 = vst [vmem:[#allocation1 + $0x1] ss:$4 sm:$0xff] %v5231_v52  ;;  %v3359_v29 = vmul.f32 %v5222_v27, %v5324_v50  ;;  %v3565_v47 = vadd.f32 %v3455_v51, %v3324_v17  ;;  %v3600_v58 = vmul.f32 %v5270_v45, %v5324_v50  ;;  %v2815_v5 = vmul.f32 %v5193_v23, %v5324_v50 }
 0x170   : > { %1944 = vst [vmem:[#allocation1 + $0x2] ss:$4 sm:$0xff] %v1607_v60  ;;  %v1471_v11 = vmax.f32 %v1384_v3, 0.0  ;;  %v5348_v12 = vmin.f32 %v1478_v4, 6.0  ;;  %v2911_v14 = vrot.slane %v2813_v46, 1  ;;  %v3055_v3 = vmul.f32 %v5196_v24, %v5294_v13 }
 0x171   : > { %1945 = vst [vmem:[#allocation1 + $0x3] ss:$4 sm:$0xff] %v1608_v62  ;;  %v3456_v35 = vrot.slane %v3359_v29, 1  ;;  %v3697_v7 = vrot.slane %v3600_v58, 2  ;;  %v3806_v9 = vadd.f32 %v3696_v2, %v3565_v47  ;;  %v2914_v60 = vrot.slane %v2815_v5, 1  ;;  %v1386_v49 = vpop.f32.mrf.mxu0 }
 0x172   : > { %v5355_v26 = vmin.f32 %v1471_v11, 6.0  ;;  %v1637_v28 = vrot.slane %v5348_v12, 2  ;;  %v2913_v31 = vsel %vm2357_vm6, %v2911_v14, %v2912_v10  ;;  %v1638_v20 = vrot.slane %v5348_v12, 4 }
 0x173   : > { %v3457_v17 = vsel %vm2357_vm6, %v3454_v38, %v3456_v35  ;;  %v3698_v18 = vsel %vm2599_vm7, %v3695_v33, %v3697_v7  ;;  %v3842_v19 = vadd.f32 %v5338_v59, %v3806_v9  ;;  %v1639_v38 = vrot.slane %v5348_v12, 6 }
 0x174   : > { %v1941_v62 = vld.sshfl [vmem:[#allocation1 + $0x20] sm:$0xff pattern:$0x73625140]  ;;  %v3566_v25 = vadd.f32 %v3457_v17, %v3325_v44  ;;  %v1404_v33 = vadd.f32 %v5131_v15, %v1403_v21  ;;  %v1616_v40 = vrot.slane %v5355_v26, 2  ;;  %v1617_v44 = vrot.slane %v5355_v26, 4 }
 0x175   : > { %1946 = vst [vmem:[#allocation1 + $0x20] ss:$4 sm:$0xff] %v1609_v63  ;;  %v3874_v32 = vmax.f32 %v3842_v19, 0.0  ;;  %v5368_v51 = vsel %vm1780_vm4, %v1941_v62, 0.0  ;;  %v1618_v52 = vrot.slane %v5355_v26, 6  ;;  %v1387_v63 = vadd.f32 %v5131_v15, %v1386_v49 }
 0x176   : > { %v3807_v36 = vadd.f32 %v3698_v18, %v3566_v25  ;;  %v1479_v55 = vmax.f32 %v1404_v33, 0.0  ;;  %v2915_v46 = vsel %vm2357_vm6, %v2912_v10, %v2914_v60  ;;  %v3020_v2 = vadd.f32 %v2913_v31, %v2779_v39  ;;  %v1406_v18 = vpop.f32.mrf.mxu2 }
 0x177   : > { %v3906_v58 = vmin.f32 %v3874_v32, 6.0  ;;  %v1472_v4 = vmax.f32 %v1387_v63, 0.0  ;;  %v3021_v35 = vadd.f32 %v2915_v46, %v2780_v34  ;;  %v3056_v7 = vmul.f32 %v5196_v24, %v5324_v50 }
 0x178   : > { %v5373_v29 = vld.sshfl [vmem:[#allocation1] sm:$0xff pattern:$0x73625140]  ;;  %v3843_v47 = vadd.f32 %v5338_v59, %v3807_v36  ;;  %v5379_v5 = vmin.f32 %v1479_v55, 6.0  ;;  %v3152_v10 = vrot.slane %v3054_v6, 2  ;;  %v3153_v11 = vrot.slane %v3055_v3, 2 }
 0x179   : > { %1949 = vst [vmem:[#allocation1] ss:$4 sm:$0xff] %v5262_v37  ;;  %v3294_v39 = vmul.f32 %v5218_v41, %v5368_v51  ;;  %v5389_v14 = vmin.f32 %v1472_v4, 6.0  ;;  %v3295_v21 = vmul.f32 %v5218_v41, %v5373_v29  ;;  %v3361_v6 = vmul.f32 %v5222_v27, %v5373_v29  ;;  %v1388_v49 = vpop.f32.mrf.mxu0 }
 0x17a   : > { %1950 = vst [vmem:[#allocation1 + $0x1] ss:$4 sm:$0xff] %v1610_v48  ;;  %v3875_v9 = vmax.f32 %v3843_v47, 0.0  ;;  %v1640_v60 = vrot.slane %v5379_v5, 2  ;;  %v1641_v34 = vrot.slane %v5379_v5, 4  ;;  %v1642_v17 = vrot.slane %v5379_v5, 6 }
 0x17b   : > { %1951 = vst [vmem:[#allocation1 + $0x2] ss:$4 sm:$0xff] %v1611_v53  ;;  %v3360_v53 = vmul.f32 %v5222_v27, %v5368_v51  ;;  %v1619_v62 = vrot.slane %v5389_v14, 2  ;;  %v1620_v25 = vrot.slane %v5389_v14, 4  ;;  %v3155_v32 = vrot.slane %v3056_v7, 2 }
 0x17c   : > { %v1948_v19 = vld.sshfl [vmem:[#allocation1 + $0x20] sm:$0xff pattern:$0x73625140]  ;;  %1952 = vst [vmem:[#allocation1 + $0x3] ss:$4 sm:$0xff] %v1612_v54  ;;  %v3907_v48 = vmin.f32 %v3875_v9, 6.0  ;;  %v3154_v54 = vsel %vm2599_vm7, %v3152_v10, %v3153_v11  ;;  %v3601_v46 = vmul.f32 %v5270_v45, %v5368_v51  ;;  %v3602_v47 = vmul.f32 %v5270_v45, %v5373_v29 }
 0x17d   : > { %1953 = vst [vmem:[#allocation1 + $0x20] ss:$4 sm:$0xff] %v5307_v30  ;;  %v5407_v37 = vsel %vm1839_vm5, %v1948_v19, 0.0  ;;  %v3261_v33 = vadd.f32 %v3154_v54, %v3020_v2  ;;  %v3458_v63 = vrot.slane %v3360_v53, 1  ;;  %v3459_v55 = vrot.slane %v3361_v6, 1 }
 0x17e   : > { %1954 = vst [vmem:[#allocation1 + $0x21] ss:$4 sm:$0xff] %v1613_v43  ;;  %v3938_v31 = vpack.c.bf16 %v3907_v48, %v3906_v58  ;;  %v3362_v36 = vmul.f32 %v5222_v27, %v5407_v37  ;;  %v3156_v43 = vsel %vm2599_vm7, %v3153_v11, %v3155_v32  ;;  %v3603_v3 = vmul.f32 %v5270_v45, %v5407_v37  ;;  %v1408_v54 = vpop.f32.mrf.mxu2 }
 0x17f   : > { %1955 = vst [vmem:[#allocation1 + $0x22] ss:$4 sm:$0xff] %v1614_v42  ;;  %v3326_v58 = vadd.f32 %v3294_v39, %v3261_v33  ;;  %v3262_v42 = vadd.f32 %v3156_v43, %v3021_v35  ;;  %v3460_v4 = vsel %vm2357_vm6, %v3458_v63, %v3459_v55  ;;  %v3699_v7 = vrot.slane %v3601_v46, 2 }
 0x180   : > { %1956 = vst [vmem:[#allocation1 + $0x23] ss:$4 sm:$0xff] %v1615_v57  ;;  %4030 = vmatmul.bf16.vlgmr.msra.gmra.mxu1 %v3938_v31  ;;  %v3461_v2 = vrot.slane %v3362_v36, 1  ;;  %v3700_v9 = vrot.slane %v3602_v47, 2  ;;  %v3702_v48 = vrot.slane %v3603_v3, 2  ;;  %v1389_v30 = vadd.f32 %v5131_v15, %v1388_v49 }
 0x181   : > { %v3567_v19 = vadd.f32 %v3460_v4, %v3326_v58  ;;  %v1621_v53 = vrot.slane %v5389_v14, 6  ;;  %v3327_v11 = vadd.f32 %v3295_v21, %v3262_v42  ;;  %v1407_v6 = vadd.f32 %v5131_v15, %v1406_v18  ;;  %v1391_v46 = vpop.f32.mrf.mxu0 }
 0x182   : > { %v3462_v10 = vsel %vm2357_vm6, %v3459_v55, %v3461_v2  ;;  %v3701_v39 = vsel %vm2599_vm7, %v3699_v7, %v3700_v9  ;;  %v1473_v31 = vmax.f32 %v1389_v30, 0.0  ;;  %v1409_v32 = vadd.f32 %v5131_v15, %v1408_v54 }
 0x183   : > { %v1957_v57 = vld.sshfl [vmem:[#allocation1] sm:$0xff pattern:$0x73625140]  ;;  %v3808_v35 = vadd.f32 %v3701_v39, %v3567_v19  ;;  %v5435_v33 = vmul.f32 %v5161_v0, %v5282_v1  ;;  %v3568_v36 = vadd.f32 %v3462_v10, %v3327_v11  ;;  %v3703_v49 = vsel %vm2599_vm7, %v3700_v9, %v3702_v48 }
 0x184   : > { %1959 = vst [vmem:[#allocation1] ss:$4 sm:$0xff] %v5355_v26  ;;  %v1480_v63 = vmax.f32 %v1407_v6, 0.0  ;;  %v5440_v21 = vsel %vm1780_vm4, %v1957_v57, 0.0  ;;  %v5443_v55 = vmin.f32 %v1473_v31, 6.0  ;;  %v1481_v47 = vmax.f32 %v1409_v32, 0.0 }
 0x185   : > { %v3844_v18 = vadd.f32 %v5338_v59, %v3808_v35  ;;  %v2233_v43 = vmul.f32 %v5161_v0, %v5294_v13  ;;  %v3809_v2 = vadd.f32 %v3703_v49, %v3568_v36  ;;  %v1392_v42 = vadd.f32 %v5131_v15, %v1391_v46 }
 0x186   : > { %v5449_v3 = vmin.f32 %v1480_v63, 6.0  ;;  %v2267_v4 = vmul.f32 %v5154_v56, %v5282_v1  ;;  %v1622_v9 = vrot.slane %v5443_v55, 2  ;;  %v1623_v10 = vrot.slane %v5443_v55, 4  ;;  %v1411_v63 = vpop.f32.mrf.mxu2 }
 0x187   : > { %v5447_v58 = vld.sshfl [vmem:[#allocation1 + $0x20] sm:$0xff pattern:$0x73625140]  ;;  %v3876_v7 = vmax.f32 %v3844_v18, 0.0  ;;  %v2268_v19 = vmul.f32 %v5154_v56, %v5294_v13  ;;  %v3845_v48 = vadd.f32 %v5338_v59, %v3809_v2  ;;  %v1624_v30 = vrot.slane %v5443_v55, 6 }
 0x188   : > { %1961 = vst [vmem:[#allocation1 + $0x20] ss:$4 sm:$0xff] %v1616_v40  ;;  %v1643_v57 = vrot.slane %v5449_v3, 2  ;;  %v1644_v11 = vrot.slane %v5449_v3, 4  ;;  %v1645_v39 = vrot.slane %v5449_v3, 6  ;;  %v1474_v6 = vmax.f32 %v1392_v42, 0.0 }
 0x189   : > { %1962 = vst [vmem:[#allocation1 + $0x21] ss:$4 sm:$0xff] %v1617_v44  ;;  %v3908_v40 = vmin.f32 %v3876_v7, 6.0  ;;  %v5469_v54 = vmin.f32 %v1481_v47, 6.0  ;;  %v3877_v44 = vmax.f32 %v3845_v48, 0.0  ;;  %v2269_v31 = vmul.f32 %v5154_v56, %v5324_v50  ;;  %v1393_v42 = vpop.f32.mrf.mxu0 }
 0x18a   : > { %1963 = vst [vmem:[#allocation1 + $0x22] ss:$4 sm:$0xff] %v1618_v52  ;;  %v2509_v32 = vmul.f32 %v5158_v61, %v5282_v1  ;;  %v2510_v26 = vmul.f32 %v5158_v61, %v5294_v13  ;;  %v5480_v52 = vmin.f32 %v1474_v6, 6.0  ;;  %v2511_v18 = vmul.f32 %v5158_v61, %v5324_v50 }
 0x18b   : > { %v1960_v35 = vld.sshfl [vmem:[#allocation1] sm:$0xff pattern:$0x73625140]  ;;  %1964 = vst [vmem:[#allocation1 + $0x23] ss:$4 sm:$0xff] %v5389_v14  ;;  %v3909_v1 = vmin.f32 %v3877_v44, 6.0  ;;  %v1412_v13 = vadd.f32 %v5131_v15, %v1411_v63  ;;  %v1394_v14 = vadd.f32 %v5131_v15, %v1393_v42 }
 0x18c   : > { %1966 = vst [vmem:[#allocation1] ss:$4 sm:$0xff] %v1619_v62  ;;  %v5492_v62 = vsel %vm1839_vm5, %v1960_v35, 0.0  ;;  %v1625_v47 = vrot.slane %v5480_v52, 2  ;;  %v1626_v2 = vrot.slane %v5480_v52, 4  ;;  %v2368_v7 = vrot.slane %v2267_v4, 1 }
 0x18d   : > { %1967 = vst [vmem:[#allocation1 + $0x1] ss:$4 sm:$0xff] %v1620_v25  ;;  %v2369_v50 = vrot.slane %v2268_v19, 1  ;;  %v3939_v48 = vpack.c.bf16 %v3909_v1, %v3908_v40  ;;  %v1482_v25 = vmax.f32 %v1412_v13, 0.0  ;;  %v2371_v6 = vrot.slane %v2269_v31, 1 }
 0x18e   : > { %1968 = vst [vmem:[#allocation1 + $0x2] ss:$4 sm:$0xff] %v1621_v53  ;;  %v2610_v63 = vrot.slane %v2509_v32, 2  ;;  %v2611_v35 = vrot.slane %v2510_v26, 2  ;;  %v2613_v46 = vrot.slane %v2511_v18, 2  ;;  %v1475_v53 = vmax.f32 %v1394_v14, 0.0 }
 0x18f   : > { %1969 = vst [vmem:[#allocation1 + $0x3] ss:$4 sm:$0xff] %v5443_v55  ;;  %v2370_v44 = vsel %vm2357_vm6, %v2368_v7, %v2369_v50  ;;  %v5499_v49 = vmin.f32 %v1482_v25, 6.0  ;;  %v2372_v36 = vsel %vm2357_vm6, %v2369_v50, %v2371_v6  ;;  %v1627_v40 = vrot.slane %v5480_v52, 6 }
 0x190   : > { %4035 = vmatmul.bf16.gmra.mxu1 %v3939_v48  ;;  %v2474_v4 = vadd.f32 %v2370_v44, %v5435_v33  ;;  %v2475_v1 = vadd.f32 %v2372_v36, %v2233_v43  ;;  %v2612_v31 = vsel %vm2599_vm7, %v2610_v63, %v2611_v35  ;;  %v2749_v32 = vmul.f32 %v5190_v22, %v5368_v51 }
 0x191   : > { %v5509_v26 = vmin.f32 %v1475_v53, 6.0  ;;  %v2614_v42 = vsel %vm2599_vm7, %v2611_v35, %v2613_v46  ;;  %v2750_v50 = vmul.f32 %v5190_v22, %v5373_v29  ;;  %v2816_v43 = vmul.f32 %v5193_v23, %v5368_v51  ;;  %v1396_v35 = vpop.f32.mrf.mxu0 }
 0x192   : > { %v5503_v19 = vld.sshfl [vmem:[#allocation1 + $0x20] sm:$0xff pattern:$0x73625140]  ;;  %v2716_v33 = vadd.f32 %v2612_v31, %v2474_v4  ;;  %v2717_v7 = vadd.f32 %v2614_v42, %v2475_v1  ;;  %v2817_v14 = vmul.f32 %v5193_v23, %v5373_v29  ;;  %v2818_v44 = vmul.f32 %v5193_v23, %v5407_v37 }
 0x193   : > { %1970 = vst [vmem:[#allocation1 + $0x20] ss:$4 sm:$0xff] %v1622_v9  ;;  %v1628_v36 = vrot.slane %v5509_v26, 2  ;;  %v1629_v9 = vrot.slane %v5509_v26, 4  ;;  %v2916_v63 = vrot.slane %v2816_v43, 1  ;;  %v3057_v4 = vmul.f32 %v5196_v24, %v5368_v51 }
 0x194   : > { %v2781_v46 = vadd.f32 %v2749_v32, %v2716_v33  ;;  %v2782_v6 = vadd.f32 %v2750_v50, %v2717_v7  ;;  %v2917_v53 = vrot.slane %v2817_v14, 1  ;;  %v3058_v1 = vmul.f32 %v5196_v24, %v5373_v29 }
 0x195   : > { %v3059_v31 = vmul.f32 %v5196_v24, %v5407_v37  ;;  %v2919_v32 = vrot.slane %v2818_v44, 1  ;;  %v3296_v42 = vmul.f32 %v5218_v41, %v5440_v21  ;;  %v3363_v33 = vmul.f32 %v5222_v27, %v5440_v21 }
 0x196   : > { %v5523_v25 = vld.sshfl [vmem:[#allocation1] sm:$0xff pattern:$0x73625140]  ;;  %v2918_v7 = vsel %vm2357_vm6, %v2916_v63, %v2917_v53  ;;  %v3157_v50 = vrot.slane %v3057_v4, 2  ;;  %v3158_v43 = vrot.slane %v3058_v1, 2  ;;  %v3364_v44 = vmul.f32 %v5222_v27, %v5447_v58 }
 0x197   : > { %1973 = vst [vmem:[#allocation1] ss:$4 sm:$0xff] %v1623_v10  ;;  %v3297_v10 = vmul.f32 %v5218_v41, %v5447_v58  ;;  %v3160_v14 = vrot.slane %v3059_v31, 2  ;;  %v2920_v55 = vsel %vm2357_vm6, %v2917_v53, %v2919_v32  ;;  %v3365_v13 = vmul.f32 %v5222_v27, %v5492_v62 }
 0x198   : > { %1974 = vst [vmem:[#allocation1 + $0x1] ss:$4 sm:$0xff] %v1624_v30  ;;  %v3022_v30 = vadd.f32 %v2918_v7, %v2781_v46  ;;  %v3023_v18 = vadd.f32 %v2920_v55, %v2782_v6  ;;  %v3159_v63 = vsel %vm2599_vm7, %v3157_v50, %v3158_v43  ;;  %v3463_v1 = vrot.slane %v3363_v33, 1 }
 0x199   : > { %1975 = vst [vmem:[#allocation1 + $0x2] ss:$4 sm:$0xff] %v5480_v52  ;;  %v3161_v4 = vsel %vm2599_vm7, %v3158_v43, %v3160_v14  ;;  %v3464_v31 = vrot.slane %v3364_v44, 1  ;;  %v3466_v53 = vrot.slane %v3365_v13, 1  ;;  %v3604_v46 = vmul.f32 %v5270_v45, %v5440_v21  ;;  %v1398_v50 = vpop.f32.mrf.mxu0 }
 0x19a   : > { %v5545_v48 = vld.sshfl [vmem:[#allocation1 + $0x20] sm:$0xff pattern:$0x73625140]  ;;  %1976 = vst [vmem:[#allocation1 + $0x3] ss:$4 sm:$0xff] %v1625_v47  ;;  %v3263_v47 = vadd.f32 %v3159_v63, %v3022_v30  ;;  %v3264_v32 = vadd.f32 %v3161_v4, %v3023_v18  ;;  %v3605_v52 = vmul.f32 %v5270_v45, %v5447_v58  ;;  %v1397_v6 = vadd.f32 %v5131_v15, %v1396_v35  ;;  %v1413_v30 = vpop.f32.mrf.mxu2 }
 0x19b   : > { %1977 = vst [vmem:[#allocation1 + $0x20] ss:$4 sm:$0xff] %v1626_v2  ;;  %v3606_v2 = vmul.f32 %v5270_v45, %v5492_v62  ;;  %v3467_v13 = vsel %vm2357_vm6, %v3464_v31, %v3466_v53  ;;  %v3704_v7 = vrot.slane %v3604_v46, 2  ;;  %v1630_v44 = vrot.slane %v5509_v26, 6 }
 0x19c   : > { %1978 = vst [vmem:[#allocation1 + $0x21] ss:$4 sm:$0xff] %v1627_v40  ;;  %v3328_v33 = vadd.f32 %v3296_v42, %v3263_v47  ;;  %v3465_v40 = vsel %vm2357_vm6, %v3463_v1, %v3464_v31  ;;  %v3329_v43 = vadd.f32 %v3297_v10, %v3264_v32  ;;  %v3705_v14 = vrot.slane %v3605_v52, 2 }
 0x19d   : > { %1979 = vst [vmem:[#allocation1 + $0x22] ss:$4 sm:$0xff] %v5509_v26  ;;  %v3707_v55 = vrot.slane %v3606_v2, 2  ;;  %v1476_v18 = vmax.f32 %v1397_v6, 0.0  ;;  %v1414_v4 = vadd.f32 %v5131_v15, %v1413_v30  ;;  %v1399_v35 = vadd.f32 %v5131_v15, %v1398_v50 }
 0x19e   : > { %1980 = vst [vmem:[#allocation1 + $0x23] ss:$4 sm:$0xff] %v1628_v36  ;;  %v3569_v63 = vadd.f32 %v3465_v40, %v3328_v33  ;;  %v3570_v42 = vadd.f32 %v3467_v13, %v3329_v43  ;;  %v3706_v1 = vsel %vm2599_vm7, %v3704_v7, %v3705_v14  ;;  %v2234_v10 = vmul.f32 %v5161_v0, %v5368_v51 }
 0x19f   : > { %v1517_v47 = vmin.f32 %v1476_v18, 6.0  ;;  %v3708_v31 = vsel %vm2599_vm7, %v3705_v14, %v3707_v55  ;;  %v1483_v46 = vmax.f32 %v1414_v4, 0.0  ;;  %v1477_v32 = vmax.f32 %v1399_v35, 0.0 }
 0x1a0   : > { %v3810_v53 = vadd.f32 %v3706_v1, %v3569_v63  ;;  %v3811_v52 = vadd.f32 %v3708_v31, %v3570_v42  ;;  %v2235_v6 = vmul.f32 %v5161_v0, %v5373_v29  ;;  %v2271_v43 = vmul.f32 %v5154_v56, %v5373_v29 }
 0x1a1   : > { %v5569_v36 = vld.sshfl [vmem:[#allocation1] sm:$0xff pattern:$0x73625140]  ;;  %v1631_v2 = vrot.slane %v1517_v47, 2  ;;  %v1632_v15 = vrot.slane %v1517_v47, 4  ;;  %v1633_v40 = vrot.slane %v1517_v47, 6  ;;  %v2272_v14 = vmul.f32 %v5154_v56, %v5407_v37 }
 0x1a2   : > { %1983 = vst [vmem:[#allocation1] ss:$4 sm:$0xff] %v1629_v9  ;;  %v3846_v33 = vadd.f32 %v5338_v59, %v3810_v53  ;;  %v5580_v13 = vmin.f32 %v1483_v46, 6.0  ;;  %v1518_v7 = vmin.f32 %v1477_v32, 6.0  ;;  %v3847_v26 = vadd.f32 %v5338_v59, %v3811_v52 }
 0x1a3   : > { %v2270_v9 = vmul.f32 %v5154_v56, %v5368_v51  ;;  %v5596_v63 = vsel %vm1780_vm4, %v5503_v19, 0.0  ;;  %v2376_v46 = vrot.slane %v2272_v14, 1  ;;  %v2513_v19 = vmul.f32 %v5158_v61, %v5373_v29 }
 0x1a4   : > { %v3878_v55 = vmax.f32 %v3846_v33, 0.0  ;;  %v1652_v18 = vrot.slane %v5580_v13, 2  ;;  %v1653_v30 = vrot.slane %v5580_v13, 4  ;;  %v3879_v4 = vmax.f32 %v3847_v26, 0.0 }
 0x1a5   : > { %v5582_v50 = vld.sshfl [vmem:[#allocation1 + $0x20] sm:$0xff pattern:$0x73625140]  ;;  %v1654_v35 = vrot.slane %v5580_v13, 6  ;;  %v1634_v42 = vrot.slane %v1518_v7, 2  ;;  %v1635_v1 = vrot.slane %v1518_v7, 4  ;;  %v2512_v33 = vmul.f32 %v5158_v61, %v5368_v51 }
 0x1a6   : > { %1985 = vst [vmem:[#allocation1 + $0x20] ss:$4 sm:$0xff] %v1630_v44  ;;  %v3910_v31 = vmin.f32 %v3878_v55, 6.0  ;;  %v2373_v53 = vrot.slane %v2270_v9, 1  ;;  %v2374_v44 = vrot.slane %v2271_v43, 1  ;;  %v3911_v52 = vmin.f32 %v3879_v4, 6.0 }
 0x1a7   : > { %1986 = vst [vmem:[#allocation1 + $0x21] ss:$4 sm:$0xff] %v1517_v47  ;;  %v2514_v47 = vmul.f32 %v5158_v61, %v5407_v37  ;;  %v2751_v9 = vmul.f32 %v5190_v22, %v5440_v21  ;;  %v2615_v55 = vrot.slane %v2512_v33, 2  ;;  %v2616_v29 = vrot.slane %v2513_v19, 2 }
 0x1a8   : > { %1987 = vst [vmem:[#allocation1 + $0x22] ss:$4 sm:$0xff] %v1631_v2  ;;  %v2375_v26 = vsel %vm2357_vm6, %v2373_v53, %v2374_v44  ;;  %v2377_v2 = vsel %vm2357_vm6, %v2374_v44, %v2376_v46  ;;  %v3940_v43 = vpack.c.bf16 %v3911_v52, %v3910_v31  ;;  %v2819_v37 = vmul.f32 %v5193_v23, %v5440_v21 }
 0x1a9   : > { %v5599_v32 = vld.sshfl [vmem:[#allocation1] sm:$0xff pattern:$0x73625140]  ;;  %1988 = vst [vmem:[#allocation1 + $0x23] ss:$4 sm:$0xff] %v1632_v15  ;;  %v2752_v15 = vmul.f32 %v5190_v22, %v5447_v58  ;;  %v2476_v51 = vadd.f32 %v2375_v26, %v2234_v10  ;;  %v2477_v14 = vadd.f32 %v2377_v2, %v2235_v6  ;;  %v2618_v4 = vrot.slane %v2514_v47, 2 }
 0x1aa   : > { %1990 = vst [vmem:[#allocation1] ss:$4 sm:$0xff] %v1633_v40  ;;  %v2820_v40 = vmul.f32 %v5193_v23, %v5447_v58  ;;  %4040 = vmatmul.bf16.gmra.mxu1 %v3940_v43  ;;  %v1636_v53 = vrot.slane %v1518_v7, 6  ;;  %v2821_v44 = vmul.f32 %v5193_v23, %v5492_v62  ;;  %v3060_v10 = vmul.f32 %v5196_v24, %v5440_v21 }
 0x1ab   : > { %1991 = vst [vmem:[#allocation1 + $0x1] ss:$4 sm:$0xff] %v1518_v7  ;;  %v3061_v6 = vmul.f32 %v5196_v24, %v5447_v58  ;;  %v2619_v31 = vsel %vm2599_vm7, %v2616_v29, %v2618_v4  ;;  %v2921_v46 = vrot.slane %v2819_v37, 1  ;;  %v3062_v7 = vmul.f32 %v5196_v24, %v5492_v62 }
 0x1ac   : > { %1992 = vst [vmem:[#allocation1 + $0x2] ss:$4 sm:$0xff] %v1634_v42  ;;  %v2617_v42 = vsel %vm2599_vm7, %v2615_v55, %v2616_v29  ;;  %v2922_v52 = vrot.slane %v2820_v40, 1  ;;  %v2719_v19 = vadd.f32 %v2619_v31, %v2477_v14  ;;  %v2924_v47 = vrot.slane %v2821_v44, 1 }
 0x1ad   : > { %1993 = vst [vmem:[#allocation1 + $0x3] ss:$4 sm:$0xff] %v1635_v1  ;;  %v2718_v33 = vadd.f32 %v2617_v42, %v2476_v51  ;;  %v5632_v26 = vsel %vm1839_vm5, %v5545_v48, 0.0  ;;  %v3162_v43 = vrot.slane %v3060_v10, 2  ;;  %v3163_v55 = vrot.slane %v3061_v6, 2 }
 0x1ae   : > { %v2923_v2 = vsel %vm2357_vm6, %v2921_v46, %v2922_v52  ;;  %v2784_v4 = vadd.f32 %v2752_v15, %v2719_v19  ;;  %v2925_v51 = vsel %vm2357_vm6, %v2922_v52, %v2924_v47  ;;  %v3165_v14 = vrot.slane %v3062_v7, 2 }
 0x1af   : > { %v2783_v29 = vadd.f32 %v2751_v9, %v2718_v33  ;;  %v3164_v37 = vsel %vm2599_vm7, %v3162_v43, %v3163_v55  ;;  %v3298_v40 = vmul.f32 %v5218_v41, %v5596_v63  ;;  %v3366_v44 = vmul.f32 %v5222_v27, %v5596_v63 }
 0x1b0   : > { %v5627_v1 = vld.sshfl [vmem:[#allocation1 + $0x20] sm:$0xff pattern:$0x73625140]  ;;  %v3607_v48 = vmul.f32 %v5270_v45, %v5596_v63  ;;  %v3025_v10 = vadd.f32 %v2925_v51, %v2784_v4  ;;  %v2236_v9 = vmul.f32 %v5161_v0, %v5440_v21  ;;  %v2237_v31 = vmul.f32 %v5161_v0, %v5447_v58 }
 0x1b1   : > { %1994 = vst [vmem:[#allocation1 + $0x20] ss:$4 sm:$0xff] %v1636_v53  ;;  %v3024_v42 = vadd.f32 %v2923_v2, %v2783_v29  ;;  %v3166_v53 = vsel %vm2599_vm7, %v3163_v55, %v3165_v14  ;;  %v3468_v6 = vrot.slane %v3366_v44, 1  ;;  %v2273_v46 = vmul.f32 %v5154_v56, %v5440_v21  ;;  %v1416_v44 = vpop.f32.mrf.mxu2 }
 0x1b2   : > { %v2274_v52 = vmul.f32 %v5154_v56, %v5447_v58  ;;  %v3266_v19 = vadd.f32 %v3166_v53, %v3025_v10  ;;  %v3709_v47 = vrot.slane %v3607_v48, 2  ;;  %v2275_v7 = vmul.f32 %v5154_v56, %v5492_v62 }
 0x1b3   : > { %v3265_v33 = vadd.f32 %v3164_v37, %v3024_v42  ;;  %v3299_v2 = vmul.f32 %v5218_v41, %v5523_v25  ;;  %v3367_v43 = vmul.f32 %v5222_v27, %v5523_v25  ;;  %v3608_v55 = vmul.f32 %v5270_v45, %v5523_v25 }
 0x1b4   : > { %v5646_v15 = vld.sshfl [vmem:[#allocation1] sm:$0xff pattern:$0x73625140]  ;;  %v2515_v29 = vmul.f32 %v5158_v61, %v5440_v21  ;;  %v2378_v51 = vrot.slane %v2273_v46, 1  ;;  %v2379_v14 = vrot.slane %v2274_v52, 1  ;;  %v2381_v37 = vrot.slane %v2275_v7, 1 }
 0x1b5   : > { %1997 = vst [vmem:[#allocation1] ss:$4 sm:$0xff] %v5348_v12  ;;  %v3330_v4 = vadd.f32 %v3298_v40, %v3265_v33  ;;  %v3331_v48 = vadd.f32 %v3299_v2, %v3266_v19  ;;  %v3469_v42 = vrot.slane %v3367_v43, 1  ;;  %v2516_v10 = vmul.f32 %v5158_v61, %v5447_v58 }
 0x1b6   : > { %1998 = vst [vmem:[#allocation1 + $0x1] ss:$4 sm:$0xff] %v1637_v28  ;;  %v2517_v21 = vmul.f32 %v5158_v61, %v5492_v62  ;;  %v3368_v12 = vmul.f32 %v5222_v27, %v5632_v26  ;;  %v3710_v53 = vrot.slane %v3608_v55, 2  ;;  %v2380_v62 = vsel %vm2357_vm6, %v2378_v51, %v2379_v14 }
 0x1b7   : > { %1999 = vst [vmem:[#allocation1 + $0x2] ss:$4 sm:$0xff] %v1638_v20  ;;  %v5681_v20 = vld [vmem:[%s7031_s2] ss:$0 sm:$0xff]  ;;  %v3470_v58 = vsel %vm2357_vm6, %v3468_v6, %v3469_v42  ;;  %v2382_v46 = vsel %vm2357_vm6, %v2379_v14, %v2381_v37  ;;  %v2753_v52 = vmul.f32 %v5190_v22, %v5596_v63  ;;  %v2478_v2 = vadd.f32 %v2380_v62, %v2236_v9 }
 0x1b8   : > { %v5669_v28 = vld.sshfl [vmem:[#allocation1 + $0x20] sm:$0xff pattern:$0x73625140]  ;;  %2000 = vst [vmem:[#allocation1 + $0x3] ss:$4 sm:$0xff] %v1639_v38  ;;  %v1417_v40 = vadd.f32 %v5681_v20, %v1416_v44  ;;  %v3609_v38 = vmul.f32 %v5270_v45, %v5632_v26  ;;  %v3471_v19 = vrot.slane %v3368_v12, 1  ;;  %v3571_v7 = vadd.f32 %v3470_v58, %v3330_v4 }
 0x1b9   : > { %2001 = vst [vmem:[#allocation1 + $0x20] ss:$4 sm:$0xff] %v5379_v5  ;;  %v2620_v45 = vrot.slane %v2515_v29, 2  ;;  %v2621_v43 = vrot.slane %v2516_v10, 2  ;;  %v2623_v37 = vrot.slane %v2517_v21, 2  ;;  %v2754_v9 = vmul.f32 %v5190_v22, %v5523_v25  ;;  %v1418_v58 = vpop.f32.mrf.mxu2 }
 0x1ba   : > { %2002 = vst [vmem:[#allocation1 + $0x21] ss:$4 sm:$0xff] %v1640_v60  ;;  %v1484_v33 = vmax.f32 %v1417_v40, 0.0  ;;  %v3711_v60 = vsel %vm2599_vm7, %v3709_v47, %v3710_v53  ;;  %v3712_v6 = vrot.slane %v3609_v38, 2  ;;  %v3472_v51 = vsel %vm2357_vm6, %v3469_v42, %v3471_v19 }
 0x1bb   : > { %2003 = vst [vmem:[#allocation1 + $0x22] ss:$4 sm:$0xff] %v1641_v34  ;;  %v3812_v14 = vadd.f32 %v3711_v60, %v3571_v7  ;;  %v3572_v44 = vadd.f32 %v3472_v51, %v3331_v48  ;;  %v2479_v40 = vadd.f32 %v2382_v46, %v2237_v31  ;;  %v2622_v29 = vsel %vm2599_vm7, %v2620_v45, %v2621_v43 }
 0x1bc   : > { %2004 = vst [vmem:[#allocation1 + $0x23] ss:$4 sm:$0xff] %v1642_v17  ;;  %v5700_v55 = vmin.f32 %v1484_v33, 6.0  ;;  %v3713_v34 = vsel %vm2599_vm7, %v3710_v53, %v3712_v6  ;;  %v5714_v48 = vsel %vm1780_vm4, %v5569_v36, 0.0  ;;  %v2624_v31 = vsel %vm2599_vm7, %v2621_v43, %v2623_v37 }
 0x1bd   : > { %v3848_v47 = vadd.f32 %v5338_v59, %v3812_v14  ;;  %v3813_v42 = vadd.f32 %v3713_v34, %v3572_v44  ;;  %v2720_v21 = vadd.f32 %v2622_v29, %v2478_v2  ;;  %v2822_v12 = vmul.f32 %v5193_v23, %v5596_v63 }
 0x1be   : > { %v1655_v5 = vrot.slane %v5700_v55, 2  ;;  %v1656_v17 = vrot.slane %v5700_v55, 4  ;;  %v1657_v4 = vrot.slane %v5700_v55, 6  ;;  %v2823_v38 = vmul.f32 %v5193_v23, %v5523_v25 }
 0x1bf   : > { %v3880_v10 = vmax.f32 %v3848_v47, 0.0  ;;  %v3849_v53 = vadd.f32 %v5338_v59, %v3813_v42  ;;  %v2721_v62 = vadd.f32 %v2624_v31, %v2479_v40  ;;  %v2824_v46 = vmul.f32 %v5193_v23, %v5632_v26 }
 0x1c0   : > { %v3063_v36 = vmul.f32 %v5196_v24, %v5596_v63  ;;  %v1419_v7 = vadd.f32 %v5681_v20, %v1418_v58  ;;  %v2785_v45 = vadd.f32 %v2753_v52, %v2720_v21  ;;  %v2926_v60 = vrot.slane %v2822_v12, 1 }
 0x1c1   : > { %v3912_v19 = vmin.f32 %v3880_v10, 6.0  ;;  %v3881_v6 = vmax.f32 %v3849_v53, 0.0  ;;  %v2927_v2 = vrot.slane %v2823_v38, 1  ;;  %v2929_v43 = vrot.slane %v2824_v46, 1 }
 0x1c2   : > { %v3064_v51 = vmul.f32 %v5196_v24, %v5523_v25  ;;  %v1485_v14 = vmax.f32 %v1419_v7, 0.0  ;;  %v2786_v37 = vadd.f32 %v2754_v9, %v2721_v62  ;;  %v3065_v44 = vmul.f32 %v5196_v24, %v5632_v26  ;;  %v5766_v7 = vld [vmem:[%s7032_s3 + $0x8] ss:$0 sm:$0xff] }
 0x1c3   : > { %v5726_v33 = vld.sshfl [vmem:[#allocation1 + $0x20] sm:$0xff pattern:$0x73625140]  ;;  %v3167_v34 = vrot.slane %v3063_v36, 2  ;;  %v3913_v52 = vmin.f32 %v3881_v6, 6.0  ;;  %v2930_v40 = vsel %vm2357_vm6, %v2927_v2, %v2929_v43  ;;  %v5747_v10 = vsel %vm1839_vm5, %v5599_v32, 0.0  ;;  %v1421_v43 = vpop.f32.mrf.mxu2 }
 0x1c4   : > { %2009 = vst [vmem:[#allocation1 + $0x20] ss:$4 sm:$0xff] %v1643_v57  ;;  %v2928_v57 = vsel %vm2357_vm6, %v2926_v60, %v2927_v2  ;;  %v3168_v29 = vrot.slane %v3064_v51, 2  ;;  %v5742_v47 = vmin.f32 %v1485_v14, 6.0  ;;  %v3027_v42 = vadd.f32 %v2930_v40, %v2786_v37 }
 0x1c5   : > { %2010 = vst [vmem:[#allocation1 + $0x21] ss:$4 sm:$0xff] %v1644_v11  ;;  %v3026_v11 = vadd.f32 %v2928_v57, %v2785_v45  ;;  %v3170_v9 = vrot.slane %v3065_v44, 2  ;;  %v3941_v31 = vpack.c.bf16 %v3913_v52, %v3912_v19  ;;  %v3300_v21 = vmul.f32 %v5218_v41, %v5714_v48 }
 0x1c6   : > { %2011 = vst [vmem:[#allocation1 + $0x22] ss:$4 sm:$0xff] %v1645_v39  ;;  %v3169_v39 = vsel %vm2599_vm7, %v3167_v34, %v3168_v29  ;;  %v1658_v12 = vrot.slane %v5742_v47, 2  ;;  %v1659_v38 = vrot.slane %v5742_v47, 4  ;;  %v3301_v58 = vmul.f32 %v5218_v41, %v5582_v50 }
 0x1c7   : > { %2012 = vst [vmem:[#allocation1 + $0x23] ss:$4 sm:$0xff] %v5469_v54  ;;  %v3171_v53 = vsel %vm2599_vm7, %v3168_v29, %v3170_v9  ;;  %4045 = vmatmul.bf16.gmra.mxu1 %v3941_v31  ;;  %v3267_v62 = vadd.f32 %v3169_v39, %v3026_v11  ;;  %v3369_v32 = vmul.f32 %v5222_v27, %v5714_v48  ;;  %v1660_v2 = vrot.slane %v5742_v47, 6 }
 0x1c8   : > { %v3268_v46 = vadd.f32 %v3171_v53, %v3027_v42  ;;  %v3370_v36 = vmul.f32 %v5222_v27, %v5582_v50  ;;  %v3371_v19 = vmul.f32 %v5222_v27, %v5747_v10  ;;  %v3610_v45 = vmul.f32 %v5766_v7, %v5714_v48 }
 0x1c9   : > { %v3611_v60 = vmul.f32 %v5766_v7, %v5582_v50  ;;  %v3612_v6 = vmul.f32 %v5766_v7, %v5747_v10  ;;  %v3332_v51 = vadd.f32 %v3300_v21, %v3267_v62  ;;  %v3473_v14 = vrot.slane %v3369_v32, 1 }
 0x1ca   : > { %v3474_v37 = vrot.slane %v3370_v36, 1  ;;  %v1422_v44 = vadd.f32 %v5681_v20, %v1421_v43  ;;  %v3333_v34 = vadd.f32 %v3301_v58, %v3268_v46  ;;  %v3476_v52 = vrot.slane %v3371_v19, 1 }
 0x1cb   : > { %v3715_v57 = vrot.slane %v3611_v60, 2  ;;  %v3714_v11 = vrot.slane %v3610_v45, 2  ;;  %v3717_v42 = vrot.slane %v3612_v6, 2  ;;  %v2238_v9 = vmul.f32 %v5161_v0, %v5596_v63 }
 0x1cc   : > { %v3475_v29 = vsel %vm2357_vm6, %v3473_v14, %v3474_v37  ;;  %v7037_v31 = vrot.slane %v5499_v49, 2  ;;  %v1486_v39 = vmax.f32 %v1422_v44, 0.0  ;;  %v3477_v21 = vsel %vm2357_vm6, %v3474_v37, %v3476_v52 }
 0x1cd   : > { %v3573_v53 = vadd.f32 %v3475_v29, %v3332_v51  ;;  %v2239_v58 = vmul.f32 %v5161_v0, %v5523_v25  ;;  %v3574_v62 = vadd.f32 %v3477_v21, %v3333_v34  ;;  %v3716_v46 = vsel %vm2599_vm7, %v3714_v11, %v3715_v57  ;;  %v1423_v11 = vpop.f32.mrf.mxu2 }
 0x1ce   : > { %v5776_v40 = vld.sshfl [vmem:[#allocation1 + $0x20] sm:$0xff pattern:$0x73625140]  ;;  %v3718_v32 = vsel %vm2599_vm7, %v3715_v57, %v3717_v42  ;;  %v2276_v36 = vmul.f32 %v5154_v56, %v5596_v63  ;;  %v5790_v19 = vmin.f32 %v1486_v39, 6.0  ;;  %v2277_v60 = vmul.f32 %v5154_v56, %v5523_v25 }
 0x1cf   : > { %2018 = vst [vmem:[#allocation1 + $0x20] ss:$4 sm:$0xff] %v7037_v31  ;;  %v3814_v45 = vadd.f32 %v3716_v46, %v3573_v53  ;;  %v2278_v6 = vmul.f32 %v5154_v56, %v5632_v26  ;;  %v3815_v43 = vadd.f32 %v3718_v32, %v3574_v62  ;;  %v5799_v51 = vsel %vm1780_vm4, %v5627_v1, 0.0 }
 0x1d0   : > { %v2518_v14 = vmul.f32 %v5158_v61, %v5596_v63  ;;  %v2519_v37 = vmul.f32 %v5158_v61, %v5523_v25  ;;  %v2383_v57 = vrot.slane %v2276_v36, 1  ;;  %v2384_v42 = vrot.slane %v2277_v60, 1 }
 0x1d1   : > { %v3850_v52 = vadd.f32 %v5338_v59, %v3814_v45  ;;  %v3851_v29 = vadd.f32 %v5338_v59, %v3815_v43  ;;  %v2386_v31 = vrot.slane %v2278_v6, 1  ;;  %v2520_v1 = vmul.f32 %v5158_v61, %v5632_v26 }
 0x1d2   : > { %v1424_v63 = vadd.f32 %v5681_v20, %v1423_v11  ;;  %v2625_v21 = vrot.slane %v2518_v14, 2  ;;  %v2626_v25 = vrot.slane %v2519_v37, 2  ;;  %v2385_v46 = vsel %vm2357_vm6, %v2383_v57, %v2384_v42 }
 0x1d3   : > { %v3882_v39 = vmax.f32 %v3850_v52, 0.0  ;;  %v3883_v62 = vmax.f32 %v3851_v29, 0.0  ;;  %v2387_v32 = vsel %vm2357_vm6, %v2384_v42, %v2386_v31  ;;  %v2628_v36 = vrot.slane %v2520_v1, 2 }
 0x1d4   : > { %v1487_v45 = vmax.f32 %v1424_v63, 0.0  ;;  %v2480_v60 = vadd.f32 %v2385_v46, %v2238_v9  ;;  %v2481_v26 = vadd.f32 %v2387_v32, %v2239_v58  ;;  %v1663_v6 = vrot.slane %v5790_v19, 6 }
 0x1d5   : > { %v3914_v59 = vmin.f32 %v3882_v39, 6.0  ;;  %v3915_v43 = vmin.f32 %v3883_v62, 6.0  ;;  %v2627_v14 = vsel %vm2599_vm7, %v2625_v21, %v2626_v25  ;;  %v2629_v37 = vsel %vm2599_vm7, %v2626_v25, %v2628_v36  ;;  %v1426_v39 = vpop.f32.mrf.mxu2 }
 0x1d6   : > { %v5812_v53 = vld.sshfl [vmem:[#allocation1 + $0x20] sm:$0xff pattern:$0x73625140]  ;;  %v5824_v52 = vmin.f32 %v1487_v45, 6.0  ;;  %v2722_v57 = vadd.f32 %v2627_v14, %v2480_v60  ;;  %v2755_v9 = vmul.f32 %v5190_v22, %v5714_v48  ;;  %v2756_v58 = vmul.f32 %v5190_v22, %v5582_v50 }
 0x1d7   : > { %2025 = vst [vmem:[#allocation1 + $0x20] ss:$4 sm:$0xff] %v1653_v30  ;;  %v2723_v30 = vadd.f32 %v2629_v37, %v2481_v26  ;;  %v2825_v29 = vmul.f32 %v5193_v23, %v5714_v48  ;;  %v2826_v11 = vmul.f32 %v5193_v23, %v5582_v50  ;;  %v5841_v1 = vsel %vm1839_vm5, %v5669_v28, 0.0 }
 0x1d8   : > { %2026 = vst [vmem:[#allocation1 + $0x21] ss:$4 sm:$0xff] %v1654_v35  ;;  %v3942_v35 = vpack.c.bf16 %v3915_v43, %v3914_v59  ;;  %v2827_v21 = vmul.f32 %v5193_v23, %v5747_v10  ;;  %v1427_v46 = vadd.f32 %v5681_v20, %v1426_v39  ;;  %v3066_v32 = vmul.f32 %v5196_v24, %v5714_v48 }
 0x1d9   : > { %2027 = vst [vmem:[#allocation1 + $0x22] ss:$4 sm:$0xff] %v5700_v55  ;;  %v2788_v63 = vadd.f32 %v2756_v58, %v2723_v30  ;;  %v2931_v25 = vrot.slane %v2825_v29, 1  ;;  %v2932_v62 = vrot.slane %v2826_v11, 1  ;;  %v3067_v36 = vmul.f32 %v5196_v24, %v5582_v50 }
 0x1da   : > { %2028 = vst [vmem:[#allocation1 + $0x23] ss:$4 sm:$0xff] %v1655_v5  ;;  %v2787_v5 = vadd.f32 %v2755_v9, %v2722_v57  ;;  %4050 = vmatmul.bf16.gmra.mxu1 %v3942_v35  ;;  %v3068_v28 = vmul.f32 %v5196_v24, %v5747_v10  ;;  %v2934_v45 = vrot.slane %v2827_v21, 1  ;;  %v3302_v60 = vmul.f32 %v5218_v41, %v5799_v51 }
 0x1db   : > { %v2933_v59 = vsel %vm2357_vm6, %v2931_v25, %v2932_v62  ;;  %v3303_v26 = vmul.f32 %v5218_v41, %v5646_v15  ;;  %v1488_v43 = vmax.f32 %v1427_v46, 0.0  ;;  %v3172_v37 = vrot.slane %v3066_v32, 2 }
 0x1dc   : > { %v3028_v14 = vadd.f32 %v2933_v59, %v2787_v5  ;;  %v3173_v57 = vrot.slane %v3067_v36, 2  ;;  %v2935_v30 = vsel %vm2357_vm6, %v2932_v62, %v2934_v45  ;;  %v3175_v9 = vrot.slane %v3068_v28, 2 }
 0x1dd   : > { %v3372_v35 = vmul.f32 %v5222_v27, %v5799_v51  ;;  %v3373_v58 = vmul.f32 %v5222_v27, %v5646_v15  ;;  %v5864_v11 = vmin.f32 %v1488_v43, 6.0  ;;  %v3029_v39 = vadd.f32 %v2935_v30, %v2788_v63 }
 0x1de   : > { %v3174_v21 = vsel %vm2599_vm7, %v3172_v37, %v3173_v57  ;;  %v3374_v5 = vmul.f32 %v5222_v27, %v5841_v1  ;;  %v3176_v25 = vsel %vm2599_vm7, %v3173_v57, %v3175_v9  ;;  %v1428_v37 = vpop.f32.mrf.mxu2  ;;  %v2005_v57 = vld.sshfl [vmem:[#allocation1] sm:$0xff pattern:$0x73625140]  ;;  %v3614_v9 = vmul.f32 %v5766_v7, %v5646_v15 }
 0x1df   : > { %v3269_v62 = vadd.f32 %v3174_v21, %v3028_v14  ;;  %v3478_v46 = vrot.slane %v3372_v35, 1  ;;  %v3479_v32 = vrot.slane %v3373_v58, 1  ;;  %v1667_v28 = vrot.slane %v5864_v11, 2  ;;  %2007 = vst [vmem:[#allocation1] ss:$4 sm:$0xff] %v5449_v3 }
 0x1e0   : > { %v1668_v63 = vrot.slane %v5864_v11, 4  ;;  %v3270_v59 = vadd.f32 %v3176_v25, %v3029_v39  ;;  %v3481_v43 = vrot.slane %v3374_v5, 1  ;;  %v3613_v14 = vmul.f32 %v5766_v7, %v5799_v51 }
 0x1e1   : > { %v5862_v29 = vld.sshfl [vmem:[#allocation1 + $0x20] sm:$0xff pattern:$0x73625140]  ;;  %v3334_v45 = vadd.f32 %v3302_v60, %v3269_v62  ;;  %v3615_v35 = vmul.f32 %v5766_v7, %v5841_v1  ;;  %v1669_v60 = vrot.slane %v5864_v11, 6  ;;  %v3720_v25 = vrot.slane %v3614_v9, 2 }
 0x1e2   : > { %2033 = vst [vmem:[#allocation1 + $0x20] ss:$4 sm:$0xff] %v1657_v4  ;;  %v3480_v4 = vsel %vm2357_vm6, %v3478_v46, %v3479_v32  ;;  %v3335_v30 = vadd.f32 %v3303_v26, %v3270_v59  ;;  %v3482_v58 = vsel %vm2357_vm6, %v3479_v32, %v3481_v43  ;;  %v3719_v21 = vrot.slane %v3613_v14, 2 }
 0x1e3   : > { %2034 = vst [vmem:[#allocation1 + $0x21] ss:$4 sm:$0xff] %v5742_v47  ;;  %v3575_v39 = vadd.f32 %v3480_v4, %v3334_v45  ;;  %v5893_v62 = vsel %vm1780_vm4, %v2005_v57, 0.0  ;;  %v2240_v46 = vmul.f32 %v5161_v0, %v5714_v48  ;;  %v2279_v59 = vmul.f32 %v5154_v56, %v5714_v48 }
 0x1e4   : > { %2035 = vst [vmem:[#allocation1 + $0x22] ss:$4 sm:$0xff] %v1658_v12  ;;  %v1429_v12 = vadd.f32 %v5681_v20, %v1428_v37  ;;  %v3576_v5 = vadd.f32 %v3482_v58, %v3335_v30  ;;  %v2280_v32 = vmul.f32 %v5154_v56, %v5582_v50  ;;  %v3721_v45 = vsel %vm2599_vm7, %v3719_v21, %v3720_v25 }
 0x1e5   : > { %2036 = vst [vmem:[#allocation1 + $0x23] ss:$4 sm:$0xff] %v1659_v38  ;;  %v3722_v38 = vrot.slane %v3615_v35, 2  ;;  %v2281_v43 = vmul.f32 %v5154_v56, %v5747_v10  ;;  %v3816_v14 = vadd.f32 %v3721_v45, %v3575_v39  ;;  %v2388_v57 = vrot.slane %v2279_v59, 1 }
 0x1e6   : > { %v1489_v26 = vmax.f32 %v1429_v12, 0.0  ;;  %v2389_v30 = vrot.slane %v2280_v32, 1  ;;  %v2241_v12 = vmul.f32 %v5161_v0, %v5582_v50  ;;  %v2521_v59 = vmul.f32 %v5158_v61, %v5714_v48 }
 0x1e7   : > { %v3723_v3 = vsel %vm2599_vm7, %v3720_v25, %v3722_v38  ;;  %v2391_v58 = vrot.slane %v2281_v43, 1  ;;  %v5916_v25 = vld [vmem:[%s7033_s4] ss:$0 sm:$0xff]  ;;  %v1431_v38 = vpop.f32.mrf.mxu2  ;;  %v7038_v42 = vrot.slane %v5469_v54, 2  ;;  %v2831_v55 = vmul.f32 %v5193_v23, %v5893_v62 }
 0x1e8   : > { %v5903_v4 = vmin.f32 %v1489_v26, 6.0  ;;  %v3817_v37 = vadd.f32 %v3723_v3, %v3576_v5  ;;  %v3852_v39 = vadd.f32 %v5916_v25, %v3816_v14  ;;  %v2390_v26 = vsel %vm2357_vm6, %v2388_v57, %v2389_v30  ;;  %v2008_v3 = vld.sshfl [vmem:[#allocation1] sm:$0xff pattern:$0x73625140] }
 0x1e9   : > { %v1432_v45 = vadd.f32 %v5681_v20, %v1431_v38  ;;  %v2392_v43 = vsel %vm2357_vm6, %v2389_v30, %v2391_v58  ;;  %v2522_v14 = vmul.f32 %v5158_v61, %v5582_v50  ;;  %v2482_v31 = vadd.f32 %v2390_v26, %v2240_v46  ;;  %2014 = vst [vmem:[#allocation1] ss:$4 sm:$0xff] %v7038_v42 }
 0x1ea   : > { %v1670_v9 = vrot.slane %v5903_v4, 2  ;;  %v1671_v35 = vrot.slane %v5903_v4, 4  ;;  %v3853_v5 = vadd.f32 %v5916_v25, %v3817_v37  ;;  %v1672_v32 = vrot.slane %v5903_v4, 6  ;;  %2017 = vst [vmem:[#allocation1 + $0x3] ss:$4 sm:$0xff] %v5499_v49 }
 0x1eb   : > { %v3884_v37 = vmax.f32 %v3852_v39, 0.0  ;;  %v2483_v57 = vadd.f32 %v2392_v43, %v2241_v12  ;;  %v1490_v48 = vmax.f32 %v1432_v45, 0.0  ;;  %v2630_v34 = vrot.slane %v2521_v59, 2 }
 0x1ec   : > { %v5911_v21 = vld.sshfl [vmem:[#allocation1 + $0x20] sm:$0xff pattern:$0x73625140]  ;;  %v3885_v36 = vmax.f32 %v3853_v5, 0.0  ;;  %v2631_v44 = vrot.slane %v2522_v14, 2  ;;  %v7039_v38 = vrot.slane %v5469_v54, 4  ;;  %v2757_v50 = vmul.f32 %v5190_v22, %v5799_v51 }
 0x1ed   : > { %2042 = vst [vmem:[#allocation1 + $0x20] ss:$4 sm:$0xff] %v1663_v6  ;;  %v2523_v6 = vmul.f32 %v5158_v61, %v5747_v10  ;;  %v3916_v30 = vmin.f32 %v3884_v37, 6.0  ;;  %v2758_v46 = vmul.f32 %v5190_v22, %v5646_v15  ;;  %v7040_v12 = vrot.slane %v5469_v54, 6 }
 0x1ee   : > { %2015 = vst [vmem:[#allocation1 + $0x1] ss:$4 sm:$0xff] %v7039_v38  ;;  %v3917_v58 = vmin.f32 %v3885_v36, 6.0  ;;  %v5942_v42 = vmin.f32 %v1490_v48, 6.0  ;;  %v2632_v10 = vsel %vm2599_vm7, %v2630_v34, %v2631_v44  ;;  %v2828_v5 = vmul.f32 %v5193_v23, %v5799_v51 }
 0x1ef   : > { %2016 = vst [vmem:[#allocation1 + $0x2] ss:$4 sm:$0xff] %v7040_v12  ;;  %v2633_v39 = vrot.slane %v2523_v6, 2  ;;  %v2724_v26 = vadd.f32 %v2632_v10, %v2482_v31  ;;  %v2829_v59 = vmul.f32 %v5193_v23, %v5646_v15  ;;  %v2830_v45 = vmul.f32 %v5193_v23, %v5841_v1 }
 0x1f0   : > { %v3943_v36 = vpack.c.bf16 %v3917_v58, %v3916_v30  ;;  %v5956_v34 = vsel %vm1839_vm5, %v2008_v3, 0.0  ;;  %v2936_v6 = vrot.slane %v2828_v5, 1  ;;  %v1433_v30 = vpop.f32.mrf.mxu2  ;;  %v3069_v12 = vmul.f32 %v5196_v24, %v5799_v51 }
 0x1f1   : > { %v2634_v14 = vsel %vm2599_vm7, %v2631_v44, %v2633_v39  ;;  %v2789_v48 = vadd.f32 %v2757_v50, %v2724_v26  ;;  %v2937_v38 = vrot.slane %v2829_v59, 1  ;;  %v2939_v58 = vrot.slane %v2830_v45, 1 }
 0x1f2   : > { %4055 = vmatmul.bf16.gmra.mxu1 %v3943_v36  ;;  %v2725_v31 = vadd.f32 %v2634_v14, %v2483_v57  ;;  %v3070_v3 = vmul.f32 %v5196_v24, %v5646_v15  ;;  %v3071_v44 = vmul.f32 %v5196_v24, %v5841_v1  ;;  %v3304_v10 = vmul.f32 %v5218_v41, %v5893_v62 }
 0x1f3   : > { %v2938_v50 = vsel %vm2357_vm6, %v2936_v6, %v2937_v38  ;;  %v3305_v39 = vmul.f32 %v5218_v41, %v5726_v33  ;;  %v2940_v5 = vsel %vm2357_vm6, %v2937_v38, %v2939_v58  ;;  %v3177_v26 = vrot.slane %v3069_v12, 2 }
 0x1f4   : > { %v5959_v37 = vld.sshfl [vmem:[#allocation1 + $0x20] sm:$0xff pattern:$0x73625140]  ;;  %v2790_v57 = vadd.f32 %v2758_v46, %v2725_v31  ;;  %v3030_v36 = vadd.f32 %v2938_v50, %v2789_v48  ;;  %v3178_v59 = vrot.slane %v3070_v3, 2  ;;  %v3180_v46 = vrot.slane %v3071_v44, 2 }
 0x1f5   : > { %2049 = vst [vmem:[#allocation1 + $0x20] ss:$4 sm:$0xff] %v5864_v11  ;;  %v3375_v45 = vmul.f32 %v5222_v27, %v5893_v62  ;;  %v3376_v14 = vmul.f32 %v5222_v27, %v5726_v33  ;;  %v3377_v48 = vmul.f32 %v5222_v27, %v5956_v34  ;;  %v3616_v6 = vmul.f32 %v5766_v7, %v5893_v62 }
 0x1f6   : > { %2050 = vst [vmem:[#allocation1 + $0x21] ss:$4 sm:$0xff] %v1667_v28  ;;  %v3031_v28 = vadd.f32 %v2940_v5, %v2790_v57  ;;  %v5984_v31 = vld.sshfl [vmem:[#allocation1] sm:$0xff pattern:$0x73625140]  ;;  %v3617_v11 = vmul.f32 %v5766_v7, %v5726_v33  ;;  %v3181_v38 = vsel %vm2599_vm7, %v3178_v59, %v3180_v46  ;;  %v7042_v44 = vrot.slane %v5499_v49, 6 }
 0x1f7   : > { %2051 = vst [vmem:[#allocation1 + $0x22] ss:$4 sm:$0xff] %v1668_v63  ;;  %v3179_v63 = vsel %vm2599_vm7, %v3177_v26, %v3178_v59  ;;  %v3483_v12 = vrot.slane %v3375_v45, 1  ;;  %v3484_v3 = vrot.slane %v3376_v14, 1  ;;  %v3486_v50 = vrot.slane %v3377_v48, 1 }
 0x1f8   : > { %2052 = vst [vmem:[#allocation1 + $0x23] ss:$4 sm:$0xff] %v1669_v60  ;;  %v7041_v60 = vrot.slane %v5499_v49, 4  ;;  %v3271_v58 = vadd.f32 %v3179_v63, %v3030_v36  ;;  %v3272_v57 = vadd.f32 %v3181_v38, %v3031_v28  ;;  %v3618_v5 = vmul.f32 %v5766_v7, %v5956_v34  ;;  %v1436_v36 = vpop.f32.mrf.mxu2 }
 0x1f9   : > { %2022 = vst [vmem:[#allocation1 + $0x1] ss:$4 sm:$0xff] %v7042_v44  ;;  %v3724_v26 = vrot.slane %v3616_v6, 2  ;;  %v3485_v54 = vsel %vm2357_vm6, %v3483_v12, %v3484_v3  ;;  %v1434_v59 = vadd.f32 %v5681_v20, %v1433_v30  ;;  %v3487_v28 = vsel %vm2357_vm6, %v3484_v3, %v3486_v50 }
 0x1fa   : > { %2021 = vst [vmem:[#allocation1] ss:$4 sm:$0xff] %v7041_v60  ;;  %v3336_v43 = vadd.f32 %v3304_v10, %v3271_v58  ;;  %v3725_v60 = vrot.slane %v3617_v11, 2  ;;  %v3337_v49 = vadd.f32 %v3305_v39, %v3272_v57  ;;  %v3727_v46 = vrot.slane %v3618_v5, 2 }
 0x1fb   : > { %2023 = vst [vmem:[#allocation1 + $0x2] ss:$4 sm:$0xff] %v5580_v13  ;;  %v1437_v45 = vadd.f32 %v5681_v20, %v1436_v36  ;;  %v1675_v14 = vrot.slane %v5942_v42, 6  ;;  %v1491_v48 = vmax.f32 %v1434_v59, 0.0  ;;  %v6015_v13 = vsel %vm1780_vm4, %v5776_v40, 0.0 }
 0x1fc   : > { %2024 = vst [vmem:[#allocation1 + $0x3] ss:$4 sm:$0xff] %v1652_v18  ;;  %v3577_v63 = vadd.f32 %v3485_v54, %v3336_v43  ;;  %v3726_v10 = vsel %vm2599_vm7, %v3724_v26, %v3725_v60  ;;  %v3578_v11 = vadd.f32 %v3487_v28, %v3337_v49  ;;  %v3728_v30 = vsel %vm2599_vm7, %v3725_v60, %v3727_v46 }
 0x1fd   : > { %v1492_v38 = vmax.f32 %v1437_v45, 0.0  ;;  %v6019_v39 = vmin.f32 %v1491_v48, 6.0  ;;  %v6024_v54 = vsel %vm1839_vm5, %v5812_v53, 0.0  ;;  %v2242_v43 = vmul.f32 %v5161_v0, %v5799_v51 }
 0x1fe   : > { %v3818_v18 = vadd.f32 %v3726_v10, %v3577_v63  ;;  %v3819_v58 = vadd.f32 %v3728_v30, %v3578_v11  ;;  %v2283_v12 = vmul.f32 %v5154_v56, %v5646_v15  ;;  %v2284_v60 = vmul.f32 %v5154_v56, %v5841_v1 }
 0x1ff   : > { %v6009_v6 = vld.sshfl [vmem:[#allocation1 + $0x20] sm:$0xff pattern:$0x73625140]  ;;  %v6030_v40 = vmin.f32 %v1492_v38, 6.0  ;;  %v1676_v3 = vrot.slane %v6019_v39, 2  ;;  %v1677_v44 = vrot.slane %v6019_v39, 4  ;;  %v2524_v46 = vmul.f32 %v5158_v61, %v5799_v51 }
 0x200   : > { %2057 = vst [vmem:[#allocation1 + $0x20] ss:$4 sm:$0xff] %v1670_v9  ;;  %v2282_v9 = vmul.f32 %v5154_v56, %v5799_v51  ;;  %v3854_v53 = vadd.f32 %v5916_v25, %v3818_v18  ;;  %v3855_v57 = vadd.f32 %v5916_v25, %v3819_v58  ;;  %v1678_v50 = vrot.slane %v6019_v39, 6 }
 0x201   : > { %2058 = vst [vmem:[#allocation1 + $0x21] ss:$4 sm:$0xff] %v1671_v35  ;;  %v2243_v35 = vmul.f32 %v5161_v0, %v5646_v15  ;;  %v1679_v5 = vrot.slane %v6030_v40, 2  ;;  %v1680_v26 = vrot.slane %v6030_v40, 4  ;;  %v2394_v36 = vrot.slane %v2283_v12, 1 }
 0x202   : > { %2059 = vst [vmem:[#allocation1 + $0x22] ss:$4 sm:$0xff] %v1672_v32  ;;  %v3886_v32 = vmax.f32 %v3854_v53, 0.0  ;;  %v2393_v59 = vrot.slane %v2282_v9, 1  ;;  %v3887_v28 = vmax.f32 %v3855_v57, 0.0  ;;  %v2525_v45 = vmul.f32 %v5158_v61, %v5646_v15 }
 0x203   : > { %2060 = vst [vmem:[#allocation1 + $0x23] ss:$4 sm:$0xff] %v5942_v42  ;;  %v6050_v49 = vld.sshfl [vmem:[#allocation1] sm:$0xff pattern:$0x73625140]  ;;  %v2526_v63 = vmul.f32 %v5158_v61, %v5841_v1  ;;  %v2396_v11 = vrot.slane %v2284_v60, 1  ;;  %v2759_v30 = vmul.f32 %v5190_v22, %v5893_v62  ;;  %v2760_v1 = vmul.f32 %v5190_v22, %v5726_v33 }
 0x204   : > { %2031 = vst [vmem:[#allocation1] ss:$4 sm:$0xff] %v1656_v17  ;;  %v3918_v10 = vmin.f32 %v3886_v32, 6.0  ;;  %v2395_v48 = vsel %vm2357_vm6, %v2393_v59, %v2394_v36  ;;  %v3919_v38 = vmin.f32 %v3887_v28, 6.0  ;;  %v2635_v58 = vrot.slane %v2524_v46, 2 }
 0x205   : > { %v2484_v18 = vadd.f32 %v2395_v48, %v2242_v43  ;;  %v2636_v51 = vrot.slane %v2525_v45, 2  ;;  %v2397_v9 = vsel %vm2357_vm6, %v2394_v36, %v2396_v11  ;;  %v2638_v15 = vrot.slane %v2526_v63, 2  ;;  %v1438_v45 = vpop.f32.mrf.mxu2 }
 0x206   : > { %v3944_v17 = vpack.c.bf16 %v3919_v38, %v3918_v10  ;;  %v2485_v12 = vadd.f32 %v2397_v9, %v2243_v35  ;;  %v2832_v57 = vmul.f32 %v5193_v23, %v5726_v33  ;;  %v2833_v60 = vmul.f32 %v5193_v23, %v5956_v34  ;;  %v4031_v38 = vpop.f32.mrf.mxu1 }
 0x207   : > { %v2637_v53 = vsel %vm2599_vm7, %v2635_v58, %v2636_v51  ;;  %v2639_v43 = vsel %vm2599_vm7, %v2636_v51, %v2638_v15  ;;  %v2941_v59 = vrot.slane %v2831_v55, 1  ;;  %v3072_v46 = vmul.f32 %v5196_v24, %v5893_v62 }
 0x208   : > { %v2726_v32 = vadd.f32 %v2637_v53, %v2484_v18  ;;  %4060 = vmatmul.bf16.gmra.mxu1 %v3944_v17  ;;  %v2727_v36 = vadd.f32 %v2639_v43, %v2485_v12  ;;  %v2942_v28 = vrot.slane %v2832_v57, 1  ;;  %v3073_v35 = vmul.f32 %v5196_v24, %v5726_v33 }
 0x209   : > { %v2944_v10 = vrot.slane %v2833_v60, 1  ;;  %v3074_v48 = vmul.f32 %v5196_v24, %v5956_v34  ;;  %v3306_v11 = vmul.f32 %v5218_v41, %v6015_v13  ;;  %v3182_v9 = vrot.slane %v3072_v46, 2 }
 0x20a   : > { %v2791_v63 = vadd.f32 %v2759_v30, %v2726_v32  ;;  %v2792_v58 = vadd.f32 %v2760_v1, %v2727_v36  ;;  %v2943_v51 = vsel %vm2357_vm6, %v2941_v59, %v2942_v28  ;;  %v3183_v15 = vrot.slane %v3073_v35, 2 }
 0x20b   : > { %v6082_v18 = vld.sshfl [vmem:[#allocation1] sm:$0xff pattern:$0x73625140]  ;;  %v2945_v30 = vsel %vm2357_vm6, %v2942_v28, %v2944_v10  ;;  %v3185_v17 = vrot.slane %v3074_v48, 2  ;;  %v3307_v12 = vmul.f32 %v5218_v41, %v5984_v31  ;;  %v3378_v1 = vmul.f32 %v5222_v27, %v6015_v13 }
 0x20c   : > { %2038 = vst [vmem:[#allocation1] ss:$4 sm:$0xff] %v1660_v2  ;;  %v3032_v55 = vadd.f32 %v2943_v51, %v2791_v63  ;;  %v3033_v53 = vadd.f32 %v2945_v30, %v2792_v58  ;;  %v3184_v57 = vsel %vm2599_vm7, %v3182_v9, %v3183_v15  ;;  %v3379_v43 = vmul.f32 %v5222_v27, %v5984_v31 }
 0x20d   : > { %2039 = vst [vmem:[#allocation1 + $0x1] ss:$4 sm:$0xff] %v5790_v19  ;;  %v7043_v47 = vrot.slane %v5790_v19, 2  ;;  %v3186_v2 = vsel %vm2599_vm7, %v3183_v15, %v3185_v17  ;;  %v3380_v60 = vmul.f32 %v5222_v27, %v6024_v54  ;;  %v3619_v59 = vmul.f32 %v5766_v7, %v6015_v13 }
 0x20e   : > { %v3273_v32 = vadd.f32 %v3184_v57, %v3032_v55  ;;  %v7044_v36 = vrot.slane %v5790_v19, 4  ;;  %v3274_v28 = vadd.f32 %v3186_v2, %v3033_v53  ;;  %v3488_v46 = vrot.slane %v3378_v1, 1  ;;  %v6114_v55 = vld [vmem:[%s7035_s6] ss:$0 sm:$0xff] }
 0x20f   : > { %2040 = vst [vmem:[#allocation1 + $0x2] ss:$4 sm:$0xff] %v7043_v47  ;;  %v3489_v35 = vrot.slane %v3379_v43, 1  ;;  %v3620_v63 = vmul.f32 %v5766_v7, %v5984_v31  ;;  %v3491_v48 = vrot.slane %v3380_v60, 1  ;;  %v3621_v58 = vmul.f32 %v5766_v7, %v6024_v54  ;;  %v4746_v47 = vld [vmem:[%s4898_s14 + $0xc] sm:$0xf] }
 0x210   : > { %2041 = vst [vmem:[#allocation1 + $0x3] ss:$4 sm:$0xff] %v7044_v36  ;;  %v3338_v10 = vadd.f32 %v3306_v11, %v3273_v32  ;;  %v3729_v51 = vrot.slane %v3619_v59, 2  ;;  %v3339_v9 = vadd.f32 %v3307_v12, %v3274_v28  ;;  %v1439_v19 = vadd.f32 %v5681_v20, %v1438_v45  ;;  %v1441_v32 = vpop.f32.mrf.mxu2  ;;  %v4747_v59 = vld [vmem:[%s4898_s14 + $0x10] sm:$0xf] }
 0x211   : > { %v3490_v15 = vsel %vm2357_vm6, %v3488_v46, %v3489_v35  ;;  %v3730_v30 = vrot.slane %v3620_v63, 2  ;;  %v1681_v11 = vrot.slane %v6030_v40, 6  ;;  %v3492_v17 = vsel %vm2357_vm6, %v3489_v35, %v3491_v48  ;;  %v4033_v46 = vpop.f32.mrf.mxu1 }
 0x212   : > { %v3579_v53 = vadd.f32 %v3490_v15, %v3338_v10  ;;  %v3732_v57 = vrot.slane %v3621_v58, 2  ;;  %v3580_v1 = vadd.f32 %v3492_v17, %v3339_v9  ;;  %v1493_v43 = vmax.f32 %v1439_v19, 0.0  ;;  %v4748_v15 = vld [vmem:[%s4898_s14 + $0x14] sm:$0x1] }
 0x213   : > { %v3731_v12 = vsel %vm2599_vm7, %v3729_v51, %v3730_v30  ;;  %v4111_v2 = vunpack.c.l.bf16 %v4746_v47  ;;  %v4112_v36 = vunpack.c.l.bf16 %v4747_v59  ;;  %v1442_v28 = vadd.f32 %v5681_v20, %v1441_v32 }
 0x214   : > { %v3733_v45 = vsel %vm2599_vm7, %v3730_v30, %v3732_v57  ;;  %v3820_v60 = vadd.f32 %v3731_v12, %v3579_v53  ;;  %v6123_v35 = vmin.f32 %v1493_v43, 6.0  ;;  %v4032_v10 = vadd.f32 %v6114_v55, %v4031_v38 }
 0x215   : > { %v3821_v63 = vadd.f32 %v3733_v45, %v3580_v1  ;;  %v4207_v48 = vrot.slane %v4111_v2, 1  ;;  %v4208_v51 = vrot.slane %v4112_v36, 1  ;;  %v1494_v9 = vmax.f32 %v1442_v28, 0.0 }
 0x216   : > { %v3856_v58 = vadd.f32 %v5916_v25, %v3820_v60  ;;  %v4113_v19 = vunpack.c.l.bf16 %v4748_v15  ;;  %v1682_v17 = vrot.slane %v6123_v35, 2  ;;  %v1683_v20 = vrot.slane %v6123_v35, 4 }
 0x217   : > { %v3857_v30 = vadd.f32 %v5916_v25, %v3821_v63  ;;  %v4034_v53 = vadd.f32 %v6114_v55, %v4033_v46  ;;  %v4209_v1 = vsel %vm2357_vm6, %v4207_v48, %v4208_v51  ;;  %v6133_v38 = vmin.f32 %v1494_v9, 6.0 }
 0x218   : > { %v3888_v57 = vmax.f32 %v3856_v58, 0.0  ;;  %v4210_v12 = vrot.slane %v4113_v19, 1  ;;  %v1684_v47 = vrot.slane %v6123_v35, 6  ;;  %v4319_v2 = vadd.f32 %v4209_v1, %v4032_v10  ;;  %v6154_v10 = vld.sshfl [vmem:[#allocation1] sm:$0xff pattern:$0x73625140] }
 0x219   : > { %v3889_v43 = vmax.f32 %v3857_v30, 0.0  ;;  %v6139_v32 = vsel %vm1780_vm4, %v6050_v49, 0.0  ;;  %v6147_v36 = vsel %vm1839_vm5, %v6082_v18, 0.0  ;;  %v2244_v63 = vmul.f32 %v5161_v0, %v5893_v62  ;;  %2045 = vst [vmem:[#allocation1] ss:$4 sm:$0xff] %v5824_v52 }
 0x21a   : > { %v3920_v45 = vmin.f32 %v3888_v57, 6.0  ;;  %v4211_v46 = vsel %vm2357_vm6, %v4208_v51, %v4210_v12  ;;  %v2245_v49 = vmul.f32 %v5161_v0, %v5726_v33  ;;  %v2285_v58 = vmul.f32 %v5154_v56, %v5893_v62 }
 0x21b   : > { %v3921_v28 = vmin.f32 %v3889_v43, 6.0  ;;  %v4320_v48 = vadd.f32 %v4211_v46, %v4034_v53  ;;  %v2286_v9 = vmul.f32 %v5154_v56, %v5726_v33  ;;  %v2287_v18 = vmul.f32 %v5154_v56, %v5956_v34 }
 0x21c   : > { %v2527_v15 = vmul.f32 %v5158_v61, %v5893_v62  ;;  %v2528_v19 = vmul.f32 %v5158_v61, %v5726_v33  ;;  %v2529_v30 = vmul.f32 %v5158_v61, %v5956_v34  ;;  %v7045_v53 = vrot.slane %v5824_v52, 2 }
 0x21d   : > { %v3945_v51 = vpack.c.bf16 %v3921_v28, %v3920_v45  ;;  %v4598_v57 = vpack.c.bf16 %v4320_v48, %v4319_v2  ;;  %v2398_v1 = vrot.slane %v2285_v58, 1  ;;  %v2399_v12 = vrot.slane %v2286_v9, 1 }
 0x21e   : > { %2046 = vst [vmem:[#allocation1 + $0x1] ss:$4 sm:$0xff] %v7045_v53  ;;  %v2401_v43 = vrot.slane %v2287_v18, 1  ;;  %v7046_v45 = vrot.slane %v5824_v52, 4  ;;  %v2640_v28 = vrot.slane %v2527_v15, 2  ;;  %v2641_v46 = vrot.slane %v2528_v19, 2 }
 0x21f   : > { %4065 = vmatmul.bf16.gmra.mxu1 %v3945_v51  ;;  %v2643_v62 = vrot.slane %v2529_v30, 2  ;;  %v2761_v33 = vmul.f32 %v5190_v22, %v6015_v13  ;;  %v7047_v59 = vrot.slane %v5824_v52, 6  ;;  %4599 = vst [vmem:[%s6166_s23] sm:$0xff] %v4598_v57   ;;  %v2400_v34 = vsel %vm2357_vm6, %v2398_v1, %v2399_v12  ;;  %v1443_v1 = vpop.f32.mrf.mxu2 }
 0x220   : > { %2047 = vst [vmem:[#allocation1 + $0x2] ss:$4 sm:$0xff] %v7046_v45  ;;  %v2402_v2 = vsel %vm2357_vm6, %v2399_v12, %v2401_v43  ;;  %v2762_v48 = vmul.f32 %v5190_v22, %v5984_v31  ;;  %v2834_v58 = vmul.f32 %v5193_v23, %v6015_v13  ;;  %v2486_v9 = vadd.f32 %v2400_v34, %v2244_v63  ;;  %v4036_v12 = vpop.f32.mrf.mxu1 }
 0x221   : > { %2048 = vst [vmem:[#allocation1 + $0x3] ss:$4 sm:$0xff] %v7047_v59  ;;  %v2487_v18 = vadd.f32 %v2402_v2, %v2245_v49  ;;  %v2642_v51 = vsel %vm2599_vm7, %v2640_v28, %v2641_v46  ;;  %v2644_v15 = vsel %vm2599_vm7, %v2641_v46, %v2643_v62  ;;  %v2835_v52 = vmul.f32 %v5193_v23, %v5984_v31 }
 0x222   : > { %v2836_v59 = vmul.f32 %v5193_v23, %v6024_v54  ;;  %v2946_v19 = vrot.slane %v2834_v58, 1  ;;  %v3075_v30 = vmul.f32 %v5196_v24, %v6015_v13  ;;  %v2728_v53 = vadd.f32 %v2642_v51, %v2486_v9 }
 0x223   : > { %v2729_v57 = vadd.f32 %v2644_v15, %v2487_v18  ;;  %v3076_v63 = vmul.f32 %v5196_v24, %v5984_v31  ;;  %v3077_v49 = vmul.f32 %v5196_v24, %v6024_v54  ;;  %v2947_v43 = vrot.slane %v2835_v52, 1 }
 0x224   : > { %v2949_v45 = vrot.slane %v2836_v59, 1  ;;  %v3187_v28 = vrot.slane %v3075_v30, 2  ;;  %v3308_v46 = vmul.f32 %v5218_v41, %v6139_v32  ;;  %v2793_v62 = vadd.f32 %v2761_v33, %v2728_v53 }
 0x225   : > { %v2794_v34 = vadd.f32 %v2762_v48, %v2729_v57  ;;  %v3188_v2 = vrot.slane %v3076_v63, 2  ;;  %v3190_v58 = vrot.slane %v3077_v49, 2  ;;  %v2948_v9 = vsel %vm2357_vm6, %v2946_v19, %v2947_v43 }
 0x226   : > { %v2950_v18 = vsel %vm2357_vm6, %v2947_v43, %v2949_v45  ;;  %v3309_v51 = vmul.f32 %v5218_v41, %v5862_v29  ;;  %v3381_v15 = vmul.f32 %v5222_v27, %v6139_v32  ;;  %v3034_v52 = vadd.f32 %v2948_v9, %v2793_v62 }
 0x227   : > { %v3035_v59 = vadd.f32 %v2950_v18, %v2794_v34  ;;  %v3189_v30 = vsel %vm2599_vm7, %v3187_v28, %v3188_v2  ;;  %v3191_v60 = vsel %vm2599_vm7, %v3188_v2, %v3190_v58  ;;  %v3382_v33 = vmul.f32 %v5222_v27, %v5862_v29  ;;  %v6224_v34 = vld [vmem:[%s7031_s2] ss:$0 sm:$0xff] }
 0x228   : > { %v3383_v48 = vmul.f32 %v5222_v27, %v6147_v36  ;;  %v3493_v19 = vrot.slane %v3381_v15, 1  ;;  %v3622_v53 = vmul.f32 %v5766_v7, %v6139_v32  ;;  %v3275_v57 = vadd.f32 %v3189_v30, %v3034_v52 }
 0x229   : > { %v3276_v63 = vadd.f32 %v3191_v60, %v3035_v59  ;;  %v3623_v49 = vmul.f32 %v5766_v7, %v5862_v29  ;;  %v3624_v43 = vmul.f32 %v5766_v7, %v6147_v36  ;;  %v3494_v45 = vrot.slane %v3382_v33, 1 }
 0x22a   : > { %v3496_v28 = vrot.slane %v3383_v48, 1  ;;  %v3734_v62 = vrot.slane %v3622_v53, 2  ;;  %v1444_v2 = vadd.f32 %v6224_v34, %v1443_v1  ;;  %v3340_v58 = vadd.f32 %v3308_v46, %v3275_v57  ;;  %v1446_v53 = vpop.f32.mrf.mxu2  ;;  %v4038_v46 = vpop.f32.mrf.mxu1  ;;  %v4750_v57 = vld [vmem:[%s4898_s14 + $0x18] sm:$0xf] }
 0x22b   : > { %v3341_v9 = vadd.f32 %v3309_v51, %v3276_v63  ;;  %v3735_v60 = vrot.slane %v3623_v49, 2  ;;  %v3737_v18 = vrot.slane %v3624_v43, 2  ;;  %v3495_v7 = vsel %vm2357_vm6, %v3493_v19, %v3494_v45  ;;  %v4751_v49 = vld [vmem:[%s4898_s14 + $0x1c] sm:$0xf] }
 0x22c   : > { %v3497_v52 = vsel %vm2357_vm6, %v3494_v45, %v3496_v28  ;;  %v1495_v59 = vmax.f32 %v1444_v2, 0.0  ;;  %v3581_v30 = vadd.f32 %v3495_v7, %v3340_v58  ;;  %v4114_v63 = vunpack.c.l.bf16 %v4750_v57  ;;  %v4752_v2 = vld [vmem:[%s4898_s14 + $0x20] sm:$0x1] }
 0x22d   : > { %v3582_v33 = vadd.f32 %v3497_v52, %v3341_v9  ;;  %v3736_v48 = vsel %vm2599_vm7, %v3734_v62, %v3735_v60  ;;  %v3738_v1 = vsel %vm2599_vm7, %v3735_v60, %v3737_v18  ;;  %v4115_v43 = vunpack.c.l.bf16 %v4751_v49 }
 0x22e   : > { %v6232_v51 = vmin.f32 %v1495_v59, 6.0  ;;  %v1447_v19 = vadd.f32 %v6224_v34, %v1446_v53  ;;  %v3822_v15 = vadd.f32 %v3736_v48, %v3581_v30  ;;  %v4037_v28 = vadd.f32 %v6114_v55, %v4036_v12 }
 0x22f   : > { %v3823_v45 = vadd.f32 %v3738_v1, %v3582_v33  ;;  %v4116_v58 = vunpack.c.l.bf16 %v4752_v2  ;;  %v4212_v60 = vrot.slane %v4114_v63, 1  ;;  %v4039_v18 = vadd.f32 %v6114_v55, %v4038_v46  ;;  %v6258_v63 = vld.sshfl [vmem:[#allocation1] sm:$0xff pattern:$0x73625140] }
 0x230   : > { %v1688_v62 = vrot.slane %v6232_v51, 2  ;;  %v1689_v9 = vrot.slane %v6232_v51, 4  ;;  %v3858_v7 = vadd.f32 %v5916_v25, %v3822_v15  ;;  %v4213_v59 = vrot.slane %v4115_v43, 1  ;;  %2055 = vst [vmem:[#allocation1] ss:$4 sm:$0xff] %v5903_v4 }
 0x231   : > { %v3859_v52 = vadd.f32 %v5916_v25, %v3823_v45  ;;  %v1496_v57 = vmax.f32 %v1447_v19, 0.0  ;;  %v1690_v30 = vrot.slane %v6232_v51, 6  ;;  %v4215_v33 = vrot.slane %v4116_v58, 1 }
 0x232   : > { %v6248_v12 = vsel %vm1780_vm4, %v5911_v21, 0.0  ;;  %v6253_v48 = vsel %vm1839_vm5, %v5959_v37, 0.0  ;;  %v3890_v1 = vmax.f32 %v3858_v7, 0.0  ;;  %v4214_v15 = vsel %vm2357_vm6, %v4212_v60, %v4213_v59 }
 0x233   : > { %v3891_v53 = vmax.f32 %v3859_v52, 0.0  ;;  %v6256_v46 = vmin.f32 %v1496_v57, 6.0  ;;  %v4321_v49 = vadd.f32 %v4214_v15, %v4037_v28  ;;  %v4216_v43 = vsel %vm2357_vm6, %v4213_v59, %v4215_v33 }
 0x234   : > { %v2246_v21 = vmul.f32 %v5161_v0, %v6015_v13  ;;  %v2288_v19 = vmul.f32 %v5154_v56, %v6015_v13  ;;  %v3922_v37 = vmin.f32 %v3890_v1, 6.0  ;;  %v2247_v58 = vmul.f32 %v5161_v0, %v5984_v31 }
 0x235   : > { %v3923_v45 = vmin.f32 %v3891_v53, 6.0  ;;  %v4322_v28 = vadd.f32 %v4216_v43, %v4039_v18  ;;  %v2289_v7 = vmul.f32 %v5154_v56, %v5984_v31  ;;  %v2290_v52 = vmul.f32 %v5154_v56, %v6024_v54 }
 0x236   : > { %v2403_v57 = vrot.slane %v2288_v19, 1  ;;  %v2530_v4 = vmul.f32 %v5158_v61, %v6015_v13  ;;  %v2531_v33 = vmul.f32 %v5158_v61, %v5984_v31  ;;  %v2532_v18 = vmul.f32 %v5158_v61, %v6024_v54 }
 0x237   : > { %v3946_v59 = vpack.c.bf16 %v3923_v45, %v3922_v37  ;;  %v4603_v1 = vpack.c.bf16 %v4322_v28, %v4321_v49  ;;  %v2404_v53 = vrot.slane %v2289_v7, 1  ;;  %v2406_v15 = vrot.slane %v2290_v52, 1  ;;  %v2056_v52 = vld.sshfl [vmem:[#allocation1] sm:$0xff pattern:$0x73625140] }
 0x238   : > { %v2645_v43 = vrot.slane %v2530_v4, 2  ;;  %v2646_v60 = vrot.slane %v2531_v33, 2  ;;  %v2763_v2 = vmul.f32 %v5190_v22, %v6139_v32  ;;  %v2764_v19 = vmul.f32 %v5190_v22, %v5862_v29  ;;  %2064 = vst [vmem:[#allocation1 + $0x2] ss:$4 sm:$0xff] %v1675_v14 }
 0x239   : > { %4070 = vmatmul.bf16.gmra.mxu1 %v3946_v59  ;;  %4675 = vst [vmem:[%s6166_s23 + $0x8] sm:$0xff] %v4603_v1   ;;  %v2405_v13 = vsel %vm2357_vm6, %v2403_v57, %v2404_v53  ;;  %v2407_v31 = vsel %vm2357_vm6, %v2404_v53, %v2406_v15  ;;  %v2648_v49 = vrot.slane %v2532_v18, 2  ;;  %v2837_v37 = vmul.f32 %v5193_v23, %v6139_v32 }
 0x23a   : > { %v2488_v45 = vadd.f32 %v2405_v13, %v2246_v21  ;;  %v2489_v54 = vadd.f32 %v2407_v31, %v2247_v58  ;;  %v2647_v28 = vsel %vm2599_vm7, %v2645_v43, %v2646_v60  ;;  %v2838_v7 = vmul.f32 %v5193_v23, %v5862_v29  ;;  %2065 = vst [vmem:[#allocation1 + $0x3] ss:$4 sm:$0xff] %v6019_v39 }
 0x23b   : > { %v2649_v59 = vsel %vm2599_vm7, %v2646_v60, %v2648_v49  ;;  %v2839_v4 = vmul.f32 %v5193_v23, %v6147_v36  ;;  %v2951_v57 = vrot.slane %v2837_v37, 1  ;;  %v3078_v33 = vmul.f32 %v5196_v24, %v6139_v32 }
 0x23c   : > { %v7048_v1 = vrot.slane %v5942_v42, 2  ;;  %v2730_v21 = vadd.f32 %v2647_v28, %v2488_v45  ;;  %v2731_v58 = vadd.f32 %v2649_v59, %v2489_v54  ;;  %v2952_v53 = vrot.slane %v2838_v7, 1 }
 0x23d   : > { %v3079_v15 = vmul.f32 %v5196_v24, %v5862_v29  ;;  %v7049_v18 = vrot.slane %v5942_v42, 4  ;;  %v2954_v60 = vrot.slane %v2839_v4, 1  ;;  %v3080_v43 = vmul.f32 %v5196_v24, %v6147_v36 }
 0x23e   : > { %2062 = vst [vmem:[#allocation1] ss:$4 sm:$0xff] %v7048_v1  ;;  %v3192_v13 = vrot.slane %v3078_v33, 2  ;;  %v3310_v31 = vmul.f32 %v5218_v41, %v6248_v12  ;;  %v2795_v49 = vadd.f32 %v2763_v2, %v2730_v21  ;;  %v2796_v37 = vadd.f32 %v2764_v19, %v2731_v58  ;;  %v6325_v21 = vld [vmem:[%s7032_s3 + $0x8] ss:$0 sm:$0xff] }
 0x23f   : > { %2063 = vst [vmem:[#allocation1 + $0x1] ss:$4 sm:$0xff] %v7049_v18  ;;  %v2953_v45 = vsel %vm2357_vm6, %v2951_v57, %v2952_v53  ;;  %v3193_v54 = vrot.slane %v3079_v15, 2  ;;  %v2955_v28 = vsel %vm2357_vm6, %v2952_v53, %v2954_v60  ;;  %v3195_v7 = vrot.slane %v3080_v43, 2 }
 0x240   : > { %v3311_v59 = vmul.f32 %v5218_v41, %v6154_v10  ;;  %v3384_v4 = vmul.f32 %v5222_v27, %v6248_v12  ;;  %v3036_v33 = vadd.f32 %v2953_v45, %v2795_v49  ;;  %v3037_v1 = vadd.f32 %v2955_v28, %v2796_v37 }
 0x241   : > { %v3194_v42 = vsel %vm2599_vm7, %v3192_v13, %v3193_v54  ;;  %v3385_v14 = vmul.f32 %v5222_v27, %v6154_v10  ;;  %v3196_v2 = vsel %vm2599_vm7, %v3193_v54, %v3195_v7  ;;  %v3386_v19 = vmul.f32 %v5222_v27, %v6253_v48 }
 0x242   : > { %v3498_v57 = vrot.slane %v3384_v4, 1  ;;  %v3625_v58 = vmul.f32 %v6325_v21, %v6248_v12  ;;  %v3277_v53 = vadd.f32 %v3194_v42, %v3036_v33  ;;  %v3278_v15 = vadd.f32 %v3196_v2, %v3037_v1 }
 0x243   : > { %v3499_v18 = vrot.slane %v3385_v14, 1  ;;  %v3626_v60 = vmul.f32 %v6325_v21, %v6154_v10  ;;  %v3501_v43 = vrot.slane %v3386_v19, 1  ;;  %v3627_v13 = vmul.f32 %v6325_v21, %v6253_v48 }
 0x244   : > { %v3739_v49 = vrot.slane %v3625_v58, 2  ;;  %v6336_v37 = vsel %vm1780_vm4, %v6258_v63, 0.0  ;;  %v3342_v45 = vadd.f32 %v3310_v31, %v3277_v53  ;;  %v3343_v54 = vadd.f32 %v3311_v59, %v3278_v15  ;;  %v6349_v59 = vld.sshfl [vmem:[#allocation1 + $0x20] sm:$0xff pattern:$0x73625140] }
 0x245   : > { %v3500_v28 = vsel %vm2357_vm6, %v3498_v57, %v3499_v18  ;;  %v3740_v7 = vrot.slane %v3626_v60, 2  ;;  %v3502_v4 = vsel %vm2357_vm6, %v3499_v18, %v3501_v43  ;;  %v3742_v33 = vrot.slane %v3627_v13, 2  ;;  %2066 = vst [vmem:[#allocation1 + $0x20] ss:$4 sm:$0xff] %v1676_v3 }
 0x246   : > { %v6342_v1 = vsel %vm1839_vm5, %v2056_v52, 0.0  ;;  %v2248_v42 = vmul.f32 %v5161_v0, %v6139_v32  ;;  %v3583_v14 = vadd.f32 %v3500_v28, %v3342_v45  ;;  %v3584_v2 = vadd.f32 %v3502_v4, %v3343_v54  ;;  %v6351_v19 = vld.sshfl [vmem:[#allocation1] sm:$0xff pattern:$0x73625140] }
 0x247   : > { %v3741_v63 = vsel %vm2599_vm7, %v3739_v49, %v3740_v7  ;;  %v2249_v31 = vmul.f32 %v5161_v0, %v5862_v29  ;;  %v3743_v57 = vsel %vm2599_vm7, %v3740_v7, %v3742_v33  ;;  %v2291_v52 = vmul.f32 %v5154_v56, %v6139_v32  ;;  %2069 = vst [vmem:[#allocation1] ss:$4 sm:$0xff] %v1677_v44 }
 0x248   : > { %v2292_v58 = vmul.f32 %v5154_v56, %v5862_v29  ;;  %v2293_v53 = vmul.f32 %v5154_v56, %v6147_v36  ;;  %v3824_v15 = vadd.f32 %v3741_v63, %v3583_v14  ;;  %v3825_v18 = vadd.f32 %v3743_v57, %v3584_v2  ;;  %2070 = vst [vmem:[#allocation1 + $0x1] ss:$4 sm:$0xff] %v1678_v50 }
 0x249   : > { %v2533_v60 = vmul.f32 %v5158_v61, %v6139_v32  ;;  %v2534_v43 = vmul.f32 %v5158_v61, %v5862_v29  ;;  %v2408_v13 = vrot.slane %v2291_v52, 1  ;;  %v2535_v54 = vmul.f32 %v5158_v61, %v6147_v36  ;;  %2071 = vst [vmem:[#allocation1 + $0x2] ss:$4 sm:$0xff] %v6030_v40 }
 0x24a   : > { %v2409_v49 = vrot.slane %v2292_v58, 1  ;;  %v2411_v45 = vrot.slane %v2293_v53, 1  ;;  %v3860_v3 = vadd.f32 %v5916_v25, %v3824_v15  ;;  %v3861_v28 = vadd.f32 %v5916_v25, %v3825_v18  ;;  %2072 = vst [vmem:[#allocation1 + $0x3] ss:$4 sm:$0xff] %v1679_v5 }
 0x24b   : > { %v2650_v32 = vrot.slane %v2533_v60, 2  ;;  %v2651_v7 = vrot.slane %v2534_v43, 2  ;;  %v2653_v4 = vrot.slane %v2535_v54, 2  ;;  %v2765_v33 = vmul.f32 %v5190_v22, %v6248_v12 }
 0x24c   : > { %v2410_v29 = vsel %vm2357_vm6, %v2408_v13, %v2409_v49  ;;  %v2412_v44 = vsel %vm2357_vm6, %v2409_v49, %v2411_v45  ;;  %v3892_v39 = vmax.f32 %v3860_v3, 0.0  ;;  %v3893_v50 = vmax.f32 %v3861_v28, 0.0  ;;  %v6387_v18 = vld.sshfl [vmem:[#allocation1 + $0x20] sm:$0xff pattern:$0x73625140] }
 0x24d   : > { %v2490_v36 = vadd.f32 %v2410_v29, %v2248_v42  ;;  %v2491_v14 = vadd.f32 %v2412_v44, %v2249_v31  ;;  %v2652_v25 = vsel %vm2599_vm7, %v2650_v32, %v2651_v7  ;;  %v2654_v2 = vsel %vm2599_vm7, %v2651_v7, %v2653_v4  ;;  %2073 = vst [vmem:[#allocation1 + $0x20] ss:$4 sm:$0xff] %v1680_v26 }
 0x24e   : > { %v2766_v63 = vmul.f32 %v5190_v22, %v6154_v10  ;;  %v2840_v57 = vmul.f32 %v5193_v23, %v6248_v12  ;;  %v3924_v52 = vmin.f32 %v3892_v39, 6.0  ;;  %v3925_v58 = vmin.f32 %v3893_v50, 6.0  ;;  %2074 = vst [vmem:[#allocation1 + $0x21] ss:$4 sm:$0xff] %v1681_v11 }
 0x24f   : > { %v2732_v53 = vadd.f32 %v2652_v25, %v2490_v36  ;;  %v2733_v15 = vadd.f32 %v2654_v2, %v2491_v14  ;;  %v2841_v5 = vmul.f32 %v5193_v23, %v6154_v10  ;;  %v2842_v42 = vmul.f32 %v5193_v23, %v6253_v48  ;;  %2075 = vst [vmem:[#allocation1 + $0x22] ss:$4 sm:$0xff] %v6123_v35  ;;  %v1448_v25 = vpop.f32.mrf.mxu2 }
 0x250   : > { %v2956_v31 = vrot.slane %v2840_v57, 1  ;;  %v3081_v60 = vmul.f32 %v5196_v24, %v6248_v12  ;;  %v3947_v43 = vpack.c.bf16 %v3925_v58, %v3924_v52  ;;  %v3082_v45 = vmul.f32 %v5196_v24, %v6154_v10  ;;  %2076 = vst [vmem:[#allocation1 + $0x23] ss:$4 sm:$0xff] %v1682_v17 }
 0x251   : > { %v2797_v13 = vadd.f32 %v2765_v33, %v2732_v53  ;;  %v2798_v49 = vadd.f32 %v2766_v63, %v2733_v15  ;;  %v2957_v54 = vrot.slane %v2841_v5, 1  ;;  %v2959_v3 = vrot.slane %v2842_v42, 1  ;;  %v4041_v5 = vpop.f32.mrf.mxu1 }
 0x252   : > { %v3083_v28 = vmul.f32 %v5196_v24, %v6253_v48  ;;  %v3197_v32 = vrot.slane %v3081_v60, 2  ;;  %4075 = vmatmul.bf16.gmra.mxu1 %v3947_v43  ;;  %v3198_v7 = vrot.slane %v3082_v45, 2  ;;  %v3312_v26 = vmul.f32 %v5218_v41, %v6336_v37 }
 0x253   : > { %v3313_v29 = vmul.f32 %v5218_v41, %v6009_v6  ;;  %v3387_v40 = vmul.f32 %v5222_v27, %v6336_v37  ;;  %v2958_v11 = vsel %vm2357_vm6, %v2956_v31, %v2957_v54  ;;  %v2960_v44 = vsel %vm2357_vm6, %v2957_v54, %v2959_v3  ;;  %v1451_v3 = vpop.f32.mrf.mxu3 }
 0x254   : > { %v3200_v4 = vrot.slane %v3083_v28, 2  ;;  %v3388_v33 = vmul.f32 %v5222_v27, %v6009_v6  ;;  %v3038_v39 = vadd.f32 %v2958_v11, %v2797_v13  ;;  %v3039_v50 = vadd.f32 %v2960_v44, %v2798_v49 }
 0x255   : > { %v3199_v36 = vsel %vm2599_vm7, %v3197_v32, %v3198_v7  ;;  %v3389_v14 = vmul.f32 %v5222_v27, %v6342_v1  ;;  %v3503_v63 = vrot.slane %v3387_v40, 1  ;;  %v3628_v57 = vmul.f32 %v6325_v21, %v6336_v37  ;;  %v4754_v40 = vld [vmem:[%s4898_s14 + $0x24] sm:$0xf] }
 0x256   : > { %v3201_v2 = vsel %vm2599_vm7, %v3198_v7, %v3200_v4  ;;  %v3504_v17 = vrot.slane %v3388_v33, 1  ;;  %v3279_v52 = vadd.f32 %v3199_v36, %v3038_v39  ;;  %v3629_v15 = vmul.f32 %v6325_v21, %v6009_v6  ;;  %v4755_v39 = vld [vmem:[%s4898_s14 + $0x28] sm:$0xf] }
 0x257   : > { %v3280_v58 = vadd.f32 %v3201_v2, %v3039_v50  ;;  %v3506_v53 = vrot.slane %v3389_v14, 1  ;;  %v3630_v31 = vmul.f32 %v6325_v21, %v6342_v1  ;;  %v3744_v60 = vrot.slane %v3628_v57, 2 }
 0x258   : > { %v3505_v42 = vsel %vm2357_vm6, %v3503_v63, %v3504_v17  ;;  %v1449_v43 = vadd.f32 %v6224_v34, %v1448_v25  ;;  %v3344_v13 = vadd.f32 %v3312_v26, %v3279_v52  ;;  %v3745_v54 = vrot.slane %v3629_v15, 2  ;;  %v6450_v15 = vld [vmem:[%s7033_s4] ss:$0 sm:$0xff] }
 0x259   : > { %v3345_v49 = vadd.f32 %v3313_v29, %v3280_v58  ;;  %v3507_v45 = vsel %vm2357_vm6, %v3504_v17, %v3506_v53  ;;  %v3747_v28 = vrot.slane %v3630_v31, 2  ;;  %v4042_v7 = vadd.f32 %v6114_v55, %v4041_v5 }
 0x25a   : > { %v1497_v32 = vmax.f32 %v1449_v43, 0.0  ;;  %v4117_v11 = vunpack.c.l.bf16 %v4754_v40  ;;  %v3585_v44 = vadd.f32 %v3505_v42, %v3344_v13  ;;  %v3746_v33 = vsel %vm2599_vm7, %v3744_v60, %v3745_v54 }
 0x25b   : > { %v3586_v4 = vadd.f32 %v3507_v45, %v3345_v49  ;;  %v4118_v50 = vunpack.c.l.bf16 %v4755_v39  ;;  %v3748_v36 = vsel %vm2599_vm7, %v3745_v54, %v3747_v28  ;;  %v1452_v14 = vadd.f32 %v6224_v34, %v1451_v3  ;;  %v6468_v45 = vld.sshfl [vmem:[#allocation1] sm:$0xff pattern:$0x73625140] }
 0x25c   : > { %v6434_v26 = vmin.f32 %v1497_v32, 6.0  ;;  %v4217_v29 = vrot.slane %v4117_v11, 1  ;;  %v1693_v25 = vrot.slane %v6256_v46, 6  ;;  %v3826_v2 = vadd.f32 %v3746_v33, %v3585_v44  ;;  %2079 = vst [vmem:[#allocation1] ss:$4 sm:$0xff] %v1683_v20 }
 0x25d   : > { %v3827_v63 = vadd.f32 %v3748_v36, %v3586_v4  ;;  %v6438_v17 = vrot.slane %v4118_v50, 1  ;;  %v1498_v58 = vmax.f32 %v1452_v14, 0.0  ;;  %v6445_v53 = vsel %vm1780_vm4, %v6349_v59, 0.0 }
 0x25e   : > { %v1694_v57 = vrot.slane %v6434_v26, 2  ;;  %v1695_v52 = vrot.slane %v6434_v26, 4  ;;  %v3862_v5 = vadd.f32 %v6450_v15, %v3826_v2  ;;  %v1696_v31 = vrot.slane %v6434_v26, 6 }
 0x25f   : > { %v3863_v42 = vadd.f32 %v6450_v15, %v3827_v63  ;;  %v4219_v60 = vsel %vm2357_vm6, %v4217_v29, %v6438_v17  ;;  %v6459_v13 = vmin.f32 %v1498_v58, 6.0  ;;  %v6464_v59 = vsel %vm1839_vm5, %v6387_v18, 0.0 }
 0x260   : > { %v6457_v43 = vadd.f32 %v4219_v60, %v4042_v7  ;;  %v2250_v49 = vmul.f32 %v5161_v0, %v6248_v12  ;;  %v3894_v54 = vmax.f32 %v3862_v5, 0.0  ;;  %v2294_v28 = vmul.f32 %v5154_v56, %v6248_v12  ;;  %v6474_v7 = vld.sshfl [vmem:[#allocation1 + $0x20] sm:$0xff pattern:$0x73625140] }
 0x261   : > { %v3895_v3 = vmax.f32 %v3863_v42, 0.0  ;;  %v2295_v32 = vmul.f32 %v5154_v56, %v6154_v10  ;;  %v1697_v40 = vrot.slane %v6459_v13, 2  ;;  %v1698_v18 = vrot.slane %v6459_v13, 4  ;;  %2081 = vst [vmem:[#allocation1 + $0x20] ss:$4 sm:$0xff] %v1684_v47 }
 0x262   : > { %v2251_v11 = vmul.f32 %v5161_v0, %v6154_v10  ;;  %v2296_v44 = vmul.f32 %v5154_v56, %v6253_v48  ;;  %v3926_v4 = vmin.f32 %v3894_v54, 6.0  ;;  %v2413_v39 = vrot.slane %v2294_v28, 1  ;;  %2082 = vst [vmem:[#allocation1 + $0x21] ss:$4 sm:$0xff] %v6133_v38 }
 0x263   : > { %v3927_v33 = vmin.f32 %v3895_v3, 6.0  ;;  %v2414_v50 = vrot.slane %v2295_v32, 1  ;;  %v2536_v29 = vmul.f32 %v5158_v61, %v6248_v12  ;;  %v2537_v14 = vmul.f32 %v5158_v61, %v6154_v10 }
 0x264   : > { %v2416_v36 = vrot.slane %v2296_v44, 1  ;;  %v2538_v2 = vmul.f32 %v5158_v61, %v6253_v48  ;;  %v2767_v58 = vmul.f32 %v5190_v22, %v6336_v37  ;;  %v2768_v35 = vmul.f32 %v5190_v22, %v6009_v6 }
 0x265   : > { %v3948_v20 = vpack.c.bf16 %v3927_v33, %v3926_v4  ;;  %v2415_v63 = vsel %vm2357_vm6, %v2413_v39, %v2414_v50  ;;  %v7050_v47 = vrot.slane %v6133_v38, 2  ;;  %v2655_v5 = vrot.slane %v2536_v29, 2  ;;  %v6515_v29 = vld.sshfl [vmem:[#allocation1] sm:$0xff pattern:$0x73625140] }
 0x266   : > { %v2417_v12 = vsel %vm2357_vm6, %v2414_v50, %v2416_v36  ;;  %v2492_v10 = vadd.f32 %v2415_v63, %v2250_v49  ;;  %v2656_v42 = vrot.slane %v2537_v14, 2  ;;  %v7051_v48 = vrot.slane %v6133_v38, 4  ;;  %v4043_v36 = vpop.f32.mrf.mxu1  ;;  %2087 = vst [vmem:[#allocation1 + $0x1] ss:$4 sm:$0xff] %v6232_v51 }
 0x267   : > { %2083 = vst [vmem:[#allocation1 + $0x22] ss:$4 sm:$0xff] %v7050_v47  ;;  %4080 = vmatmul.bf16.vlgmr.msrb.gmra.mxu3 %v3948_v20  ;;  %v2493_v60 = vadd.f32 %v2417_v12, %v2251_v11  ;;  %v2658_v54 = vrot.slane %v2538_v2, 2  ;;  %v2843_v3 = vmul.f32 %v5193_v23, %v6336_v37  ;;  %v2844_v28 = vmul.f32 %v5193_v23, %v6009_v6 }
 0x268   : > { %2084 = vst [vmem:[#allocation1 + $0x23] ss:$4 sm:$0xff] %v7051_v48  ;;  %v2657_v32 = vsel %vm2599_vm7, %v2655_v5, %v2656_v42  ;;  %v2845_v44 = vmul.f32 %v5193_v23, %v6342_v1  ;;  %v3084_v49 = vmul.f32 %v5196_v24, %v6336_v37  ;;  %v3085_v4 = vmul.f32 %v5196_v24, %v6009_v6 }
 0x269   : > { %v2659_v11 = vsel %vm2599_vm7, %v2656_v42, %v2658_v54  ;;  %v2734_v33 = vadd.f32 %v2657_v32, %v2492_v10  ;;  %v2961_v39 = vrot.slane %v2843_v3, 1  ;;  %v2962_v50 = vrot.slane %v2844_v28, 1  ;;  %2088 = vst [vmem:[#allocation1 + $0x2] ss:$4 sm:$0xff] %v1688_v62 }
 0x26a   : > { %v2735_v14 = vadd.f32 %v2659_v11, %v2493_v60  ;;  %v2964_v2 = vrot.slane %v2845_v44, 1  ;;  %v3086_v20 = vmul.f32 %v5196_v24, %v6342_v1  ;;  %v3202_v63 = vrot.slane %v3084_v49, 2  ;;  %2089 = vst [vmem:[#allocation1 + $0x3] ss:$4 sm:$0xff] %v1689_v9 }
 0x26b   : > { %v7052_v47 = vrot.slane %v6133_v38, 6  ;;  %v2799_v12 = vadd.f32 %v2767_v58, %v2734_v33  ;;  %v2963_v5 = vsel %vm2357_vm6, %v2961_v39, %v2962_v50  ;;  %v3203_v48 = vrot.slane %v3085_v4, 2 }
 0x26c   : > { %v3314_v10 = vmul.f32 %v5218_v41, %v6445_v53  ;;  %v2800_v42 = vadd.f32 %v2768_v35, %v2735_v14  ;;  %v2965_v60 = vsel %vm2357_vm6, %v2962_v50, %v2964_v2  ;;  %v3205_v54 = vrot.slane %v3086_v20, 2 }
 0x26d   : > { %2086 = vst [vmem:[#allocation1] ss:$4 sm:$0xff] %v7052_v47  ;;  %v3315_v3 = vmul.f32 %v5218_v41, %v6351_v19  ;;  %v3040_v38 = vadd.f32 %v2963_v5, %v2799_v12  ;;  %v3204_v58 = vsel %vm2599_vm7, %v3202_v63, %v3203_v48  ;;  %v3390_v28 = vmul.f32 %v5222_v27, %v6445_v53 }
 0x26e   : > { %v3391_v32 = vmul.f32 %v5222_v27, %v6351_v19  ;;  %v3041_v35 = vadd.f32 %v2965_v60, %v2800_v42  ;;  %v3206_v44 = vsel %vm2599_vm7, %v3203_v48, %v3205_v54  ;;  %v3392_v49 = vmul.f32 %v5222_v27, %v6464_v59  ;;  %v4046_v5 = vpop.f32.mrf.mxu1  ;;  %v4757_v54 = vld [vmem:[%s4898_s14 + $0x2c] sm:$0x1] }
 0x26f   : > { %v3631_v62 = vmul.f32 %v6325_v21, %v6445_v53  ;;  %v3281_v4 = vadd.f32 %v3204_v58, %v3040_v38  ;;  %v3508_v11 = vrot.slane %v3390_v28, 1  ;;  %v3632_v39 = vmul.f32 %v6325_v21, %v6351_v19  ;;  %v1453_v58 = vpop.f32.mrf.mxu3 }
 0x270   : > { %v3509_v33 = vrot.slane %v3391_v32, 1  ;;  %v1699_v50 = vrot.slane %v6459_v13, 6  ;;  %v3282_v14 = vadd.f32 %v3206_v44, %v3041_v35  ;;  %v3511_v9 = vrot.slane %v3392_v49, 1  ;;  %v4758_v44 = vld [vmem:[%s4898_s14 + $0x30] sm:$0xf] }
 0x271   : > { %v3633_v2 = vmul.f32 %v6325_v21, %v6464_v59  ;;  %v3346_v20 = vadd.f32 %v3314_v10, %v3281_v4  ;;  %v3749_v47 = vrot.slane %v3631_v62, 2  ;;  %v3750_v12 = vrot.slane %v3632_v39, 2 }
 0x272   : > { %v3510_v63 = vsel %vm2357_vm6, %v3508_v11, %v3509_v33  ;;  %v3347_v48 = vadd.f32 %v3315_v3, %v3282_v14  ;;  %v3512_v42 = vsel %vm2357_vm6, %v3509_v33, %v3511_v9  ;;  %v4119_v38 = vunpack.c.l.bf16 %v4757_v54  ;;  %v4759_v11 = vld [vmem:[%s4898_s14 + $0x34] sm:$0xf] }
 0x273   : > { %v3752_v60 = vrot.slane %v3633_v2, 2  ;;  %v3587_v28 = vadd.f32 %v3510_v63, %v3346_v20  ;;  %v3751_v32 = vsel %vm2599_vm7, %v3749_v47, %v3750_v12  ;;  %v4044_v35 = vadd.f32 %v6114_v55, %v4043_v36 }
 0x274   : > { %v4120_v10 = vunpack.c.l.bf16 %v4758_v44  ;;  %v3588_v49 = vadd.f32 %v3512_v42, %v3347_v48  ;;  %v4220_v4 = vrot.slane %v4119_v38, 1  ;;  %v4047_v62 = vadd.f32 %v6114_v55, %v4046_v5  ;;  %v6579_v42 = vld.sshfl [vmem:[#allocation1 + $0x20] sm:$0xff pattern:$0x73625140] }
 0x275   : > { %v4121_v39 = vunpack.c.l.bf16 %v4759_v11  ;;  %v3753_v3 = vsel %vm2599_vm7, %v3750_v12, %v3752_v60  ;;  %v3828_v33 = vadd.f32 %v3751_v32, %v3587_v28  ;;  %v1454_v9 = vadd.f32 %v6224_v34, %v1453_v58  ;;  %v6581_v60 = vld.sshfl [vmem:[#allocation1] sm:$0xff pattern:$0x73625140]  ;;  %2090 = vst [vmem:[#allocation1 + $0x20] ss:$4 sm:$0xff] %v1690_v30 }
 0x276   : > { %v4222_v14 = vrot.slane %v4120_v10, 1  ;;  %v3829_v2 = vadd.f32 %v3753_v3, %v3588_v49  ;;  %v4221_v20 = vsel %vm2357_vm6, %v6438_v17, %v4220_v4  ;;  %v6564_v36 = vsel %vm1780_vm4, %v6468_v45, 0.0  ;;  %2093 = vst [vmem:[#allocation1] ss:$4 sm:$0xff] %v6256_v46 }
 0x277   : > { %v6559_v63 = vrot.slane %v4121_v39, 1  ;;  %v3864_v55 = vadd.f32 %v6450_v15, %v3828_v33  ;;  %v4324_v47 = vadd.f32 %v4221_v20, %v4044_v35  ;;  %v1499_v5 = vmax.f32 %v1454_v9, 0.0  ;;  %2096 = vst [vmem:[#allocation1 + $0x3] ss:$4 sm:$0xff] %v1693_v25 }
 0x278   : > { %v6570_v12 = vsel %vm1839_vm5, %v6515_v29, 0.0  ;;  %v3865_v34 = vadd.f32 %v6450_v15, %v3829_v2  ;;  %v2252_v48 = vmul.f32 %v5161_v0, %v6336_v37  ;;  %v2297_v45 = vmul.f32 %v5154_v56, %v6336_v37 }
 0x279   : > { %v4224_v17 = vsel %vm2357_vm6, %v4222_v14, %v6559_v63  ;;  %v3896_v54 = vmax.f32 %v3864_v55, 0.0  ;;  %v4608_v29 = vpack.c.bf16 %v4324_v47, %v6457_v43  ;;  %v6584_v38 = vmin.f32 %v1499_v5, 6.0 }
 0x27a   : > { %v2253_v58 = vmul.f32 %v5161_v0, %v6009_v6  ;;  %v3897_v28 = vmax.f32 %v3865_v34, 0.0  ;;  %v2298_v32 = vmul.f32 %v5154_v56, %v6009_v6  ;;  %v2299_v35 = vmul.f32 %v5154_v56, %v6342_v1 }
 0x27b   : > { %v2418_v44 = vrot.slane %v2297_v45, 1  ;;  %v3928_v10 = vmin.f32 %v3896_v54, 6.0  ;;  %4676 = vst [vmem:[%s6166_s23 + $0x10] sm:$0xff] %v4608_v29   ;;  %v6596_v43 = vadd.f32 %v4224_v17, %v4047_v62  ;;  %v1700_v49 = vrot.slane %v6584_v38, 2 }
 0x27c   : > { %v1701_v4 = vrot.slane %v6584_v38, 4  ;;  %v3929_v51 = vmin.f32 %v3897_v28, 6.0  ;;  %v2419_v30 = vrot.slane %v2298_v32, 1  ;;  %v2421_v11 = vrot.slane %v2299_v35, 1  ;;  %v4048_v28 = vpop.f32.mrf.mxu1 }
 0x27d   : > { %v2539_v39 = vmul.f32 %v5158_v61, %v6336_v37  ;;  %v7053_v3 = vrot.slane %v6256_v46, 2  ;;  %v2540_v33 = vmul.f32 %v5158_v61, %v6009_v6  ;;  %v2541_v62 = vmul.f32 %v5158_v61, %v6342_v1 }
 0x27e   : > { %v2769_v14 = vmul.f32 %v5190_v22, %v6445_v53  ;;  %v2770_v9 = vmul.f32 %v5190_v22, %v6351_v19  ;;  %v7054_v2 = vrot.slane %v6256_v46, 4  ;;  %v3949_v20 = vpack.c.bf16 %v3929_v51, %v3928_v10  ;;  %v6626_v46 = vld.sshfl [vmem:[#allocation1 + $0x20] sm:$0xff pattern:$0x73625140] }
 0x27f   : > { %2094 = vst [vmem:[#allocation1 + $0x1] ss:$4 sm:$0xff] %v7053_v3  ;;  %v2420_v37 = vsel %vm2357_vm6, %v2418_v44, %v2419_v30  ;;  %v2422_v55 = vsel %vm2357_vm6, %v2419_v30, %v2421_v11  ;;  %v2660_v47 = vrot.slane %v2539_v39, 2  ;;  %v2661_v5 = vrot.slane %v2540_v33, 2 }
 0x280   : > { %2095 = vst [vmem:[#allocation1 + $0x2] ss:$4 sm:$0xff] %v7054_v2  ;;  %v2494_v6 = vadd.f32 %v2420_v37, %v2252_v48  ;;  %v2495_v1 = vadd.f32 %v2422_v55, %v2253_v58  ;;  %v2663_v34 = vrot.slane %v2541_v62, 2  ;;  %4085 = vmatmul.bf16.gmra.mxu3 %v3949_v20  ;;  %v2846_v17 = vmul.f32 %v5193_v23, %v6445_v53 }
 0x281   : > { %v2847_v45 = vmul.f32 %v5193_v23, %v6351_v19  ;;  %v2848_v54 = vmul.f32 %v5193_v23, %v6464_v59  ;;  %v3087_v29 = vmul.f32 %v5196_v24, %v6445_v53  ;;  %v2662_v25 = vsel %vm2599_vm7, %v2660_v47, %v2661_v5  ;;  %2097 = vst [vmem:[#allocation1 + $0x20] ss:$4 sm:$0xff] %v6434_v26 }
 0x282   : > { %v2664_v48 = vsel %vm2599_vm7, %v2661_v5, %v2663_v34  ;;  %v3088_v58 = vmul.f32 %v5196_v24, %v6351_v19  ;;  %v3089_v32 = vmul.f32 %v5196_v24, %v6464_v59  ;;  %v2736_v35 = vadd.f32 %v2662_v25, %v2494_v6  ;;  %2098 = vst [vmem:[#allocation1 + $0x21] ss:$4 sm:$0xff] %v1694_v57 }
 0x283   : > { %v2737_v44 = vadd.f32 %v2664_v48, %v2495_v1  ;;  %v2966_v10 = vrot.slane %v2846_v17, 1  ;;  %v2967_v51 = vrot.slane %v2847_v45, 1  ;;  %v2969_v30 = vrot.slane %v2848_v54, 1  ;;  %2099 = vst [vmem:[#allocation1 + $0x22] ss:$4 sm:$0xff] %v1695_v52 }
 0x284   : > { %v3207_v11 = vrot.slane %v3087_v29, 2  ;;  %v3208_v39 = vrot.slane %v3088_v58, 2  ;;  %v3210_v3 = vrot.slane %v3089_v32, 2  ;;  %v2801_v33 = vadd.f32 %v2769_v14, %v2736_v35  ;;  %2100 = vst [vmem:[#allocation1 + $0x23] ss:$4 sm:$0xff] %v1696_v31 }
 0x285   : > { %v2802_v62 = vadd.f32 %v2770_v9, %v2737_v44  ;;  %v2968_v2 = vsel %vm2357_vm6, %v2966_v10, %v2967_v51  ;;  %v3316_v20 = vmul.f32 %v5218_v41, %v6564_v36  ;;  %v2970_v37 = vsel %vm2357_vm6, %v2967_v51, %v2969_v30  ;;  %v4051_v51 = vpop.f32.mrf.mxu1 }
 0x286   : > { %v3209_v57 = vsel %vm2599_vm7, %v3207_v11, %v3208_v39  ;;  %v3211_v55 = vsel %vm2599_vm7, %v3208_v39, %v3210_v3  ;;  %v3317_v47 = vmul.f32 %v5218_v41, %v6474_v7  ;;  %v3042_v52 = vadd.f32 %v2968_v2, %v2801_v33  ;;  %v6668_v39 = vld [vmem:[%s7035_s6] ss:$0 sm:$0xff]  ;;  %v4761_v33 = vld [vmem:[%s4898_s14 + $0x38] sm:$0x1] }
 0x287   : > { %v3043_v14 = vadd.f32 %v2970_v37, %v2802_v62  ;;  %v3393_v9 = vmul.f32 %v5222_v27, %v6564_v36  ;;  %v3394_v6 = vmul.f32 %v5222_v27, %v6474_v7  ;;  %v3395_v26 = vmul.f32 %v5222_v27, %v6570_v12 }
 0x288   : > { %v3634_v31 = vmul.f32 %v6325_v21, %v6564_v36  ;;  %v3635_v1 = vmul.f32 %v6325_v21, %v6474_v7  ;;  %v3636_v5 = vmul.f32 %v6325_v21, %v6570_v12  ;;  %v3283_v34 = vadd.f32 %v3209_v57, %v3042_v52  ;;  %v4762_v57 = vld [vmem:[%s4898_s14 + $0x3c] sm:$0xf] }
 0x289   : > { %v3284_v17 = vadd.f32 %v3211_v55, %v3043_v14  ;;  %v3513_v45 = vrot.slane %v3393_v9, 1  ;;  %v3514_v54 = vrot.slane %v3394_v6, 1  ;;  %v3516_v29 = vrot.slane %v3395_v26, 1  ;;  %v4763_v14 = vld [vmem:[%s4898_s14 + $0x40] sm:$0xf] }
 0x28a   : > { %v3754_v25 = vrot.slane %v3634_v31, 2  ;;  %v3755_v48 = vrot.slane %v3635_v1, 2  ;;  %v3757_v58 = vrot.slane %v3636_v5, 2  ;;  %v1702_v32 = vrot.slane %v6584_v38, 6 }
 0x28b   : > { %v3348_v35 = vadd.f32 %v3316_v20, %v3283_v34  ;;  %v3349_v44 = vadd.f32 %v3317_v47, %v3284_v17  ;;  %v3515_v10 = vsel %vm2357_vm6, %v3513_v45, %v3514_v54  ;;  %v3517_v30 = vsel %vm2357_vm6, %v3514_v54, %v3516_v29  ;;  %v6696_v45 = vld.sshfl [vmem:[#allocation1] sm:$0xff pattern:$0x73625140] }
 0x28c   : > { %v3756_v11 = vsel %vm2599_vm7, %v3754_v25, %v3755_v48  ;;  %v4049_v3 = vadd.f32 %v6668_v39, %v4048_v28  ;;  %v4122_v62 = vunpack.c.l.bf16 %v4761_v33  ;;  %v3758_v37 = vsel %vm2599_vm7, %v3755_v48, %v3757_v58  ;;  %v6702_v48 = vld.sshfl [vmem:[#allocation1 + $0x20] sm:$0xff pattern:$0x73625140]  ;;  %2103 = vst [vmem:[#allocation1] ss:$4 sm:$0xff] %v6459_v13 }
 0x28d   : > { %v3589_v2 = vadd.f32 %v3515_v10, %v3348_v35  ;;  %v3590_v20 = vadd.f32 %v3517_v30, %v3349_v44  ;;  %v4123_v55 = vunpack.c.l.bf16 %v4762_v57  ;;  %v6675_v52 = vadd.f32 %v6668_v39, %v4051_v51  ;;  %2105 = vst [vmem:[#allocation1 + $0x20] ss:$4 sm:$0xff] %v1697_v40 }
 0x28e   : > { %v4225_v47 = vrot.slane %v4122_v62, 1  ;;  %v4124_v9 = vunpack.c.l.bf16 %v4763_v14  ;;  %v6681_v6 = vsel %vm1780_vm4, %v6579_v42, 0.0  ;;  %v6686_v1 = vsel %vm1839_vm5, %v6626_v46, 0.0  ;;  %2106 = vst [vmem:[#allocation1 + $0x21] ss:$4 sm:$0xff] %v1698_v18 }
 0x28f   : > { %v3830_v28 = vadd.f32 %v3756_v11, %v3589_v2  ;;  %v3831_v26 = vadd.f32 %v3758_v37, %v3590_v20  ;;  %v4227_v31 = vrot.slane %v4123_v55, 1  ;;  %v2254_v17 = vmul.f32 %v5161_v0, %v6445_v53  ;;  %2107 = vst [vmem:[#allocation1 + $0x22] ss:$4 sm:$0xff] %v1699_v50  ;;  %v4053_v37 = vpop.f32.mrf.mxu1 }
 0x290   : > { %v4226_v5 = vsel %vm2357_vm6, %v6559_v63, %v4225_v47  ;;  %v6690_v34 = vrot.slane %v4124_v9, 1  ;;  %v2300_v42 = vmul.f32 %v5154_v56, %v6445_v53  ;;  %v2301_v46 = vmul.f32 %v5154_v56, %v6351_v19  ;;  %2108 = vst [vmem:[#allocation1 + $0x23] ss:$4 sm:$0xff] %v6584_v38 }
 0x291   : > { %v3866_v54 = vadd.f32 %v6450_v15, %v3830_v28  ;;  %v3867_v29 = vadd.f32 %v6450_v15, %v3831_v26  ;;  %v4326_v25 = vadd.f32 %v4226_v5, %v4049_v3  ;;  %v2255_v58 = vmul.f32 %v5161_v0, %v6351_v19 }
 0x292   : > { %v6707_v63 = vsel %vm2357_vm6, %v4227_v31, %v6690_v34  ;;  %v2302_v35 = vmul.f32 %v5154_v56, %v6464_v59  ;;  %v2542_v44 = vmul.f32 %v5158_v61, %v6445_v53  ;;  %v2423_v11 = vrot.slane %v2300_v42, 1 }
 0x293   : > { %v3898_v10 = vmax.f32 %v3866_v54, 0.0  ;;  %v3899_v51 = vmax.f32 %v3867_v29, 0.0  ;;  %v4613_v30 = vpack.c.bf16 %v4326_v25, %v6596_v43  ;;  %v2424_v3 = vrot.slane %v2301_v46, 1  ;;  %v2104_v54 = vld.sshfl [vmem:[#allocation1] sm:$0xff pattern:$0x73625140] }
 0x294   : > { %v2426_v33 = vrot.slane %v2302_v35, 1  ;;  %v2543_v62 = vmul.f32 %v5158_v61, %v6351_v19  ;;  %v2544_v2 = vmul.f32 %v5158_v61, %v6464_v59  ;;  %v2665_v20 = vrot.slane %v2542_v44, 2  ;;  %2110 = vst [vmem:[#allocation1] ss:$4 sm:$0xff] %v1700_v49 }
 0x295   : > { %v3930_v53 = vmin.f32 %v3898_v10, 6.0  ;;  %v3931_v40 = vmin.f32 %v3899_v51, 6.0  ;;  %4677 = vst [vmem:[%s6166_s23 + $0x18] sm:$0xff] %v4613_v30   ;;  %v2771_v43 = vmul.f32 %v5190_v22, %v6564_v36  ;;  %v2425_v18 = vsel %vm2357_vm6, %v2423_v11, %v2424_v3 }
 0x296   : > { %v2427_v57 = vsel %vm2357_vm6, %v2424_v3, %v2426_v33  ;;  %v2666_v55 = vrot.slane %v2543_v62, 2  ;;  %v2668_v19 = vrot.slane %v2544_v2, 2  ;;  %v2496_v47 = vadd.f32 %v2425_v18, %v2254_v17  ;;  %2111 = vst [vmem:[#allocation1 + $0x1] ss:$4 sm:$0xff] %v1701_v4 }
 0x297   : > { %v3950_v59 = vpack.c.bf16 %v3931_v40, %v3930_v53  ;;  %v2497_v13 = vadd.f32 %v2427_v57, %v2255_v58  ;;  %v2772_v50 = vmul.f32 %v5190_v22, %v6474_v7  ;;  %v2849_v28 = vmul.f32 %v5193_v23, %v6564_v36  ;;  %2112 = vst [vmem:[#allocation1 + $0x2] ss:$4 sm:$0xff] %v1702_v32 }
 0x298   : > { %v2667_v14 = vsel %vm2599_vm7, %v2665_v20, %v2666_v55  ;;  %v2669_v9 = vsel %vm2599_vm7, %v2666_v55, %v2668_v19  ;;  %v2850_v26 = vmul.f32 %v5193_v23, %v6474_v7  ;;  %v2851_v17 = vmul.f32 %v5193_v23, %v6570_v12  ;;  %v4056_v55 = vpop.f32.mrf.mxu1 }
 0x299   : > { %4090 = vmatmul.bf16.gmra.mxu3 %v3950_v59  ;;  %v2738_v31 = vadd.f32 %v2667_v14, %v2496_v47  ;;  %v2739_v5 = vadd.f32 %v2669_v9, %v2497_v13  ;;  %v3090_v42 = vmul.f32 %v5196_v24, %v6564_v36  ;;  %v2971_v29 = vrot.slane %v2849_v28, 1 }
 0x29a   : > { %v2972_v25 = vrot.slane %v2850_v26, 1  ;;  %v3091_v46 = vmul.f32 %v5196_v24, %v6474_v7  ;;  %v3092_v58 = vmul.f32 %v5196_v24, %v6570_v12  ;;  %v2974_v10 = vrot.slane %v2851_v17, 1 }
 0x29b   : > { %v2803_v35 = vadd.f32 %v2771_v43, %v2738_v31  ;;  %v2804_v44 = vadd.f32 %v2772_v50, %v2739_v5  ;;  %v3212_v51 = vrot.slane %v3090_v42, 2  ;;  %v3318_v33 = vmul.f32 %v5218_v41, %v6681_v6 }
 0x29c   : > { %v2973_v30 = vsel %vm2357_vm6, %v2971_v29, %v2972_v25  ;;  %v3213_v11 = vrot.slane %v3091_v46, 2  ;;  %v3215_v3 = vrot.slane %v3092_v58, 2  ;;  %v2975_v62 = vsel %vm2357_vm6, %v2972_v25, %v2974_v10  ;;  %v4764_v46 = vld [vmem:[%s4898_s14 + $0x44] sm:$0x1] }
 0x29d   : > { %v3044_v49 = vadd.f32 %v2973_v30, %v2803_v35  ;;  %v3319_v2 = vmul.f32 %v5218_v41, %v6581_v60  ;;  %v3396_v53 = vmul.f32 %v5222_v27, %v6681_v6  ;;  %v3045_v4 = vadd.f32 %v2975_v62, %v2804_v44  ;;  %v4765_v35 = vld [vmem:[%s4898_s14 + $0x48] sm:$0xf] }
 0x29e   : > { %v3214_v40 = vsel %vm2599_vm7, %v3212_v51, %v3213_v11  ;;  %v3216_v20 = vsel %vm2599_vm7, %v3213_v11, %v3215_v3  ;;  %v3397_v43 = vmul.f32 %v5222_v27, %v6581_v60  ;;  %v3398_v38 = vmul.f32 %v5222_v27, %v6686_v1  ;;  %v4766_v11 = vld [vmem:[%s4898_s14 + $0x4c] sm:$0xf] }
 0x29f   : > { %v3285_v18 = vadd.f32 %v3214_v40, %v3044_v49  ;;  %v3518_v32 = vrot.slane %v3396_v53, 1  ;;  %v3637_v57 = vmul.f32 %v6325_v21, %v6681_v6  ;;  %v3286_v19 = vadd.f32 %v3216_v20, %v3045_v4 }
 0x2a0   : > { %v3519_v59 = vrot.slane %v3397_v43, 1  ;;  %v3638_v47 = vmul.f32 %v6325_v21, %v6581_v60  ;;  %v3639_v13 = vmul.f32 %v6325_v21, %v6686_v1  ;;  %v4327_v50 = vadd.f32 %v6707_v63, %v6675_v52 }
 0x2a1   : > { %v3350_v14 = vadd.f32 %v3318_v33, %v3285_v18  ;;  %v3521_v9 = vrot.slane %v3398_v38, 1  ;;  %v3759_v28 = vrot.slane %v3637_v57, 2  ;;  %v3351_v26 = vadd.f32 %v3319_v2, %v3286_v19  ;;  %v6814_v38 = vpop.f32.mrf.mxu1 }
 0x2a2   : > { %v3520_v31 = vsel %vm2357_vm6, %v3518_v32, %v3519_v59  ;;  %v3760_v5 = vrot.slane %v3638_v47, 2  ;;  %v3762_v17 = vrot.slane %v3639_v13, 2  ;;  %v4054_v25 = vadd.f32 %v6668_v39, %v4053_v37 }
 0x2a3   : > { %v3522_v42 = vsel %vm2357_vm6, %v3519_v59, %v3521_v9  ;;  %v3591_v29 = vadd.f32 %v3520_v31, %v3350_v14  ;;  %v4125_v21 = vunpack.c.l.bf16 %v4764_v46  ;;  %v4126_v44 = vunpack.c.l.bf16 %v4765_v35 }
 0x2a4   : > { %v3592_v58 = vadd.f32 %v3522_v42, %v3351_v26  ;;  %v3761_v52 = vsel %vm2599_vm7, %v3759_v28, %v3760_v5  ;;  %v3763_v63 = vsel %vm2599_vm7, %v3760_v5, %v3762_v17  ;;  %v6784_v30 = vadd.f32 %v6668_v39, %v4056_v55 }
 0x2a5   : > { %v3832_v10 = vadd.f32 %v3761_v52, %v3591_v29  ;;  %v4230_v51 = vrot.slane %v4125_v21, 1  ;;  %v4127_v3 = vunpack.c.l.bf16 %v4766_v11  ;;  %v4232_v62 = vrot.slane %v4126_v44, 1 }
 0x2a6   : > { %v3833_v33 = vadd.f32 %v3763_v63, %v3592_v58  ;;  %v6790_v37 = vsel %vm1780_vm4, %v6696_v45, 0.0  ;;  %v6794_v49 = vsel %vm1839_vm5, %v2104_v54, 0.0  ;;  %v2256_v40 = vmul.f32 %v5161_v0, %v6564_v36 }
 0x2a7   : > { %v3868_v2 = vadd.f32 %v6450_v15, %v3832_v10  ;;  %v4231_v53 = vsel %vm2357_vm6, %v6690_v34, %v4230_v51  ;;  %v6799_v4 = vrot.slane %v4127_v3, 1  ;;  %v2303_v8 = vmul.f32 %v5154_v56, %v6564_v36 }
 0x2a8   : > { %v3869_v20 = vadd.f32 %v6450_v15, %v3833_v33  ;;  %v4328_v43 = vadd.f32 %v4231_v53, %v4054_v25  ;;  %v2304_v16 = vmul.f32 %v5154_v56, %v6474_v7  ;;  %v2257_v54 = vmul.f32 %v5161_v0, %v6474_v7 }
 0x2a9   : > { %v3900_v45 = vmax.f32 %v3868_v2, 0.0  ;;  %v2305_v34 = vmul.f32 %v5154_v56, %v6570_v12  ;;  %v2545_v18 = vmul.f32 %v5158_v61, %v6564_v36  ;;  %v4234_v55 = vsel %vm2357_vm6, %v4232_v62, %v6799_v4 }
 0x2aa   : > { %v3901_v32 = vmax.f32 %v3869_v20, 0.0  ;;  %v4618_v57 = vpack.c.bf16 %v4328_v43, %v4327_v50  ;;  %v2428_v19 = vrot.slane %v2303_v8, 1  ;;  %v2429_v47 = vrot.slane %v2304_v16, 1  ;;  %v4061_v16 = vpop.f32.mrf.mxu1 }
 0x2ab   : > { %v3932_v59 = vmin.f32 %v3900_v45, 6.0  ;;  %v2431_v13 = vrot.slane %v2305_v34, 1  ;;  %v2546_v14 = vmul.f32 %v5158_v61, %v6474_v7  ;;  %v2547_v28 = vmul.f32 %v5158_v61, %v6570_v12 }
 0x2ac   : > { %v3933_v9 = vmin.f32 %v3901_v32, 6.0  ;;  %4678 = vst [vmem:[%s6166_s23 + $0x20] sm:$0xff] %v4618_v57   ;;  %v2670_v36 = vrot.slane %v2545_v18, 2  ;;  %v2773_v26 = vmul.f32 %v5190_v22, %v6681_v6  ;;  %v2430_v50 = vsel %vm2357_vm6, %v2428_v19, %v2429_v47 }
 0x2ad   : > { %v2432_v31 = vsel %vm2357_vm6, %v2429_v47, %v2431_v13  ;;  %v2671_v5 = vrot.slane %v2546_v14, 2  ;;  %v2774_v17 = vmul.f32 %v5190_v22, %v6581_v60  ;;  %v2498_v29 = vadd.f32 %v2430_v50, %v2256_v40  ;;  %v6860_v14 = vld [vmem:[%s7032_s3 + $0x8] ss:$0 sm:$0xff] }
 0x2ae   : > { %v3951_v42 = vpack.c.bf16 %v3933_v9, %v3932_v59  ;;  %v2499_v7 = vadd.f32 %v2432_v31, %v2257_v54  ;;  %v2673_v25 = vrot.slane %v2547_v28, 2  ;;  %v2852_v12 = vmul.f32 %v5193_v23, %v6681_v6 }
 0x2af   : > { %v2672_v46 = vsel %vm2599_vm7, %v2670_v36, %v2671_v5  ;;  %v2853_v21 = vmul.f32 %v5193_v23, %v6581_v60  ;;  %v2854_v58 = vmul.f32 %v5193_v23, %v6686_v1  ;;  %v3093_v35 = vmul.f32 %v5196_v24, %v6681_v6 }
 0x2b0   : > { %4095 = vmatmul.bf16.gmra.mxu3 %v3951_v42  ;;  %v2674_v52 = vsel %vm2599_vm7, %v2671_v5, %v2673_v25  ;;  %v2740_v63 = vadd.f32 %v2672_v46, %v2498_v29  ;;  %v3094_v44 = vmul.f32 %v5196_v24, %v6581_v60  ;;  %v2976_v51 = vrot.slane %v2852_v12, 1 }
 0x2b1   : > { %v2741_v10 = vadd.f32 %v2674_v52, %v2499_v7  ;;  %v2977_v11 = vrot.slane %v2853_v21, 1  ;;  %v2979_v3 = vrot.slane %v2854_v58, 1  ;;  %v3095_v62 = vmul.f32 %v5196_v24, %v6686_v1 }
 0x2b2   : > { %v2805_v33 = vadd.f32 %v2773_v26, %v2740_v63  ;;  %v3217_v2 = vrot.slane %v3093_v35, 2  ;;  %v3218_v53 = vrot.slane %v3094_v44, 2  ;;  %v3320_v8 = vmul.f32 %v5218_v41, %v6790_v37  ;;  %v4768_v63 = vld [vmem:[%s4898_s14 + $0x50] sm:$0x1] }
 0x2b3   : > { %v2806_v40 = vadd.f32 %v2774_v17, %v2741_v10  ;;  %v2978_v20 = vsel %vm2357_vm6, %v2976_v51, %v2977_v11  ;;  %v2980_v43 = vsel %vm2357_vm6, %v2977_v11, %v2979_v3  ;;  %v3220_v34 = vrot.slane %v3095_v62, 2  ;;  %v4769_v51 = vld [vmem:[%s4898_s14 + $0x54] sm:$0xf]  ;;  %v4770_v3 = vld [vmem:[%s4898_s14 + $0x58] sm:$0xf] }
 0x2b4   : > { %v3046_v45 = vadd.f32 %v2978_v20, %v2805_v33  ;;  %v3219_v54 = vsel %vm2599_vm7, %v3217_v2, %v3218_v53  ;;  %v3321_v18 = vmul.f32 %v5218_v41, %v6702_v48  ;;  %v3399_v57 = vmul.f32 %v5222_v27, %v6790_v37 }
 0x2b5   : > { %v3047_v32 = vadd.f32 %v2980_v43, %v2806_v40  ;;  %v3400_v19 = vmul.f32 %v5222_v27, %v6702_v48  ;;  %v3401_v59 = vmul.f32 %v5222_v27, %v6794_v49  ;;  %v3221_v47 = vsel %vm2599_vm7, %v3218_v53, %v3220_v34 }
 0x2b6   : > { %v3287_v13 = vadd.f32 %v3219_v54, %v3046_v45  ;;  %v3640_v9 = vmul.f32 %v6860_v14, %v6790_v37  ;;  %v3641_v28 = vmul.f32 %v6860_v14, %v6702_v48  ;;  %v3523_v26 = vrot.slane %v3399_v57, 1 }
 0x2b7   : > { %v3288_v36 = vadd.f32 %v3221_v47, %v3047_v32  ;;  %v3524_v50 = vrot.slane %v3400_v19, 1  ;;  %v3526_v31 = vrot.slane %v3401_v59, 1  ;;  %v3642_v17 = vmul.f32 %v6860_v14, %v6794_v49 }
 0x2b8   : > { %v3352_v5 = vadd.f32 %v3320_v8, %v3287_v13  ;;  %v3764_v42 = vrot.slane %v3640_v9, 2  ;;  %v3765_v29 = vrot.slane %v3641_v28, 2  ;;  %v4329_v7 = vadd.f32 %v4234_v55, %v6784_v30  ;;  %v6883_v8 = vpop.f32.mrf.mxu1 }
 0x2b9   : > { %v3353_v25 = vadd.f32 %v3321_v18, %v3288_v36  ;;  %v3525_v46 = vsel %vm2357_vm6, %v3523_v26, %v3524_v50  ;;  %v3527_v12 = vsel %vm2357_vm6, %v3524_v50, %v3526_v31  ;;  %v3767_v52 = vrot.slane %v3642_v17, 2 }
 0x2ba   : > { %v3593_v21 = vadd.f32 %v3525_v46, %v3352_v5  ;;  %v3766_v58 = vsel %vm2599_vm7, %v3764_v42, %v3765_v29  ;;  %v4128_v35 = vunpack.c.l.bf16 %v4768_v63  ;;  %v4059_v10 = vadd.f32 %v6668_v39, %v6814_v38  ;;  %v6885_v38 = vpop.f32.mrf.mxu3 }
 0x2bb   : > { %v3594_v44 = vadd.f32 %v3527_v12, %v3353_v25  ;;  %v4129_v11 = vunpack.c.l.bf16 %v4769_v51  ;;  %v4130_v33 = vunpack.c.l.bf16 %v4770_v3  ;;  %v3768_v30 = vsel %vm2599_vm7, %v3765_v29, %v3767_v52 }
 0x2bc   : > { %v3834_v55 = vadd.f32 %v3766_v58, %v3593_v21  ;;  %v4235_v62 = vrot.slane %v4128_v35, 1  ;;  %v4062_v2 = vadd.f32 %v6668_v39, %v4061_v16  ;;  %v2258_v43 = vmul.f32 %v5161_v0, %v6681_v6 }
 0x2bd   : > { %v3835_v53 = vadd.f32 %v3768_v30, %v3594_v44  ;;  %v4237_v40 = vrot.slane %v4129_v11, 1  ;;  %v6879_v20 = vrot.slane %v4130_v33, 1  ;;  %v2306_v34 = vmul.f32 %v5154_v56, %v6681_v6 }
 0x2be   : > { %v3870_v45 = vadd.f32 %v6450_v15, %v3834_v55  ;;  %v4236_v54 = vsel %vm2357_vm6, %v6799_v4, %v4235_v62  ;;  %v2307_v16 = vmul.f32 %v5154_v56, %v6581_v60  ;;  %v2259_v57 = vmul.f32 %v5161_v0, %v6581_v60 }
 0x2bf   : > { %v3871_v18 = vadd.f32 %v6450_v15, %v3835_v53  ;;  %v4330_v32 = vadd.f32 %v4236_v54, %v4059_v10  ;;  %v2308_v19 = vmul.f32 %v5154_v56, %v6686_v1  ;;  %v4239_v4 = vsel %vm2357_vm6, %v4237_v40, %v6879_v20 }
 0x2c0   : > { %v3902_v59 = vmax.f32 %v3870_v45, 0.0  ;;  %v2433_v47 = vrot.slane %v2306_v34, 1  ;;  %v2434_v13 = vrot.slane %v2307_v16, 1  ;;  %v2548_v15 = vmul.f32 %v5158_v61, %v6681_v6 }
 0x2c1   : > { %v3903_v9 = vmax.f32 %v3871_v18, 0.0  ;;  %v4623_v28 = vpack.c.bf16 %v4330_v32, %v4329_v7  ;;  %v2436_v36 = vrot.slane %v2308_v19, 1  ;;  %v2549_v0 = vmul.f32 %v5158_v61, %v6581_v60  ;;  %v4771_v18 = vld [vmem:[%s4898_s14 + $0x5c] sm:$0x1] }
 0x2c2   : > { %v3934_v26 = vmin.f32 %v3902_v59, 6.0  ;;  %v2435_v50 = vsel %vm2357_vm6, %v2433_v47, %v2434_v13  ;;  %v2550_v56 = vmul.f32 %v5158_v61, %v6686_v1  ;;  %v2675_v42 = vrot.slane %v2548_v15, 2  ;;  %v4066_v1 = vpop.f32.mrf.mxu1  ;;  %v1458_v21 = vpop.f32.mrf.mxu3 }
 0x2c3   : > { %v3935_v31 = vmin.f32 %v3903_v9, 6.0  ;;  %4679 = vst [vmem:[%s6166_s23 + $0x28] sm:$0xff] %v4623_v28   ;;  %v2437_v5 = vsel %vm2357_vm6, %v2434_v13, %v2436_v36  ;;  %v2500_v17 = vadd.f32 %v2435_v50, %v2258_v43  ;;  %v2676_v7 = vrot.slane %v2549_v0, 2  ;;  %v4772_v13 = vld [vmem:[%s4898_s14 + $0x60] sm:$0xf] }
 0x2c4   : > { %v2501_v29 = vadd.f32 %v2437_v5, %v2259_v57  ;;  %v2678_v25 = vrot.slane %v2550_v56, 2  ;;  %v2775_v6 = vmul.f32 %v5190_v22, %v6790_v37  ;;  %v2776_v12 = vmul.f32 %v5190_v22, %v6702_v48  ;;  %v4773_v9 = vld [vmem:[%s4898_s14 + $0x64] sm:$0xf] }
 0x2c5   : > { %v3952_v46 = vpack.c.bf16 %v3935_v31, %v3934_v26  ;;  %v2855_v60 = vmul.f32 %v5193_v23, %v6790_v37  ;;  %v2856_v61 = vmul.f32 %v5193_v23, %v6702_v48  ;;  %v2677_v58 = vsel %vm2599_vm7, %v2675_v42, %v2676_v7  ;;  %v4774_v26 = vld [vmem:[%s4898_s14 + $0x68] sm:$0x1] }
 0x2c6   : > { %v2679_v52 = vsel %vm2599_vm7, %v2676_v7, %v2678_v25  ;;  %v2857_v63 = vmul.f32 %v5193_v23, %v6794_v49  ;;  %v3096_v35 = vmul.f32 %v5196_v24, %v6790_v37  ;;  %v2742_v22 = vadd.f32 %v2677_v58, %v2500_v17 }
 0x2c7   : > { %4100 = vmatmul.bf16.gmra.mxu3 %v3952_v46  ;;  %v2743_v44 = vadd.f32 %v2679_v52, %v2501_v29  ;;  %v2981_v10 = vrot.slane %v2855_v60, 1  ;;  %v2982_v51 = vrot.slane %v2856_v61, 1  ;;  %v3097_v3 = vmul.f32 %v5196_v24, %v6702_v48  ;;  %v4776_v61 = vld [vmem:[%s4898_s14 + $0x6c] sm:$0xf]  ;;  %v4777_v52 = vld [vmem:[%s4898_s14 + $0x70] sm:$0xf] }
 0x2c8   : > { %v2984_v11 = vrot.slane %v2857_v63, 1  ;;  %v3098_v33 = vmul.f32 %v5196_v24, %v6794_v49  ;;  %v3222_v30 = vrot.slane %v3096_v35, 2  ;;  %v4331_v55 = vadd.f32 %v4239_v4, %v4062_v2  ;;  %v4778_v35 = vld [vmem:[%s7033_s4] ss:$0 sm:$0xff] }
 0x2c9   : > { %v2807_v62 = vadd.f32 %v2775_v6, %v2742_v22  ;;  %v2808_v23 = vadd.f32 %v2776_v12, %v2743_v44  ;;  %v2983_v53 = vsel %vm2357_vm6, %v2981_v10, %v2982_v51  ;;  %v3223_v40 = vrot.slane %v3097_v3, 2 }
 0x2ca   : > { %v2985_v37 = vsel %vm2357_vm6, %v2982_v51, %v2984_v11  ;;  %v3225_v43 = vrot.slane %v3098_v33, 2  ;;  %v3402_v45 = vmul.f32 0.0, %v5222_v27  ;;  %v3322_v48 = vmul.f32 0.0, %v5218_v41  ;;  %v4068_v4 = vpop.f32.mrf.mxu1  ;;  %v4779_v11 = vld [vmem:[%s4898_s14 + $0x74] sm:$0x1] }
 0x2cb   : > { %v3048_v54 = vadd.f32 %v2983_v53, %v2807_v62  ;;  %v3049_v34 = vadd.f32 %v2985_v37, %v2808_v23  ;;  %v3643_v24 = vmul.f32 0.0, %v6860_v14  ;;  %v3224_v49 = vsel %vm2599_vm7, %v3222_v30, %v3223_v40 }
 0x2cc   : > { %v3226_v2 = vsel %vm2599_vm7, %v3223_v40, %v3225_v43  ;;  %v4064_v16 = vadd.f32 %v6668_v39, %v6883_v8  ;;  %v4131_v32 = vunpack.c.l.bf16 %v4771_v18  ;;  %v3528_v19 = vrot.slane %v3402_v45, 1  ;;  %v4775_v8 = vld [vmem:[%s7031_s2] ss:$0 sm:$0xff] }
 0x2cd   : > { %v3289_v57 = vadd.f32 %v3224_v49, %v3048_v54  ;;  %v3290_v27 = vadd.f32 %v3226_v2, %v3049_v34  ;;  %v3769_v59 = vrot.slane %v3643_v24, 2  ;;  %v4067_v41 = vadd.f32 %v6668_v39, %v4066_v1 }
 0x2ce   : > { %v4240_v47 = vrot.slane %v4131_v32, 1  ;;  %v4132_v14 = vunpack.c.l.bf16 %v4772_v13  ;;  %v4133_v28 = vunpack.c.l.bf16 %v4773_v9  ;;  %v4134_v50 = vunpack.c.l.bf16 %v4774_v26 }
 0x2cf   : > { %v3354_v36 = vadd.f32 %v3322_v48, %v3289_v57  ;;  %v3355_v15 = vadd.f32 %v3322_v48, %v3290_v27  ;;  %v1457_v0 = vadd.f32 %v4775_v8, %v6885_v38  ;;  %v4069_v17 = vadd.f32 %v6668_v39, %v4068_v4  ;;  %v4780_v57 = vld [vmem:[%s4898_s14 + $0x78] sm:$0xf]  ;;  %v4782_v4 = vld [vmem:[%s4898_s14 + $0x80] sm:$0x1] }
 0x2d0   : > { %v4241_v56 = vsel %vm2357_vm6, %v6879_v20, %v4240_v47  ;;  %v4242_v31 = vrot.slane %v4132_v14, 1  ;;  %v4243_v5 = vrot.slane %v4133_v28, 1  ;;  %v4245_v25 = vrot.slane %v4134_v50, 1  ;;  %v4783_v28 = vld [vmem:[%s4898_s14 + $0x84] sm:$0xf] }
 0x2d1   : > { %v3595_v42 = vadd.f32 %v3528_v19, %v3354_v36  ;;  %v3596_v29 = vadd.f32 %v3528_v19, %v3355_v15  ;;  %v4332_v7 = vadd.f32 %v4241_v56, %v4064_v16  ;;  %v1500_v46 = vmax.f32 %v1457_v0, 0.0  ;;  %v4781_v19 = vld [vmem:[%s4898_s14 + $0x7c] sm:$0xf]  ;;  %v4784_v15 = vld [vmem:[%s4898_s14 + $0x88] sm:$0xf] }
 0x2d2   : > { %v4244_v6 = vsel %vm2357_vm6, %v4242_v31, %v4243_v5  ;;  %v4135_v1 = vunpack.c.l.bf16 %v4776_v61  ;;  %v4246_v21 = vsel %vm2357_vm6, %v4243_v5, %v4245_v25  ;;  %v4136_v63 = vunpack.c.l.bf16 %v4777_v52  ;;  %v4071_v51 = vpop.f32.mrf.mxu1  ;;  %v4785_v50 = vld [vmem:[%s4898_s14 + $0x8c] sm:$0x1] }
 0x2d3   : > { %v3836_v12 = vadd.f32 %v3769_v59, %v3595_v42  ;;  %v3837_v60 = vadd.f32 %v3769_v59, %v3596_v29  ;;  %v4628_v38 = vpack.c.bf16 %v4332_v7, %v4331_v55  ;;  %v4333_v20 = vadd.f32 %v4244_v6, %v4067_v41 }
 0x2d4   : > { %v1541_v58 = vmin.f32 %v1500_v46, 6.0  ;;  %v4334_v10 = vadd.f32 %v4246_v21, %v4069_v17  ;;  %v4137_v3 = vunpack.c.l.bf16 %v4779_v11  ;;  %v4247_v23 = vrot.slane %v4135_v1, 1 }
 0x2d5   : > { %v3872_v22 = vadd.f32 %v4778_v35, %v3836_v12  ;;  %v3873_v44 = vadd.f32 %v4778_v35, %v3837_v60  ;;  %4680 = vst [vmem:[%s6166_s23 + $0x30] sm:$0xff] %v4628_v38   ;;  %v4248_v40 = vrot.slane %v4136_v63, 1  ;;  %v4072_v54 = vadd.f32 %v6668_v39, %v4071_v51  ;;  %v4786_v63 = vld [vmem:[%s4898_s14 + $0x90] sm:$0xf] }
 0x2d6   : > { %v1703_v33 = vrot.slane %v1541_v58, 2  ;;  %2113 = vst [vmem:[#allocation1 + $0x3] ss:$4 sm:$0xff] %v1541_v58  ;;  %v4633_v62 = vpack.c.bf16 %v4334_v10, %v4333_v20  ;;  %v4250_v43 = vrot.slane %v4137_v3, 1  ;;  %v4138_v27 = vunpack.c.l.bf16 %v4780_v57  ;;  %v4788_v10 = vld [vmem:[%s4898_s14 + $0x98] sm:$0x1] }
 0x2d7   : > { %v3904_v30 = vmax.f32 %v3872_v22, 0.0  ;;  %v3905_v55 = vmax.f32 %v3873_v44, 0.0  ;;  %v4249_v34 = vsel %vm2357_vm6, %v4247_v23, %v4248_v40  ;;  %v4139_v59 = vunpack.c.l.bf16 %v4781_v19  ;;  %v4787_v22 = vld [vmem:[%s4898_s14 + $0x94] sm:$0xf] }
 0x2d8   : > { %2114 = vst [vmem:[#allocation1 + $0x20] ss:$4 sm:$0xff] %v1703_v33  ;;  %v4251_v24 = vsel %vm2357_vm6, %v4248_v40, %v4250_v43  ;;  %v4335_v2 = vadd.f32 %v4249_v34, %v4072_v54  ;;  %v4140_v47 = vunpack.c.l.bf16 %v4782_v4  ;;  %v4252_v41 = vrot.slane %v4138_v27, 1  ;;  %v4789_v54 = vld [vmem:[%s4898_s14 + $0x9c] sm:$0xf] }
 0x2d9   : > { %v3936_v53 = vmin.f32 %v3904_v30, 6.0  ;;  %v3937_v37 = vmin.f32 %v3905_v55, 6.0  ;;  %4681 = vst [vmem:[%s6166_s23 + $0x38] sm:$0xff] %v4633_v62   ;;  %v4253_v13 = vrot.slane %v4139_v59, 1  ;;  %v4141_v36 = vunpack.c.l.bf16 %v4783_v28 }
 0x2da   : > { %v4073_v48 = vpop.f32.mrf.mxu1  ;;  %v4255_v14 = vrot.slane %v4140_v47, 1  ;;  %v4142_v26 = vunpack.c.l.bf16 %v4784_v15  ;;  %v4143_v8 = vunpack.c.l.bf16 %v4785_v50  ;;  %v4144_v35 = vunpack.c.l.bf16 %v4786_v63 }
 0x2db   : > { %v3953_v45 = vpack.c.bf16 %v3937_v37, %v3936_v53  ;;  %v4074_v49 = vadd.f32 %v6668_v39, %v4073_v48  ;;  %v4254_v56 = vsel %vm2357_vm6, %v4252_v41, %v4253_v13  ;;  %v4257_v42 = vrot.slane %v4141_v36, 1  ;;  %v4790_v48 = vld [vmem:[%s4898_s14 + $0xa0] sm:$0xf]  ;;  %v4793_v36 = vld [vmem:[%s4898_s14 + $0xac] sm:$0xf] }
 0x2dc   : > { %v4256_v5 = vsel %vm2357_vm6, %v4253_v13, %v4255_v14  ;;  %v4258_v29 = vrot.slane %v4142_v26, 1  ;;  %v4260_v7 = vrot.slane %v4143_v8, 1  ;;  %v4145_v44 = vunpack.c.l.bf16 %v4787_v22  ;;  %v4794_v26 = vld [vmem:[%s4898_s14 + $0xb0] sm:$0x1] }
 0x2dd   : > { %4105 = vmatmul.bf16.gmra.mxu3 %v3953_v45  ;;  %v4336_v16 = vadd.f32 %v4251_v24, %v4074_v49  ;;  %v4146_v51 = vunpack.c.l.bf16 %v4788_v10  ;;  %v4262_v11 = vrot.slane %v4144_v35, 1  ;;  %v4147_v34 = vunpack.c.l.bf16 %v4789_v54  ;;  %v4791_v49 = vld [vmem:[%s4898_s14 + $0xa4] sm:$0x1] }
 0x2de   : > { %v4259_v60 = vsel %vm2357_vm6, %v4257_v42, %v4258_v29  ;;  %v4261_v61 = vsel %vm2357_vm6, %v4258_v29, %v4260_v7  ;;  %v4263_v3 = vrot.slane %v4145_v44, 1  ;;  %v4148_v24 = vunpack.c.l.bf16 %v4790_v48 }
 0x2df   : > { %v4638_v18 = vpack.c.bf16 %v4336_v16, %v4335_v2  ;;  %v4265_v33 = vrot.slane %v4146_v51, 1  ;;  %v4149_v2 = vunpack.c.l.bf16 %v4791_v49  ;;  %v4267_v16 = vrot.slane %v4147_v34, 1 }
 0x2e0   : > { %v4264_v55 = vsel %vm2357_vm6, %v4262_v11, %v4263_v3  ;;  %v4151_v15 = vunpack.c.l.bf16 %v4793_v36  ;;  %v4152_v50 = vunpack.c.l.bf16 %v4794_v26 }
 0x2e1   : > { %4682 = vst [vmem:[%s6166_s23 + $0x40] sm:$0xff] %v4638_v18   ;;  %v4266_v23 = vsel %vm2357_vm6, %v4263_v3, %v4265_v33  ;;  %v4268_v18 = vrot.slane %v4148_v24, 1 }
 0x2e2   : > { %v4076_v32 = vpop.f32.mrf.mxu1 }
 0x2e3   : > { %v4077_v0 = vadd.f32 %v6668_v39, %v4076_v32  ;;  %v4270_v32 = vrot.slane %v4149_v2, 1  ;;  %v4269_v27 = vsel %vm2357_vm6, %v4267_v16, %v4268_v18 }
 0x2e5   : > { %v4337_v25 = vadd.f32 %v4254_v56, %v4077_v0  ;;  %v4271_v59 = vsel %vm2357_vm6, %v4268_v18, %v4270_v32  ;;  %v4273_v0 = vrot.slane %v4151_v15, 1  ;;  %v4275_v56 = vrot.slane %v4152_v50, 1 }
 0x2e7   : > { %v4276_v42 = vsel %vm2357_vm6, %v4273_v0, %v4275_v56 }
 0x2ea   : > { %v4081_v9 = vpop.f32.mrf.mxu3  ;;  %v4078_v31 = vpop.f32.mrf.mxu1 }
 0x2eb   : > { %v4079_v17 = vadd.f32 %v6668_v39, %v4078_v31  ;;  %v4082_v46 = vadd.f32 %v6668_v39, %v4081_v9  ;;  %v4792_v9 = vld [vmem:[%s4898_s14 + $0xa8] sm:$0xf] }
 0x2ec   : > { %v4150_v28 = vunpack.c.l.bf16 %v4792_v9 }
 0x2ed   : > { %v4338_v6 = vadd.f32 %v4256_v5, %v4079_v17  ;;  %v4339_v20 = vadd.f32 %v4259_v60, %v4082_v46 }
 0x2ee   : > { %v4272_v8 = vrot.slane %v4150_v28, 1 }
 0x2ef   : > { %v4643_v12 = vpack.c.bf16 %v4338_v6, %v4337_v25 }
 0x2f0   : > { %v4274_v5 = vsel %vm2357_vm6, %v4272_v8, %v4273_v0 }
 0x2f1   : > { %4683 = vst [vmem:[%s6166_s23 + $0x48] sm:$0xff] %v4643_v12   ;;  %v4795_v12 = vld [vmem:[%s4898_s14 + $0xb4] sm:$0xf] }
 0x2f2   : > { %v4083_v38 = vpop.f32.mrf.mxu3  ;;  %v4153_v60 = vunpack.c.l.bf16 %v4795_v12 }
 0x2f3   : > { %v4084_v1 = vadd.f32 %v6668_v39, %v4083_v38  ;;  %v4796_v38 = vld [vmem:[%s4898_s14 + $0xb8] sm:$0xf] }
 0x2f5   : > { %v4340_v21 = vadd.f32 %v4261_v61, %v4084_v1  ;;  %v4154_v61 = vunpack.c.l.bf16 %v4796_v38  ;;  %v4797_v1 = vld [vmem:[%s4898_s14 + $0xbc] sm:$0x1] }
 0x2f7   : > { %v4648_v58 = vpack.c.bf16 %v4340_v21, %v4339_v20  ;;  %v4155_v20 = vunpack.c.l.bf16 %v4797_v1  ;;  %v4277_v21 = vrot.slane %v4153_v60, 1 }
 0x2f9   : > { %4684 = vst [vmem:[%s6166_s23 + $0x50] sm:$0xff] %v4648_v58   ;;  %v4278_v58 = vrot.slane %v4154_v61, 1 }
 0x2fb   : > { %v4279_v35 = vsel %vm2357_vm6, %v4277_v21, %v4278_v58 }
 0x303   : > { %v4086_v52 = vpop.f32.mrf.mxu3 }
 0x304   : > { %v4087_v30 = vadd.f32 %v6668_v39, %v4086_v52  ;;  %v4280_v52 = vrot.slane %v4155_v20, 1 }
 0x306   : > { %v4341_v37 = vadd.f32 %v4264_v55, %v4087_v30  ;;  %v4281_v44 = vsel %vm2357_vm6, %v4278_v58, %v4280_v52  ;;  %v4798_v30 = vld [vmem:[%s4898_s14 + $0xc0] sm:$0xf] }
 0x307   : > { %v4156_v55 = vunpack.c.l.bf16 %v4798_v30 }
 0x30b   : > { %v4088_v62 = vpop.f32.mrf.mxu3 }
 0x30c   : > { %v4089_v53 = vadd.f32 %v6668_v39, %v4088_v62  ;;  %v4799_v62 = vld [vmem:[%s4898_s14 + $0xc4] sm:$0xf] }
 0x30e   : > { %v4342_v40 = vadd.f32 %v4266_v23, %v4089_v53  ;;  %v4157_v23 = vunpack.c.l.bf16 %v4799_v62  ;;  %v4800_v53 = vld [vmem:[%s4898_s14 + $0xc8] sm:$0x1] }
 0x310   : > { %v4653_v43 = vpack.c.bf16 %v4342_v40, %v4341_v37  ;;  %v4158_v37 = vunpack.c.l.bf16 %v4800_v53  ;;  %v4282_v40 = vrot.slane %v4156_v55, 1 }
 0x312   : > { %4685 = vst [vmem:[%s6166_s23 + $0x58] sm:$0xff] %v4653_v43   ;;  %v4283_v43 = vrot.slane %v4157_v23, 1 }
 0x314   : > { %v4284_v34 = vsel %vm2357_vm6, %v4282_v40, %v4283_v43 }
 0x31c   : > { %v4091_v45 = vpop.f32.mrf.mxu3 }
 0x31d   : > { %v4092_v57 = vadd.f32 %v6668_v39, %v4091_v45  ;;  %v4285_v45 = vrot.slane %v4158_v37, 1 }
 0x31f   : > { %v4343_v47 = vadd.f32 %v4269_v27, %v4092_v57  ;;  %v4286_v24 = vsel %vm2357_vm6, %v4283_v43, %v4285_v45 }
 0x324   : > { %v4093_v19 = vpop.f32.mrf.mxu3 }
 0x325   : > { %v4094_v4 = vadd.f32 %v6668_v39, %v4093_v19 }
 0x327   : > { %v4344_v41 = vadd.f32 %v4271_v59, %v4094_v4 }
 0x329   : > { %v4658_v13 = vpack.c.bf16 %v4344_v41, %v4343_v47 }
 0x32b   : > { %4686 = vst [vmem:[%s6166_s23 + $0x60] sm:$0xff] %v4658_v13  }
 0x333   : > { %v4096_v14 = vpop.f32.mrf.mxu3 }
 0x334   : > { %v4097_v31 = vadd.f32 %v6668_v39, %v4096_v14 }
 0x336   : > { %v4345_v7 = vadd.f32 %v4274_v5, %v4097_v31 }
 0x33b   : > { %v4098_v17 = vpop.f32.mrf.mxu3 }
 0x33c   : > { %v4099_v29 = vadd.f32 %v6668_v39, %v4098_v17 }
 0x33e   : > { %v4346_v25 = vadd.f32 %v4276_v42, %v4099_v29 }
 0x340   : > { %v4663_v6 = vpack.c.bf16 %v4346_v25, %v4345_v7 }
 0x342   : > { %4687 = vst [vmem:[%s6166_s23 + $0x68] sm:$0xff] %v4663_v6  }
 0x34a   : > { %v4101_v46 = vpop.f32.mrf.mxu3 }
 0x34b   : > { %v4102_v63 = vadd.f32 %v6668_v39, %v4101_v46 }
 0x34d   : > { %v4347_v51 = vadd.f32 %v4279_v35, %v4102_v63 }
 0x352   : > { %v4103_v22 = vpop.f32.mrf.mxu3 }
 0x353   : > { %v4104_v10 = vadd.f32 %v6668_v39, %v4103_v22 }
 0x355   : > { %v4348_v11 = vadd.f32 %v4281_v44, %v4104_v10 }
 0x357   : > { %v4668_v3 = vpack.c.bf16 %v4348_v11, %v4347_v51 }
 0x359   : > { %4688 = vst [vmem:[%s6166_s23 + $0x70] sm:$0xff] %v4668_v3  }
 0x360   : > { %v4106_v33 = vpop.f32.mrf.mxu3 }
 0x361   : > { %v4107_v54 = vadd.f32 %v6668_v39, %v4106_v33 }
 0x363   : > { %v4349_v2 = vadd.f32 %v4284_v34, %v4107_v54 }
 0x368   : > { %v4108_v48 = vpop.f32.mrf.mxu3 }
 0x369   : > { %v4109_v49 = vadd.f32 %v6668_v39, %v4108_v48 }
 0x36b   : > { %v4350_v16 = vadd.f32 %v4286_v24, %v4109_v49 }
 0x36d   : > { %v4673_v18 = vpack.c.bf16 %v4350_v16, %v4349_v2 }
 0x36f   : > { %4689 = vst [vmem:[%s6166_s23 + $0x78] sm:$0xff] %v4673_v18  }
 0x370 PF: > { %s17_s26 = sadd.s32 1, %s4823_s26   ;;  %s7055_s24 = smov %s4819_s25 }
 0x371   : > { %p14_p5 = scmp.ge.s32.totalorder %s17_s26, 4   ;;  %s7056_s25 = smov %s7058_s27 }
 0x373   :  { %16 = sbr.rel (!%p14_p5) target bundleno = 2 (0x2), region = 93 }

</bundles_post_ra>
